<compile_context>
chip_gen: v6e
topology: v6e:2x2x1
jax: 0.10.0
libtpu: 0.0.40
codegen_flags: <defaults>
</compile_context>

<pallas_src>
import functools
import math

import jax
import jax.numpy as jnp
import numpy as np
from jax.experimental import pallas as pl
from jax.experimental.pallas import tpu as pltpu


# ---------------------------------------------------------------------------
# One-time parameter preparation (outside the per-call path).
# ---------------------------------------------------------------------------
def prepare_params(W_q, W_k, W_v, W_o):
    """Fuse per-head (dim, d) projections into (dim, h*d) bf16 matrices and
    pre-cast W_o.  Columns [i*d:(i+1)*d] of a fused matrix reproduce head i."""
    h, dim, d = W_q.shape

    def fuse(w):
        return jnp.transpose(w, (1, 0, 2)).reshape(dim, h * d).astype(jnp.bfloat16)

    return fuse(W_q), fuse(W_k), fuse(W_v), W_o.astype(jnp.bfloat16)


# ---------------------------------------------------------------------------
# Kernel 1: K/V projections, run once per call (hoisted out of the query grid).
# ---------------------------------------------------------------------------
def _kv_proj_kernel(k_ref, v_ref, wk_ref, wv_ref, kp_ref, vp_ref):
    # f32 tiles are cast to bf16 on the VPU right before the MXU dots;
    # accumulation is f32, outputs stored as bf16 for the attention kernel.
    kp_ref[...] = jnp.dot(k_ref[...].astype(jnp.bfloat16), wk_ref[...],
                          preferred_element_type=jnp.float32).astype(jnp.bfloat16)
    vp_ref[...] = jnp.dot(v_ref[...].astype(jnp.bfloat16), wv_ref[...],
                          preferred_element_type=jnp.float32).astype(jnp.bfloat16)


# ---------------------------------------------------------------------------
# Kernel 2: per-query-tile attention + output projection.
# ---------------------------------------------------------------------------
def _mha_kernel(q_ref, kp_ref, vp_ref, wq_ref, wo_ref, o_ref, cat_ref,
                *, h, d, mask):
    tn = q_ref.shape[0]
    n_kv = kp_ref.shape[0]

    # Fused Q projection for all heads: one 512-contraction bf16 MXU matmul.
    qp = jnp.dot(q_ref[...].astype(jnp.bfloat16), wq_ref[...],
                 preferred_element_type=jnp.float32)
    # Apply 1/sqrt(d) once here instead of scaling each (tn, N) score matrix.
    qp = (qp * jnp.float32(1.0 / math.sqrt(d))).astype(jnp.bfloat16)

    kp = kp_ref[...]          # (N, h*d) bf16, projected once per call
    vp = vp_ref[...]

    if mask:
        # Strict upper-triangular causal mask, computed once (not per head).
        # Finite large-negative instead of -inf so a fully-masked row cannot
        # produce NaNs via exp(-inf - (-inf)).
        row = (jax.lax.broadcasted_iota(jnp.int32, (tn, n_kv), 0)
               + pl.program_id(0) * tn)
        col = jax.lax.broadcasted_iota(jnp.int32, (tn, n_kv), 1)
        neg = jnp.where(col > row, jnp.float32(-1e30), jnp.float32(0.0))

    for hh in range(h):                      # static unroll, h is small
        lo = hh * d
        # (tn, N) scores: contract the last dim of both operands (no transpose).
        s = jax.lax.dot_general(qp[:, lo:lo + d], kp[:, lo:lo + d],
                                (((1,), (1,)), ((), ())),
                                preferred_element_type=jnp.float32)
        if mask:
            s = s + neg
        # Softmax over the last axis in f32; the reciprocal runs on the EUP.
        # TODO(synk): switch to exact division if this feeds training.
        s = s - jnp.max(s, axis=-1, keepdims=True)
        e = jnp.exp(s)
        p = e * pl.reciprocal(jnp.sum(e, axis=-1, keepdims=True), approx=True)
        pv = jnp.dot(p.astype(jnp.bfloat16), vp[:, lo:lo + d],
                     preferred_element_type=jnp.float32)
        # Build concat(heads) directly in a bf16 VMEM scratch (no f32 concat).
        cat_ref[:, lo:lo + d] = pv.astype(jnp.bfloat16)

    # One 512-contraction output projection onto a lane-dense (tn, 512) tile.
    o_ref[...] = jnp.dot(cat_ref[...], wo_ref[...],
                         preferred_element_type=jnp.float32)


# ---------------------------------------------------------------------------
# Wrapper.
# ---------------------------------------------------------------------------
def _row_tile(n, cap=256):
    """Largest 8-aligned divisor of n up to `cap` (full n when n <= cap)."""
    if n <= cap:
        return n
    for t in range(cap, 7, -1):
        if n % t == 0 and t % 8 == 0:
            return t
    return n  # TODO(synk): pad/mask ragged query tiles instead of one big tile


def _vmem_limit_bytes(tn, n_kv, dim, hd):
    f32, bf16 = 4, 2
    need = (2 * tn * dim * f32        # Q tile (double-buffered)
            + 2 * tn * dim * f32      # output tile (double-buffered)
            + 2 * n_kv * hd * bf16    # kp + vp (single-buffered constants)
            + dim * hd * bf16         # wq (fused)
            + dim * dim * bf16        # wo
            + tn * hd * bf16          # concat scratch
            + 2 * tn * hd * f32       # qp intermediates
            + 4 * tn * n_kv * f32)    # score/softmax temporaries (rough)
    # 1.5x headroom for compiler temporaries, clamped to v7x physical VMEM.
    return int(min(max(1.5 * need + (4 << 20), 32 << 20), 64 << 20))


@functools.partial(jax.jit, static_argnames=("num_heads", "mask"))
def multi_head_attention(Q, K, V, wq, wk, wv, wo, *, num_heads, mask=False):
    """Forward pass of MultiHeadAttentionLayer.  wq/wk/wv/wo come from
    prepare_params (head-fused, bf16); Q/K/V stay f32 at this boundary."""
    n, dim = Q.shape
    n_kv = K.shape[0]
    hd = wq.shape[1]
    d = hd // num_heads

    const = dict(pipeline_mode=pl.Buffered(1))   # constant-index blocks

    # ---- K/V projections: run once, not once per query-row grid step -------
    tkv = _row_tile(n_kv)
    kp, vp = pl.pallas_call(
        _kv_proj_kernel,
        out_shape=(jax.ShapeDtypeStruct((n_kv, hd), jnp.bfloat16),
                   jax.ShapeDtypeStruct((n_kv, hd), jnp.bfloat16)),
        grid=(n_kv // tkv,),
        in_specs=[
            pl.BlockSpec((tkv, dim), lambda i: (i, 0)),            # K rows (f32)
            pl.BlockSpec((tkv, dim), lambda i: (i, 0)),            # V rows (f32)
            pl.BlockSpec((dim, hd), lambda i: (0, 0), **const),    # fused W_k
            pl.BlockSpec((dim, hd), lambda i: (0, 0), **const),    # fused W_v
        ],
        out_specs=(pl.BlockSpec((tkv, hd), lambda i: (i, 0)),
                   pl.BlockSpec((tkv, hd), lambda i: (i, 0))),
        compiler_params=pltpu.CompilerParams(
            dimension_semantics=("parallel",),
            vmem_limit_bytes=_vmem_limit_bytes(tkv, tkv, dim, hd)),
    )(K, V, wk, wv)

    # ---- attention + output projection, tiled over query rows --------------
    # NOTE(v7x): with 'parallel' semantics each TensorCore re-DMAs kp/vp and
    # the weights; acceptable since the grid only exceeds one step when the
    # per-tile score/PV work dominates that traffic.
    tn = _row_tile(n)
    kernel = functools.partial(_mha_kernel, h=num_heads, d=d, mask=mask)
    return pl.pallas_call(
        kernel,
        out_shape=jax.ShapeDtypeStruct((n, dim), jnp.float32),
        grid=(n // tn,),
        in_specs=[
            pl.BlockSpec((tn, dim), lambda i: (i, 0)),             # Q row tile (f32)
            pl.BlockSpec((n_kv, hd), lambda i: (0, 0), **const),   # kp (bf16)
            pl.BlockSpec((n_kv, hd), lambda i: (0, 0), **const),   # vp (bf16)
            pl.BlockSpec((dim, hd), lambda i: (0, 0), **const),    # fused W_q
            pl.BlockSpec((dim, dim), lambda i: (0, 0), **const),   # W_o
        ],
        out_specs=pl.BlockSpec((tn, dim), lambda i: (i, 0)),
        scratch_shapes=[pltpu.VMEM((tn, hd), jnp.bfloat16)],       # concat(heads)
        compiler_params=pltpu.CompilerParams(
            dimension_semantics=("parallel",),
            vmem_limit_bytes=_vmem_limit_bytes(tn, n_kv, dim, hd)),
    )(Q, kp, vp, wq, wo)


# ---------------------------------------------------------------------------
# Pure-JAX reference (mirrors the kernel's bf16 MXU-operand casts, f32 softmax).
# ---------------------------------------------------------------------------
def reference(Q, K, V, W_q, W_k, W_v, W_o, *, mask=False):
    h, dim, d = W_q.shape
    qb, kb, vb = (x.astype(jnp.bfloat16) for x in (Q, K, V))
    inv = 1.0 / jnp.sqrt(jnp.float32(d))
    heads = []
    for i in range(h):
        qp = jnp.dot(qb, W_q[i].astype(jnp.bfloat16),
                     preferred_element_type=jnp.float32)
        kp = jnp.dot(kb, W_k[i].astype(jnp.bfloat16),
                     preferred_element_type=jnp.float32).astype(jnp.bfloat16)
        vp = jnp.dot(vb, W_v[i].astype(jnp.bfloat16),
                     preferred_element_type=jnp.float32).astype(jnp.bfloat16)
        qp = (qp * inv).astype(jnp.bfloat16)
        s = jnp.dot(qp, kp.T, preferred_element_type=jnp.float32)
        if mask:
            m = jnp.triu(jnp.ones_like(s, dtype=bool), k=1)
            s = jnp.where(m, jnp.float32(-1e30), s)
        p = jax.nn.softmax(s, axis=-1)
        heads.append(jnp.dot(p.astype(jnp.bfloat16), vp,
                             preferred_element_type=jnp.float32))
    cat = jnp.concatenate(heads, axis=1).astype(jnp.bfloat16)
    return jnp.dot(cat, W_o.astype(jnp.bfloat16),
                   preferred_element_type=jnp.float32)


if __name__ == "__main__":
    # Module defaults: h=8, dim=512 (AttentionLayer input dim hard-coded to 512).
    h, dim = 8, 512
    d = dim // h          # 64
    n, N = 8, 8           # query / key-value lengths
    mask = False          # module default

    key = jax.random.PRNGKey(0)
    kq, kk, kv, kwq, kwk, kwv, kwo = jax.random.split(key, 7)

    # Deterministic init mirroring torch.rand(...)/sqrt(d): U[0,1) / sqrt(d).
    W_q = jax.random.uniform(kwq, (h, dim, d), jnp.float32) / jnp.sqrt(jnp.float32(d))
    W_k = jax.random.uniform(kwk, (h, dim, d), jnp.float32) / jnp.sqrt(jnp.float32(d))
    W_v = jax.random.uniform(kwv, (h, dim, d), jnp.float32) / jnp.sqrt(jnp.float32(d))
    W_o = jax.random.uniform(kwo, (dim, dim), jnp.float32) / jnp.sqrt(jnp.float32(dim))

    Q = jax.random.normal(kq, (n, dim), jnp.float32)
    K = jax.random.normal(kk, (N, dim), jnp.float32)
    V = jax.random.normal(kv, (N, dim), jnp.float32)

    # One-time parameter prep (head fusion + bf16 cast), outside the call path.
    wq, wk, wv, wo = jax.block_until_ready(prepare_params(W_q, W_k, W_v, W_o))

    out = multi_head_attention(Q, K, V, wq, wk, wv, wo, num_heads=h, mask=mask)
    out = jax.block_until_ready(out)

    ref = reference(Q, K, V, W_q, W_k, W_v, W_o, mask=mask)
    # bf16 MXU operands + approx reciprocal -> compare against the
    # bf16-mirrored reference with a tolerance that covers both.
    np.testing.assert_allclose(np.asarray(out), np.asarray(ref),
                               rtol=2e-2, atol=2e-2)

    print("KERNEL_OK")
</pallas_src>

<mosaic_0001>
module attributes {stable_mosaic.version = 11 : i64} {
  func.func @_mha_kernel(%arg0: i32, %arg1: memref<8x512xf32, #tpu.memory_space<vmem>>, %arg2: memref<8x512xbf16, #tpu.memory_space<vmem>>, %arg3: memref<8x512xbf16, #tpu.memory_space<vmem>>, %arg4: memref<512x512xbf16, #tpu.memory_space<vmem>>, %arg5: memref<512x512xbf16, #tpu.memory_space<vmem>>, %arg6: memref<8x512xf32, #tpu.memory_space<vmem>>, %arg7: memref<8x512xbf16, #tpu.memory_space<vmem>>) attributes {dimension_semantics = [#tpu.dimension_semantics<parallel>], iteration_bounds = array<i64: 1>, scalar_prefetch = 0 : i64, scratch_operands = 1 : i64, tpu.core_type = #tpu.core_type<tc>, window_params = [{transform_indices = @transform_0, window_bounds = array<i64: 8, 512>}, {pipeline_mode = #tpu.pipeline_mode<synchronous>, transform_indices = @transform_1, window_bounds = array<i64: 8, 512>}, {pipeline_mode = #tpu.pipeline_mode<synchronous>, transform_indices = @transform_2, window_bounds = array<i64: 8, 512>}, {pipeline_mode = #tpu.pipeline_mode<synchronous>, transform_indices = @transform_3, window_bounds = array<i64: 512, 512>}, {pipeline_mode = #tpu.pipeline_mode<synchronous>, transform_indices = @transform_4, window_bounds = array<i64: 512, 512>}, {transform_indices = @transform_5, window_bounds = array<i64: 8, 512>}]} {
    %c0 = arith.constant 0 : index
    %c0_0 = arith.constant 0 : index
    %0 = vector.load %arg1[%c0, %c0_0] : memref<8x512xf32, #tpu.memory_space<vmem>>, vector<8x512xf32>
    %1 = arith.truncf %0 : vector<8x512xf32> to vector<8x512xbf16>
    %c0_1 = arith.constant 0 : index
    %c0_2 = arith.constant 0 : index
    %2 = vector.load %arg4[%c0_1, %c0_2] : memref<512x512xbf16, #tpu.memory_space<vmem>>, vector<512x512xbf16>
    %cst = arith.constant dense<0.000000e+00> : vector<8x512xf32>
    %3 = tpu.matmul %1, %2, %cst {dimension_numbers = #tpu.dot_dimension_numbers<[1], [0], [0], [1], [0, 0, 1, 1], [], []>} : vector<8x512xbf16>, vector<512x512xbf16>, vector<8x512xf32> -> vector<8x512xf32>
    %cst_3 = arith.constant 1.250000e-01 : f32
    %4 = vector.broadcast %cst_3 : f32 to vector<8x512xf32>
    %5 = arith.mulf %3, %4 : vector<8x512xf32>
    %6 = arith.truncf %5 : vector<8x512xf32> to vector<8x512xbf16>
    %c0_4 = arith.constant 0 : index
    %c0_5 = arith.constant 0 : index
    %7 = vector.load %arg2[%c0_4, %c0_5] : memref<8x512xbf16, #tpu.memory_space<vmem>>, vector<8x512xbf16>
    %c0_6 = arith.constant 0 : index
    %c0_7 = arith.constant 0 : index
    %8 = vector.load %arg3[%c0_6, %c0_7] : memref<8x512xbf16, #tpu.memory_space<vmem>>, vector<8x512xbf16>
    %9 = vector.extract_strided_slice %6 {offsets = [0, 0], sizes = [8, 64], strides = [1, 1]} : vector<8x512xbf16> to vector<8x64xbf16>
    %10 = vector.extract_strided_slice %7 {offsets = [0, 0], sizes = [8, 64], strides = [1, 1]} : vector<8x512xbf16> to vector<8x64xbf16>
    %cst_8 = arith.constant dense<0.000000e+00> : vector<8x8xf32>
    %11 = tpu.matmul %9, %10, %cst_8 {dimension_numbers = #tpu.dot_dimension_numbers<[1], [1], [0], [0], [0, 0, 1, 0], [], []>} : vector<8x64xbf16>, vector<8x64xbf16>, vector<8x8xf32> -> vector<8x8xf32>
    %cst_9 = arith.constant dense<0xFF800000> : vector<8xf32>
    %12 = vector.multi_reduction <maximumf>, %11, %cst_9 [1] : vector<8x8xf32> to vector<8xf32>
    %13 = vector.shape_cast %12 : vector<8xf32> to vector<8x1xf32>
    %14 = vector.broadcast %13 : vector<8x1xf32> to vector<8x8xf32>
    %15 = arith.subf %11, %14 : vector<8x8xf32>
    %16 = math.exp %15 : vector<8x8xf32>
    %cst_10 = arith.constant dense<0.000000e+00> : vector<8xf32>
    %17 = vector.multi_reduction <add>, %16, %cst_10 [1] : vector<8x8xf32> to vector<8xf32>
    %18 = vector.shape_cast %17 : vector<8xf32> to vector<8x1xf32>
    %19 = tpu.reciprocal %18 {approx = true} : vector<8x1xf32> -> vector<8x1xf32>
    %20 = vector.broadcast %19 : vector<8x1xf32> to vector<8x8xf32>
    %21 = arith.mulf %16, %20 : vector<8x8xf32>
    %22 = arith.truncf %21 : vector<8x8xf32> to vector<8x8xbf16>
    %23 = vector.extract_strided_slice %8 {offsets = [0, 0], sizes = [8, 64], strides = [1, 1]} : vector<8x512xbf16> to vector<8x64xbf16>
    %cst_11 = arith.constant dense<0.000000e+00> : vector<8x64xf32>
    %24 = tpu.matmul %22, %23, %cst_11 {dimension_numbers = #tpu.dot_dimension_numbers<[1], [0], [0], [1], [0, 0, 1, 1], [], []>} : vector<8x8xbf16>, vector<8x64xbf16>, vector<8x64xf32> -> vector<8x64xf32>
    %25 = arith.truncf %24 : vector<8x64xf32> to vector<8x64xbf16>
    %c0_12 = arith.constant 0 : index
    %c0_13 = arith.constant 0 : index
    %26 = vector.load %arg7[%c0_12, %c0_13] : memref<8x512xbf16, #tpu.memory_space<vmem>>, vector<8x64xbf16>
    tpu.vector_store %arg7[%c0_12, %c0_13], %25 {strides = array<i32>} : memref<8x512xbf16, #tpu.memory_space<vmem>>, vector<8x64xbf16>,
    %27 = vector.extract_strided_slice %6 {offsets = [0, 64], sizes = [8, 64], strides = [1, 1]} : vector<8x512xbf16> to vector<8x64xbf16>
    %28 = vector.extract_strided_slice %7 {offsets = [0, 64], sizes = [8, 64], strides = [1, 1]} : vector<8x512xbf16> to vector<8x64xbf16>
    %cst_14 = arith.constant dense<0.000000e+00> : vector<8x8xf32>
    %29 = tpu.matmul %27, %28, %cst_14 {dimension_numbers = #tpu.dot_dimension_numbers<[1], [1], [0], [0], [0, 0, 1, 0], [], []>} : vector<8x64xbf16>, vector<8x64xbf16>, vector<8x8xf32> -> vector<8x8xf32>
    %cst_15 = arith.constant dense<0xFF800000> : vector<8xf32>
    %30 = vector.multi_reduction <maximumf>, %29, %cst_15 [1] : vector<8x8xf32> to vector<8xf32>
    %31 = vector.shape_cast %30 : vector<8xf32> to vector<8x1xf32>
    %32 = vector.broadcast %31 : vector<8x1xf32> to vector<8x8xf32>
    %33 = arith.subf %29, %32 : vector<8x8xf32>
    %34 = math.exp %33 : vector<8x8xf32>
    %cst_16 = arith.constant dense<0.000000e+00> : vector<8xf32>
    %35 = vector.multi_reduction <add>, %34, %cst_16 [1] : vector<8x8xf32> to vector<8xf32>
    %36 = vector.shape_cast %35 : vector<8xf32> to vector<8x1xf32>
    %37 = tpu.reciprocal %36 {approx = true} : vector<8x1xf32> -> vector<8x1xf32>
    %38 = vector.broadcast %37 : vector<8x1xf32> to vector<8x8xf32>
    %39 = arith.mulf %34, %38 : vector<8x8xf32>
    %40 = arith.truncf %39 : vector<8x8xf32> to vector<8x8xbf16>
    %41 = vector.extract_strided_slice %8 {offsets = [0, 64], sizes = [8, 64], strides = [1, 1]} : vector<8x512xbf16> to vector<8x64xbf16>
    %cst_17 = arith.constant dense<0.000000e+00> : vector<8x64xf32>
    %42 = tpu.matmul %40, %41, %cst_17 {dimension_numbers = #tpu.dot_dimension_numbers<[1], [0], [0], [1], [0, 0, 1, 1], [], []>} : vector<8x8xbf16>, vector<8x64xbf16>, vector<8x64xf32> -> vector<8x64xf32>
    %43 = arith.truncf %42 : vector<8x64xf32> to vector<8x64xbf16>
    %c0_18 = arith.constant 0 : index
    %c64 = arith.constant 64 : index
    %44 = vector.load %arg7[%c0_18, %c64] : memref<8x512xbf16, #tpu.memory_space<vmem>>, vector<8x64xbf16>
    tpu.vector_store %arg7[%c0_18, %c64], %43 {strides = array<i32>} : memref<8x512xbf16, #tpu.memory_space<vmem>>, vector<8x64xbf16>,
    %45 = vector.extract_strided_slice %6 {offsets = [0, 128], sizes = [8, 64], strides = [1, 1]} : vector<8x512xbf16> to vector<8x64xbf16>
    %46 = vector.extract_strided_slice %7 {offsets = [0, 128], sizes = [8, 64], strides = [1, 1]} : vector<8x512xbf16> to vector<8x64xbf16>
    %cst_19 = arith.constant dense<0.000000e+00> : vector<8x8xf32>
    %47 = tpu.matmul %45, %46, %cst_19 {dimension_numbers = #tpu.dot_dimension_numbers<[1], [1], [0], [0], [0, 0, 1, 0], [], []>} : vector<8x64xbf16>, vector<8x64xbf16>, vector<8x8xf32> -> vector<8x8xf32>
    %cst_20 = arith.constant dense<0xFF800000> : vector<8xf32>
    %48 = vector.multi_reduction <maximumf>, %47, %cst_20 [1] : vector<8x8xf32> to vector<8xf32>
    %49 = vector.shape_cast %48 : vector<8xf32> to vector<8x1xf32>
    %50 = vector.broadcast %49 : vector<8x1xf32> to vector<8x8xf32>
    %51 = arith.subf %47, %50 : vector<8x8xf32>
    %52 = math.exp %51 : vector<8x8xf32>
    %cst_21 = arith.constant dense<0.000000e+00> : vector<8xf32>
    %53 = vector.multi_reduction <add>, %52, %cst_21 [1] : vector<8x8xf32> to vector<8xf32>
    %54 = vector.shape_cast %53 : vector<8xf32> to vector<8x1xf32>
    %55 = tpu.reciprocal %54 {approx = true} : vector<8x1xf32> -> vector<8x1xf32>
    %56 = vector.broadcast %55 : vector<8x1xf32> to vector<8x8xf32>
    %57 = arith.mulf %52, %56 : vector<8x8xf32>
    %58 = arith.truncf %57 : vector<8x8xf32> to vector<8x8xbf16>
    %59 = vector.extract_strided_slice %8 {offsets = [0, 128], sizes = [8, 64], strides = [1, 1]} : vector<8x512xbf16> to vector<8x64xbf16>
    %cst_22 = arith.constant dense<0.000000e+00> : vector<8x64xf32>
    %60 = tpu.matmul %58, %59, %cst_22 {dimension_numbers = #tpu.dot_dimension_numbers<[1], [0], [0], [1], [0, 0, 1, 1], [], []>} : vector<8x8xbf16>, vector<8x64xbf16>, vector<8x64xf32> -> vector<8x64xf32>
    %61 = arith.truncf %60 : vector<8x64xf32> to vector<8x64xbf16>
    %c0_23 = arith.constant 0 : index
    %c128 = arith.constant 128 : index
    %62 = vector.load %arg7[%c0_23, %c128] : memref<8x512xbf16, #tpu.memory_space<vmem>>, vector<8x64xbf16>
    tpu.vector_store %arg7[%c0_23, %c128], %61 {strides = array<i32>} : memref<8x512xbf16, #tpu.memory_space<vmem>>, vector<8x64xbf16>,
    %63 = vector.extract_strided_slice %6 {offsets = [0, 192], sizes = [8, 64], strides = [1, 1]} : vector<8x512xbf16> to vector<8x64xbf16>
    %64 = vector.extract_strided_slice %7 {offsets = [0, 192], sizes = [8, 64], strides = [1, 1]} : vector<8x512xbf16> to vector<8x64xbf16>
    %cst_24 = arith.constant dense<0.000000e+00> : vector<8x8xf32>
    %65 = tpu.matmul %63, %64, %cst_24 {dimension_numbers = #tpu.dot_dimension_numbers<[1], [1], [0], [0], [0, 0, 1, 0], [], []>} : vector<8x64xbf16>, vector<8x64xbf16>, vector<8x8xf32> -> vector<8x8xf32>
    %cst_25 = arith.constant dense<0xFF800000> : vector<8xf32>
    %66 = vector.multi_reduction <maximumf>, %65, %cst_25 [1] : vector<8x8xf32> to vector<8xf32>
    %67 = vector.shape_cast %66 : vector<8xf32> to vector<8x1xf32>
    %68 = vector.broadcast %67 : vector<8x1xf32> to vector<8x8xf32>
    %69 = arith.subf %65, %68 : vector<8x8xf32>
    %70 = math.exp %69 : vector<8x8xf32>
    %cst_26 = arith.constant dense<0.000000e+00> : vector<8xf32>
    %71 = vector.multi_reduction <add>, %70, %cst_26 [1] : vector<8x8xf32> to vector<8xf32>
    %72 = vector.shape_cast %71 : vector<8xf32> to vector<8x1xf32>
    %73 = tpu.reciprocal %72 {approx = true} : vector<8x1xf32> -> vector<8x1xf32>
    %74 = vector.broadcast %73 : vector<8x1xf32> to vector<8x8xf32>
    %75 = arith.mulf %70, %74 : vector<8x8xf32>
    %76 = arith.truncf %75 : vector<8x8xf32> to vector<8x8xbf16>
    %77 = vector.extract_strided_slice %8 {offsets = [0, 192], sizes = [8, 64], strides = [1, 1]} : vector<8x512xbf16> to vector<8x64xbf16>
    %cst_27 = arith.constant dense<0.000000e+00> : vector<8x64xf32>
    %78 = tpu.matmul %76, %77, %cst_27 {dimension_numbers = #tpu.dot_dimension_numbers<[1], [0], [0], [1], [0, 0, 1, 1], [], []>} : vector<8x8xbf16>, vector<8x64xbf16>, vector<8x64xf32> -> vector<8x64xf32>
    %79 = arith.truncf %78 : vector<8x64xf32> to vector<8x64xbf16>
    %c0_28 = arith.constant 0 : index
    %c192 = arith.constant 192 : index
    %80 = vector.load %arg7[%c0_28, %c192] : memref<8x512xbf16, #tpu.memory_space<vmem>>, vector<8x64xbf16>
    tpu.vector_store %arg7[%c0_28, %c192], %79 {strides = array<i32>} : memref<8x512xbf16, #tpu.memory_space<vmem>>, vector<8x64xbf16>,
    %81 = vector.extract_strided_slice %6 {offsets = [0, 256], sizes = [8, 64], strides = [1, 1]} : vector<8x512xbf16> to vector<8x64xbf16>
    %82 = vector.extract_strided_slice %7 {offsets = [0, 256], sizes = [8, 64], strides = [1, 1]} : vector<8x512xbf16> to vector<8x64xbf16>
    %cst_29 = arith.constant dense<0.000000e+00> : vector<8x8xf32>
    %83 = tpu.matmul %81, %82, %cst_29 {dimension_numbers = #tpu.dot_dimension_numbers<[1], [1], [0], [0], [0, 0, 1, 0], [], []>} : vector<8x64xbf16>, vector<8x64xbf16>, vector<8x8xf32> -> vector<8x8xf32>
    %cst_30 = arith.constant dense<0xFF800000> : vector<8xf32>
    %84 = vector.multi_reduction <maximumf>, %83, %cst_30 [1] : vector<8x8xf32> to vector<8xf32>
    %85 = vector.shape_cast %84 : vector<8xf32> to vector<8x1xf32>
    %86 = vector.broadcast %85 : vector<8x1xf32> to vector<8x8xf32>
    %87 = arith.subf %83, %86 : vector<8x8xf32>
    %88 = math.exp %87 : vector<8x8xf32>
    %cst_31 = arith.constant dense<0.000000e+00> : vector<8xf32>
    %89 = vector.multi_reduction <add>, %88, %cst_31 [1] : vector<8x8xf32> to vector<8xf32>
    %90 = vector.shape_cast %89 : vector<8xf32> to vector<8x1xf32>
    %91 = tpu.reciprocal %90 {approx = true} : vector<8x1xf32> -> vector<8x1xf32>
    %92 = vector.broadcast %91 : vector<8x1xf32> to vector<8x8xf32>
    %93 = arith.mulf %88, %92 : vector<8x8xf32>
    %94 = arith.truncf %93 : vector<8x8xf32> to vector<8x8xbf16>
    %95 = vector.extract_strided_slice %8 {offsets = [0, 256], sizes = [8, 64], strides = [1, 1]} : vector<8x512xbf16> to vector<8x64xbf16>
    %cst_32 = arith.constant dense<0.000000e+00> : vector<8x64xf32>
    %96 = tpu.matmul %94, %95, %cst_32 {dimension_numbers = #tpu.dot_dimension_numbers<[1], [0], [0], [1], [0, 0, 1, 1], [], []>} : vector<8x8xbf16>, vector<8x64xbf16>, vector<8x64xf32> -> vector<8x64xf32>
    %97 = arith.truncf %96 : vector<8x64xf32> to vector<8x64xbf16>
    %c0_33 = arith.constant 0 : index
    %c256 = arith.constant 256 : index
    %98 = vector.load %arg7[%c0_33, %c256] : memref<8x512xbf16, #tpu.memory_space<vmem>>, vector<8x64xbf16>
    tpu.vector_store %arg7[%c0_33, %c256], %97 {strides = array<i32>} : memref<8x512xbf16, #tpu.memory_space<vmem>>, vector<8x64xbf16>,
    %99 = vector.extract_strided_slice %6 {offsets = [0, 320], sizes = [8, 64], strides = [1, 1]} : vector<8x512xbf16> to vector<8x64xbf16>
    %100 = vector.extract_strided_slice %7 {offsets = [0, 320], sizes = [8, 64], strides = [1, 1]} : vector<8x512xbf16> to vector<8x64xbf16>
    %cst_34 = arith.constant dense<0.000000e+00> : vector<8x8xf32>
    %101 = tpu.matmul %99, %100, %cst_34 {dimension_numbers = #tpu.dot_dimension_numbers<[1], [1], [0], [0], [0, 0, 1, 0], [], []>} : vector<8x64xbf16>, vector<8x64xbf16>, vector<8x8xf32> -> vector<8x8xf32>
    %cst_35 = arith.constant dense<0xFF800000> : vector<8xf32>
    %102 = vector.multi_reduction <maximumf>, %101, %cst_35 [1] : vector<8x8xf32> to vector<8xf32>
    %103 = vector.shape_cast %102 : vector<8xf32> to vector<8x1xf32>
    %104 = vector.broadcast %103 : vector<8x1xf32> to vector<8x8xf32>
    %105 = arith.subf %101, %104 : vector<8x8xf32>
    %106 = math.exp %105 : vector<8x8xf32>
    %cst_36 = arith.constant dense<0.000000e+00> : vector<8xf32>
    %107 = vector.multi_reduction <add>, %106, %cst_36 [1] : vector<8x8xf32> to vector<8xf32>
    %108 = vector.shape_cast %107 : vector<8xf32> to vector<8x1xf32>
    %109 = tpu.reciprocal %108 {approx = true} : vector<8x1xf32> -> vector<8x1xf32>
    %110 = vector.broadcast %109 : vector<8x1xf32> to vector<8x8xf32>
    %111 = arith.mulf %106, %110 : vector<8x8xf32>
    %112 = arith.truncf %111 : vector<8x8xf32> to vector<8x8xbf16>
    %113 = vector.extract_strided_slice %8 {offsets = [0, 320], sizes = [8, 64], strides = [1, 1]} : vector<8x512xbf16> to vector<8x64xbf16>
    %cst_37 = arith.constant dense<0.000000e+00> : vector<8x64xf32>
    %114 = tpu.matmul %112, %113, %cst_37 {dimension_numbers = #tpu.dot_dimension_numbers<[1], [0], [0], [1], [0, 0, 1, 1], [], []>} : vector<8x8xbf16>, vector<8x64xbf16>, vector<8x64xf32> -> vector<8x64xf32>
    %115 = arith.truncf %114 : vector<8x64xf32> to vector<8x64xbf16>
    %c0_38 = arith.constant 0 : index
    %c320 = arith.constant 320 : index
    %116 = vector.load %arg7[%c0_38, %c320] : memref<8x512xbf16, #tpu.memory_space<vmem>>, vector<8x64xbf16>
    tpu.vector_store %arg7[%c0_38, %c320], %115 {strides = array<i32>} : memref<8x512xbf16, #tpu.memory_space<vmem>>, vector<8x64xbf16>,
    %117 = vector.extract_strided_slice %6 {offsets = [0, 384], sizes = [8, 64], strides = [1, 1]} : vector<8x512xbf16> to vector<8x64xbf16>
    %118 = vector.extract_strided_slice %7 {offsets = [0, 384], sizes = [8, 64], strides = [1, 1]} : vector<8x512xbf16> to vector<8x64xbf16>
    %cst_39 = arith.constant dense<0.000000e+00> : vector<8x8xf32>
    %119 = tpu.matmul %117, %118, %cst_39 {dimension_numbers = #tpu.dot_dimension_numbers<[1], [1], [0], [0], [0, 0, 1, 0], [], []>} : vector<8x64xbf16>, vector<8x64xbf16>, vector<8x8xf32> -> vector<8x8xf32>
    %cst_40 = arith.constant dense<0xFF800000> : vector<8xf32>
    %120 = vector.multi_reduction <maximumf>, %119, %cst_40 [1] : vector<8x8xf32> to vector<8xf32>
    %121 = vector.shape_cast %120 : vector<8xf32> to vector<8x1xf32>
    %122 = vector.broadcast %121 : vector<8x1xf32> to vector<8x8xf32>
    %123 = arith.subf %119, %122 : vector<8x8xf32>
    %124 = math.exp %123 : vector<8x8xf32>
    %cst_41 = arith.constant dense<0.000000e+00> : vector<8xf32>
    %125 = vector.multi_reduction <add>, %124, %cst_41 [1] : vector<8x8xf32> to vector<8xf32>
    %126 = vector.shape_cast %125 : vector<8xf32> to vector<8x1xf32>
    %127 = tpu.reciprocal %126 {approx = true} : vector<8x1xf32> -> vector<8x1xf32>
    %128 = vector.broadcast %127 : vector<8x1xf32> to vector<8x8xf32>
    %129 = arith.mulf %124, %128 : vector<8x8xf32>
    %130 = arith.truncf %129 : vector<8x8xf32> to vector<8x8xbf16>
    %131 = vector.extract_strided_slice %8 {offsets = [0, 384], sizes = [8, 64], strides = [1, 1]} : vector<8x512xbf16> to vector<8x64xbf16>
    %cst_42 = arith.constant dense<0.000000e+00> : vector<8x64xf32>
    %132 = tpu.matmul %130, %131, %cst_42 {dimension_numbers = #tpu.dot_dimension_numbers<[1], [0], [0], [1], [0, 0, 1, 1], [], []>} : vector<8x8xbf16>, vector<8x64xbf16>, vector<8x64xf32> -> vector<8x64xf32>
    %133 = arith.truncf %132 : vector<8x64xf32> to vector<8x64xbf16>
    %c0_43 = arith.constant 0 : index
    %c384 = arith.constant 384 : index
    %134 = vector.load %arg7[%c0_43, %c384] : memref<8x512xbf16, #tpu.memory_space<vmem>>, vector<8x64xbf16>
    tpu.vector_store %arg7[%c0_43, %c384], %133 {strides = array<i32>} : memref<8x512xbf16, #tpu.memory_space<vmem>>, vector<8x64xbf16>,
    %135 = vector.extract_strided_slice %6 {offsets = [0, 448], sizes = [8, 64], strides = [1, 1]} : vector<8x512xbf16> to vector<8x64xbf16>
    %136 = vector.extract_strided_slice %7 {offsets = [0, 448], sizes = [8, 64], strides = [1, 1]} : vector<8x512xbf16> to vector<8x64xbf16>
    %cst_44 = arith.constant dense<0.000000e+00> : vector<8x8xf32>
    %137 = tpu.matmul %135, %136, %cst_44 {dimension_numbers = #tpu.dot_dimension_numbers<[1], [1], [0], [0], [0, 0, 1, 0], [], []>} : vector<8x64xbf16>, vector<8x64xbf16>, vector<8x8xf32> -> vector<8x8xf32>
    %cst_45 = arith.constant dense<0xFF800000> : vector<8xf32>
    %138 = vector.multi_reduction <maximumf>, %137, %cst_45 [1] : vector<8x8xf32> to vector<8xf32>
    %139 = vector.shape_cast %138 : vector<8xf32> to vector<8x1xf32>
    %140 = vector.broadcast %139 : vector<8x1xf32> to vector<8x8xf32>
    %141 = arith.subf %137, %140 : vector<8x8xf32>
    %142 = math.exp %141 : vector<8x8xf32>
    %cst_46 = arith.constant dense<0.000000e+00> : vector<8xf32>
    %143 = vector.multi_reduction <add>, %142, %cst_46 [1] : vector<8x8xf32> to vector<8xf32>
    %144 = vector.shape_cast %143 : vector<8xf32> to vector<8x1xf32>
    %145 = tpu.reciprocal %144 {approx = true} : vector<8x1xf32> -> vector<8x1xf32>
    %146 = vector.broadcast %145 : vector<8x1xf32> to vector<8x8xf32>
    %147 = arith.mulf %142, %146 : vector<8x8xf32>
    %148 = arith.truncf %147 : vector<8x8xf32> to vector<8x8xbf16>
    %149 = vector.extract_strided_slice %8 {offsets = [0, 448], sizes = [8, 64], strides = [1, 1]} : vector<8x512xbf16> to vector<8x64xbf16>
    %cst_47 = arith.constant dense<0.000000e+00> : vector<8x64xf32>
    %150 = tpu.matmul %148, %149, %cst_47 {dimension_numbers = #tpu.dot_dimension_numbers<[1], [0], [0], [1], [0, 0, 1, 1], [], []>} : vector<8x8xbf16>, vector<8x64xbf16>, vector<8x64xf32> -> vector<8x64xf32>
    %151 = arith.truncf %150 : vector<8x64xf32> to vector<8x64xbf16>
    %c0_48 = arith.constant 0 : index
    %c448 = arith.constant 448 : index
    %152 = vector.load %arg7[%c0_48, %c448] : memref<8x512xbf16, #tpu.memory_space<vmem>>, vector<8x64xbf16>
    tpu.vector_store %arg7[%c0_48, %c448], %151 {strides = array<i32>} : memref<8x512xbf16, #tpu.memory_space<vmem>>, vector<8x64xbf16>,
    %c0_49 = arith.constant 0 : index
    %c0_50 = arith.constant 0 : index
    %153 = vector.load %arg7[%c0_49, %c0_50] : memref<8x512xbf16, #tpu.memory_space<vmem>>, vector<8x512xbf16>
    %c0_51 = arith.constant 0 : index
    %c0_52 = arith.constant 0 : index
    %154 = vector.load %arg5[%c0_51, %c0_52] : memref<512x512xbf16, #tpu.memory_space<vmem>>, vector<512x512xbf16>
    %cst_53 = arith.constant dense<0.000000e+00> : vector<8x512xf32>
    %155 = tpu.matmul %153, %154, %cst_53 {dimension_numbers = #tpu.dot_dimension_numbers<[1], [0], [0], [1], [0, 0, 1, 1], [], []>} : vector<8x512xbf16>, vector<512x512xbf16>, vector<8x512xf32> -> vector<8x512xf32>
    %c0_54 = arith.constant 0 : index
    %c0_55 = arith.constant 0 : index
    %156 = vector.load %arg6[%c0_54, %c0_55] : memref<8x512xf32, #tpu.memory_space<vmem>>, vector<8x512xf32>
    tpu.vector_store %arg6[%c0_54, %c0_55], %155 {strides = array<i32>} : memref<8x512xf32, #tpu.memory_space<vmem>>, vector<8x512xf32>,
    return
  }
  func.func @transform_0(%arg0: i32) -> (i32, i32) {
    %c0_i32 = arith.constant 0 : i32
    %c0_i32_0 = arith.constant 0 : i32
    return %arg0, %c0_i32 : i32, i32
  }
  func.func @transform_1(%arg0: i32) -> (i32, i32) {
    %c0_i32 = arith.constant 0 : i32
    %c0_i32_0 = arith.constant 0 : i32
    %c0_i32_1 = arith.constant 0 : i32
    return %c0_i32, %c0_i32_0 : i32, i32
  }
  func.func @transform_2(%arg0: i32) -> (i32, i32) {
    %c0_i32 = arith.constant 0 : i32
    %c0_i32_0 = arith.constant 0 : i32
    %c0_i32_1 = arith.constant 0 : i32
    return %c0_i32, %c0_i32_0 : i32, i32
  }
  func.func @transform_3(%arg0: i32) -> (i32, i32) {
    %c0_i32 = arith.constant 0 : i32
    %c0_i32_0 = arith.constant 0 : i32
    %c0_i32_1 = arith.constant 0 : i32
    return %c0_i32, %c0_i32_0 : i32, i32
  }
  func.func @transform_4(%arg0: i32) -> (i32, i32) {
    %c0_i32 = arith.constant 0 : i32
    %c0_i32_0 = arith.constant 0 : i32
    %c0_i32_1 = arith.constant 0 : i32
    return %c0_i32, %c0_i32_0 : i32, i32
  }
  func.func @transform_5(%arg0: i32) -> (i32, i32) {
    %c0_i32 = arith.constant 0 : i32
    %c0_i32_0 = arith.constant 0 : i32
    return %arg0, %c0_i32 : i32, i32
  }
}

module attributes {stable_mosaic.version = 11 : i64} {
  func.func @_kv_proj_kernel(%arg0: i32, %arg1: memref<8x512xf32, #tpu.memory_space<vmem>>, %arg2: memref<8x512xf32, #tpu.memory_space<vmem>>, %arg3: memref<512x512xbf16, #tpu.memory_space<vmem>>, %arg4: memref<512x512xbf16, #tpu.memory_space<vmem>>, %arg5: memref<8x512xbf16, #tpu.memory_space<vmem>>, %arg6: memref<8x512xbf16, #tpu.memory_space<vmem>>) attributes {dimension_semantics = [#tpu.dimension_semantics<parallel>], iteration_bounds = array<i64: 1>, scalar_prefetch = 0 : i64, scratch_operands = 0 : i64, tpu.core_type = #tpu.core_type<tc>, window_params = [{transform_indices = @transform_0, window_bounds = array<i64: 8, 512>}, {transform_indices = @transform_1, window_bounds = array<i64: 8, 512>}, {pipeline_mode = #tpu.pipeline_mode<synchronous>, transform_indices = @transform_2, window_bounds = array<i64: 512, 512>}, {pipeline_mode = #tpu.pipeline_mode<synchronous>, transform_indices = @transform_3, window_bounds = array<i64: 512, 512>}, {transform_indices = @transform_4, window_bounds = array<i64: 8, 512>}, {transform_indices = @transform_5, window_bounds = array<i64: 8, 512>}]} {
    %c0 = arith.constant 0 : index
    %c0_0 = arith.constant 0 : index
    %0 = vector.load %arg1[%c0, %c0_0] : memref<8x512xf32, #tpu.memory_space<vmem>>, vector<8x512xf32>
    %1 = arith.truncf %0 : vector<8x512xf32> to vector<8x512xbf16>
    %c0_1 = arith.constant 0 : index
    %c0_2 = arith.constant 0 : index
    %2 = vector.load %arg3[%c0_1, %c0_2] : memref<512x512xbf16, #tpu.memory_space<vmem>>, vector<512x512xbf16>
    %cst = arith.constant dense<0.000000e+00> : vector<8x512xf32>
    %3 = tpu.matmul %1, %2, %cst {dimension_numbers = #tpu.dot_dimension_numbers<[1], [0], [0], [1], [0, 0, 1, 1], [], []>} : vector<8x512xbf16>, vector<512x512xbf16>, vector<8x512xf32> -> vector<8x512xf32>
    %4 = arith.truncf %3 : vector<8x512xf32> to vector<8x512xbf16>
    %c0_3 = arith.constant 0 : index
    %c0_4 = arith.constant 0 : index
    %5 = vector.load %arg5[%c0_3, %c0_4] : memref<8x512xbf16, #tpu.memory_space<vmem>>, vector<8x512xbf16>
    tpu.vector_store %arg5[%c0_3, %c0_4], %4 {strides = array<i32>} : memref<8x512xbf16, #tpu.memory_space<vmem>>, vector<8x512xbf16>,
    %c0_5 = arith.constant 0 : index
    %c0_6 = arith.constant 0 : index
    %6 = vector.load %arg2[%c0_5, %c0_6] : memref<8x512xf32, #tpu.memory_space<vmem>>, vector<8x512xf32>
    %7 = arith.truncf %6 : vector<8x512xf32> to vector<8x512xbf16>
    %c0_7 = arith.constant 0 : index
    %c0_8 = arith.constant 0 : index
    %8 = vector.load %arg4[%c0_7, %c0_8] : memref<512x512xbf16, #tpu.memory_space<vmem>>, vector<512x512xbf16>
    %cst_9 = arith.constant dense<0.000000e+00> : vector<8x512xf32>
    %9 = tpu.matmul %7, %8, %cst_9 {dimension_numbers = #tpu.dot_dimension_numbers<[1], [0], [0], [1], [0, 0, 1, 1], [], []>} : vector<8x512xbf16>, vector<512x512xbf16>, vector<8x512xf32> -> vector<8x512xf32>
    %10 = arith.truncf %9 : vector<8x512xf32> to vector<8x512xbf16>
    %c0_10 = arith.constant 0 : index
    %c0_11 = arith.constant 0 : index
    %11 = vector.load %arg6[%c0_10, %c0_11] : memref<8x512xbf16, #tpu.memory_space<vmem>>, vector<8x512xbf16>
    tpu.vector_store %arg6[%c0_10, %c0_11], %10 {strides = array<i32>} : memref<8x512xbf16, #tpu.memory_space<vmem>>, vector<8x512xbf16>,
    return
  }
  func.func @transform_0(%arg0: i32) -> (i32, i32) {
    %c0_i32 = arith.constant 0 : i32
    %c0_i32_0 = arith.constant 0 : i32
    return %arg0, %c0_i32 : i32, i32
  }
  func.func @transform_1(%arg0: i32) -> (i32, i32) {
    %c0_i32 = arith.constant 0 : i32
    %c0_i32_0 = arith.constant 0 : i32
    return %arg0, %c0_i32 : i32, i32
  }
  func.func @transform_2(%arg0: i32) -> (i32, i32) {
    %c0_i32 = arith.constant 0 : i32
    %c0_i32_0 = arith.constant 0 : i32
    %c0_i32_1 = arith.constant 0 : i32
    return %c0_i32, %c0_i32_0 : i32, i32
  }
  func.func @transform_3(%arg0: i32) -> (i32, i32) {
    %c0_i32 = arith.constant 0 : i32
    %c0_i32_0 = arith.constant 0 : i32
    %c0_i32_1 = arith.constant 0 : i32
    return %c0_i32, %c0_i32_0 : i32, i32
  }
  func.func @transform_4(%arg0: i32) -> (i32, i32) {
    %c0_i32 = arith.constant 0 : i32
    %c0_i32_0 = arith.constant 0 : i32
    return %arg0, %c0_i32 : i32, i32
  }
  func.func @transform_5(%arg0: i32) -> (i32, i32) {
    %c0_i32 = arith.constant 0 : i32
    %c0_i32_0 = arith.constant 0 : i32
    return %arg0, %c0_i32 : i32, i32
  }
}

</mosaic_0001>

<bundles_post_ra>
// kernel: multi_head_attention.2
= control target key start
LH: loop header
LB: loop body
LE: loop exit
PB: predicated region body
PF: predicated region fallthrough
CT: control target
= control target key end

     0   :  { %11 = vsyncpa [#allocation3], 0  ;;  %s2825_s0 = inlined_call_operand.hbm [shape: f32[8,512], index: 0, kind: input, shape index: {}]   ;;  %s2826_s1 = inlined_call_operand.hbm [shape: f32[8,512], index: 1, kind: input, shape index: {}]   ;;  %s2827_s2 = inlined_call_operand.hbm [shape: bf16[512,512], index: 2, kind: input, shape index: {}]   ;;  %s2828_s3 = inlined_call_operand.hbm [shape: bf16[512,512], index: 3, kind: input, shape index: {}]   ;;  %s2829_s4 = inlined_call_operand.vmem [shape: bf16[8,512], index: 4, kind: output, shape index: {0}]   ;;  %s2830_s5 = inlined_call_operand.vmem [shape: bf16[8,512], index: 5, kind: output, shape index: {1}]  }
   0x1   :  { %12 = vsyncpa [#allocation5], 0 }
   0x2   :  { %13 = vsyncpa [#allocation8], 0  ;;  %s2737_s18 = smov [#allocation4]   ;;  %s2738_s20 = smov [#allocation2]  }
   0x3   :  { %s30_s19 = sshll.u32 %s2737_s18, 4  ;;  %s20_s21 = sshll.u32 %s2738_s20, 4  ;;  %s31_s19 = int_to_ptr.vmem [resolvable:$true] %s30_s19  ;;  %s21_s21 = int_to_ptr.vmem [resolvable:$true] %s20_s21 }
   0x4   :  { %s2659_s22 = scalar_lea.vmem %s31_s19, 512  ;;  %p2664_p1 = scmp.lt.s32.totalorder %s31_s19, %s31_s19 }
   0x5   :  { %p2660_p0 = scmp.ne.s32.totalorder %s31_s19, %s2659_s22  ;;  %p2665_p2 = scmp.lt.s32.totalorder %s2659_s22, %s2659_s22 }
   0x7   :  { %p2666_p3 = por %p2665_p2, %p2664_p1 }
   0x9   :  { %p2667_p4 = pnand %p2666_p3, %p2660_p0 }
   0xb   :  { %2670 = shalt.err (!%p2667_p4)
}
   0xc   :  { %33 = dma.hbm_to_vmem [thread:$0]  %s2826_s1, 512, %s31_s19, [#allocation5]  }
   0xd   :  { %s2679_s25 = scalar_lea.vmem %s21_s21, 512  ;;  %p2684_p6 = scmp.lt.s32.totalorder %s21_s21, %s21_s21 }
   0xe   :  { %p2680_p5 = scmp.ne.s32.totalorder %s21_s21, %s2679_s25  ;;  %p2685_p7 = scmp.lt.s32.totalorder %s2679_s25, %s2679_s25 }
  0x10   :  { %p2686_p8 = por %p2685_p7, %p2684_p6 }
  0x12   :  { %p2687_p9 = pnand %p2686_p8, %p2680_p5 }
  0x14   :  { %2690 = shalt.err (!%p2687_p9)
}
  0x15   :  { %23 = dma.hbm_to_vmem [thread:$0]  %s2825_s0, 512, %s21_s21, [#allocation3]  }
  0x16   :  { %s2739_s28 = smov [#allocation6]  }
  0x17   :  { %s39_s29 = sshll.u32 %s2739_s28, 4  ;;  %s40_s29 = int_to_ptr.vmem [resolvable:$true] %s39_s29 }
  0x18   :  { %s2699_s30 = scalar_lea.vmem %s40_s29, 16384  ;;  %p2704_p11 = scmp.lt.s32.totalorder %s40_s29, %s40_s29 }
  0x19   :  { %p2700_p10 = scmp.ne.s32.totalorder %s40_s29, %s2699_s30  ;;  %p2705_p12 = scmp.lt.s32.totalorder %s2699_s30, %s2699_s30 }
  0x1b   :  { %p2706_p13 = por %p2705_p12, %p2704_p11 }
  0x1d   :  { %p2707_p0 = pnand %p2706_p13, %p2700_p10 }
  0x1f   :  { %2710 = shalt.err (!%p2707_p0)
}
  0x20   :  { %s2740_s1 = smov 256   ;;  %s2741_s6 = smov 16  }
  0x21   :  { %45 = dma.hbm_to_vmem [thread:$0]  %s2827_s2, 16384, %s40_s29, [#allocation5], %s2740_s1, %s2740_s1, %s2741_s6  }
  0x22   :  { %s2742_s9 = smov [#allocation7]  }
  0x23   :  { %s51_s10 = sshll.u32 %s2742_s9, 4  ;;  %s52_s10 = int_to_ptr.vmem [resolvable:$true] %s51_s10 }
  0x24   :  { %s2719_s0 = scalar_lea.vmem %s52_s10, 16384  ;;  %p2724_p2 = scmp.lt.s32.totalorder %s52_s10, %s52_s10 }
  0x25   :  { %p2720_p1 = scmp.ne.s32.totalorder %s52_s10, %s2719_s0  ;;  %p2725_p3 = scmp.lt.s32.totalorder %s2719_s0, %s2719_s0 }
  0x27   :  { %p2726_p4 = por %p2725_p3, %p2724_p2 }
  0x29   :  { %p2727_p5 = pnand %p2726_p4, %p2720_p1 }
  0x2b   :  { %2730 = shalt.err (!%p2727_p5)
}
  0x2c   :  { %57 = dma.hbm_to_vmem [thread:$0]  %s2828_s3, 16384, %s52_s10, [#allocation8], %s2740_s1, %s2740_s1, %s2741_s6  }
  0x2d   :  { %2731 = dma.done.wait [#allocation3], 512  }
  0x2e   :  { %2732 = vsyncadd [#allocation3], 4294966784 }
  0x2f   :  { %2733 = dma.done.wait [#allocation5], 16896  }
  0x30   :  { %2734 = vsyncadd [#allocation5], 4294950400 }
  0x31   :  { %2735 = dma.done.wait [#allocation8], 16384  }
  0x32   :  { %2736 = vsyncadd [#allocation8], 4294950912  ;;  %v2267_v0 = vld [vmem:[#allocation6 + $0xe4] ss:$16 sps:$4 sm:$0xff]   ;;  %v2271_v2 = vld [vmem:[#allocation6 + $0xe0] ss:$16 sps:$4 sm:$0xff]  }
  0x33   :  { %v2269_v1 = vld [vmem:[#allocation6 + $0x2e4] ss:$16 sps:$4 sm:$0xff]   ;;  %846 = vmatprep.subr.bf16.mxu0 %v2267_v0  ;;  %v2272_v3 = vld [vmem:[#allocation6 + $0x2e0] ss:$16 sps:$4 sm:$0xff]   ;;  %v71_v46 = vld [vmem:[#allocation2 + $0x8] sm:$0xff] }
  0x34   :  { %887 = vmatprep.subr.bf16.mxu1 %v2269_v1  ;;  %v2273_v4 = vld [vmem:[#allocation6 + $0xc4] ss:$16 sps:$4 sm:$0xff]   ;;  %847 = vmatpush1.bf16.msra.mxu0 %v2271_v2  ;;  %v2277_v6 = vld [vmem:[#allocation6 + $0xc0] ss:$16 sps:$4 sm:$0xff]   ;;  %v2785_v49 = vpack.c.bf16 %v71_v46, %v71_v46  ;;  %v73_v50 = vld [vmem:[#allocation2 + $0x18] sm:$0xff] }
  0x35   :  { %888 = vmatpush1.bf16.msra.mxu1 %v2272_v3  ;;  %v2275_v5 = vld [vmem:[#allocation6 + $0x2c4] ss:$16 sps:$4 sm:$0xff]   ;;  %848 = vmatprep.subr.bf16.mxu0 %v2273_v4  ;;  %v2278_v7 = vld [vmem:[#allocation6 + $0x2c0] ss:$16 sps:$4 sm:$0xff]   ;;  %v77_v52 = vpack.c.bf16 %v73_v50, %v73_v50  ;;  %v2417_v46 = vld [vmem:[#allocation6 + $0x1c8] ss:$16 sps:$4 sm:$0xff]  }
  0x36   :  { %889 = vmatprep.subr.bf16.mxu1 %v2275_v5  ;;  %v2279_v8 = vld [vmem:[#allocation6 + $0xa4] ss:$16 sps:$4 sm:$0xff]   ;;  %v2283_v10 = vld [vmem:[#allocation6 + $0xa0] ss:$16 sps:$4 sm:$0xff]   ;;  %878 = vmatprep.mubr.bf16.mxu0 %v2785_v49  ;;  %v2423_v50 = vld [vmem:[#allocation6 + $0x1a8] ss:$16 sps:$4 sm:$0xff]  }
  0x37   :  { %v2281_v9 = vld [vmem:[#allocation6 + $0x2a4] ss:$16 sps:$4 sm:$0xff]   ;;  %v2284_v11 = vld [vmem:[#allocation6 + $0x2a0] ss:$16 sps:$4 sm:$0xff]   ;;  %919 = vmatprep.mubr.bf16.mxu1 %v77_v52 }
  0x38   :  { %849 = vmatpush1.bf16.msra.mxu0 %v2277_v6  ;;  %v2285_v12 = vld [vmem:[#allocation6 + $0x84] ss:$16 sps:$4 sm:$0xff]   ;;  %v2289_v14 = vld [vmem:[#allocation6 + $0x80] ss:$16 sps:$4 sm:$0xff]   ;;  %v2365_v6 = vld [vmem:[#allocation6 + $0xec] ss:$16 sps:$4 sm:$0xff]  }
  0x39   :  { %890 = vmatpush1.bf16.msra.mxu1 %v2278_v7  ;;  %850 = vmatprep.subr.bf16.mxu0 %v2279_v8  ;;  %v2287_v13 = vld [vmem:[#allocation6 + $0x284] ss:$16 sps:$4 sm:$0xff]   ;;  %v2290_v15 = vld [vmem:[#allocation6 + $0x280] ss:$16 sps:$4 sm:$0xff]   ;;  %v2368_v7 = vld [vmem:[#allocation6 + $0x2ec] ss:$16 sps:$4 sm:$0xff]  }
  0x3a   :  { %891 = vmatprep.subr.bf16.mxu1 %v2281_v9  ;;  %v2291_v16 = vld [vmem:[#allocation6 + $0x64] ss:$16 sps:$4 sm:$0xff]   ;;  %v2295_v18 = vld [vmem:[#allocation6 + $0x60] ss:$16 sps:$4 sm:$0xff]  }
  0x3b   :  { %v2293_v17 = vld [vmem:[#allocation6 + $0x264] ss:$16 sps:$4 sm:$0xff]   ;;  %v2296_v19 = vld [vmem:[#allocation6 + $0x260] ss:$16 sps:$4 sm:$0xff]  }
  0x3c   :  { %851 = vmatpush1.bf16.msra.mxu0 %v2283_v10  ;;  %v2297_v20 = vld [vmem:[#allocation6 + $0x44] ss:$16 sps:$4 sm:$0xff]   ;;  %v2301_v22 = vld [vmem:[#allocation6 + $0x40] ss:$16 sps:$4 sm:$0xff]   ;;  %v2363_v10 = vld [vmem:[#allocation6 + $0xe8] ss:$16 sps:$4 sm:$0xff]  }
  0x3d   :  { %892 = vmatpush1.bf16.msra.mxu1 %v2284_v11  ;;  %852 = vmatprep.subr.bf16.mxu0 %v2285_v12  ;;  %v2299_v21 = vld [vmem:[#allocation6 + $0x244] ss:$16 sps:$4 sm:$0xff]   ;;  %v2302_v23 = vld [vmem:[#allocation6 + $0x240] ss:$16 sps:$4 sm:$0xff]   ;;  %v2366_v11 = vld [vmem:[#allocation6 + $0x2e8] ss:$16 sps:$4 sm:$0xff]  }
  0x3e   :  { %893 = vmatprep.subr.bf16.mxu1 %v2287_v13  ;;  %v2303_v24 = vld [vmem:[#allocation6 + $0x24] ss:$16 sps:$4 sm:$0xff]   ;;  %v2307_v26 = vld [vmem:[#allocation6 + $0x20] ss:$16 sps:$4 sm:$0xff]   ;;  %v2371_v12 = vld [vmem:[#allocation6 + $0xcc] ss:$16 sps:$4 sm:$0xff]  }
  0x3f   :  { %v2305_v25 = vld [vmem:[#allocation6 + $0x224] ss:$16 sps:$4 sm:$0xff]   ;;  %v2308_v27 = vld [vmem:[#allocation6 + $0x220] ss:$16 sps:$4 sm:$0xff]   ;;  %v2374_v13 = vld [vmem:[#allocation6 + $0x2cc] ss:$16 sps:$4 sm:$0xff]  }
  0x40   :  { %853 = vmatpush1.bf16.msra.mxu0 %v2289_v14  ;;  %v2309_v28 = vld [vmem:[#allocation6 + $0x4] ss:$16 sps:$4 sm:$0xff]   ;;  %v2313_v30 = vld [vmem:[#allocation6] ss:$16 sps:$4 sm:$0xff]   ;;  %v2369_v14 = vld [vmem:[#allocation6 + $0xc8] ss:$16 sps:$4 sm:$0xff]  }
  0x41   :  { %894 = vmatpush1.bf16.msra.mxu1 %v2290_v15  ;;  %854 = vmatprep.subr.bf16.mxu0 %v2291_v16  ;;  %v2311_v29 = vld [vmem:[#allocation6 + $0x204] ss:$16 sps:$4 sm:$0xff]   ;;  %v2314_v31 = vld [vmem:[#allocation6 + $0x200] ss:$16 sps:$4 sm:$0xff]   ;;  %v2372_v15 = vld [vmem:[#allocation6 + $0x2c8] ss:$16 sps:$4 sm:$0xff]  }
  0x42   :  { %895 = vmatprep.subr.bf16.mxu1 %v2293_v17  ;;  %v2315_v32 = vld [vmem:[#allocation6 + $0x1e4] ss:$16 sps:$4 sm:$0xff]   ;;  %v2319_v34 = vld [vmem:[#allocation6 + $0x1e0] ss:$16 sps:$4 sm:$0xff]   ;;  %v2377_v16 = vld [vmem:[#allocation6 + $0xac] ss:$16 sps:$4 sm:$0xff]  }
  0x43   :  { %v2317_v33 = vld [vmem:[#allocation6 + $0x3e4] ss:$16 sps:$4 sm:$0xff]   ;;  %v2320_v35 = vld [vmem:[#allocation6 + $0x3e0] ss:$16 sps:$4 sm:$0xff]   ;;  %v2380_v17 = vld [vmem:[#allocation6 + $0x2ac] ss:$16 sps:$4 sm:$0xff]  }
  0x44   :  { %855 = vmatpush1.bf16.msra.mxu0 %v2295_v18  ;;  %v2321_v36 = vld [vmem:[#allocation6 + $0x1c4] ss:$16 sps:$4 sm:$0xff]   ;;  %v2325_v38 = vld [vmem:[#allocation6 + $0x1c0] ss:$16 sps:$4 sm:$0xff]   ;;  %v2375_v18 = vld [vmem:[#allocation6 + $0xa8] ss:$16 sps:$4 sm:$0xff]  }
  0x45   :  { %896 = vmatpush1.bf16.msra.mxu1 %v2296_v19  ;;  %856 = vmatprep.subr.bf16.mxu0 %v2297_v20  ;;  %v2323_v37 = vld [vmem:[#allocation6 + $0x3c4] ss:$16 sps:$4 sm:$0xff]   ;;  %v2326_v39 = vld [vmem:[#allocation6 + $0x3c0] ss:$16 sps:$4 sm:$0xff]   ;;  %v2378_v19 = vld [vmem:[#allocation6 + $0x2a8] ss:$16 sps:$4 sm:$0xff]  }
  0x46   :  { %897 = vmatprep.subr.bf16.mxu1 %v2299_v21  ;;  %v2327_v40 = vld [vmem:[#allocation6 + $0x1a4] ss:$16 sps:$4 sm:$0xff]   ;;  %v2331_v42 = vld [vmem:[#allocation6 + $0x1a0] ss:$16 sps:$4 sm:$0xff]   ;;  %v2383_v20 = vld [vmem:[#allocation6 + $0x8c] ss:$16 sps:$4 sm:$0xff]  }
  0x47   :  { %v2329_v41 = vld [vmem:[#allocation6 + $0x3a4] ss:$16 sps:$4 sm:$0xff]   ;;  %v2332_v43 = vld [vmem:[#allocation6 + $0x3a0] ss:$16 sps:$4 sm:$0xff]   ;;  %v2386_v21 = vld [vmem:[#allocation6 + $0x28c] ss:$16 sps:$4 sm:$0xff]  }
  0x48   :  { %857 = vmatpush1.bf16.msra.mxu0 %v2301_v22  ;;  %v2333_v44 = vld [vmem:[#allocation6 + $0x184] ss:$16 sps:$4 sm:$0xff]   ;;  %v2337_v47 = vld [vmem:[#allocation6 + $0x180] ss:$16 sps:$4 sm:$0xff]   ;;  %v2381_v22 = vld [vmem:[#allocation6 + $0x88] ss:$16 sps:$4 sm:$0xff]  }
  0x49   :  { %898 = vmatpush1.bf16.msra.mxu1 %v2302_v23  ;;  %858 = vmatprep.subr.bf16.mxu0 %v2303_v24  ;;  %v2335_v45 = vld [vmem:[#allocation6 + $0x384] ss:$16 sps:$4 sm:$0xff]   ;;  %v2338_v48 = vld [vmem:[#allocation6 + $0x380] ss:$16 sps:$4 sm:$0xff]   ;;  %v2384_v23 = vld [vmem:[#allocation6 + $0x288] ss:$16 sps:$4 sm:$0xff]  }
  0x4a   :  { %899 = vmatprep.subr.bf16.mxu1 %v2305_v25  ;;  %v2339_v51 = vld [vmem:[#allocation6 + $0x164] ss:$16 sps:$4 sm:$0xff]   ;;  %v2343_v54 = vld [vmem:[#allocation6 + $0x160] ss:$16 sps:$4 sm:$0xff]   ;;  %v2389_v24 = vld [vmem:[#allocation6 + $0x6c] ss:$16 sps:$4 sm:$0xff]  }
  0x4b   :  { %v2341_v53 = vld [vmem:[#allocation6 + $0x364] ss:$16 sps:$4 sm:$0xff]   ;;  %v2344_v55 = vld [vmem:[#allocation6 + $0x360] ss:$16 sps:$4 sm:$0xff]   ;;  %v2392_v25 = vld [vmem:[#allocation6 + $0x26c] ss:$16 sps:$4 sm:$0xff]  }
  0x4c   :  { %859 = vmatpush1.bf16.msra.mxu0 %v2307_v26  ;;  %v2345_v56 = vld [vmem:[#allocation6 + $0x144] ss:$16 sps:$4 sm:$0xff]   ;;  %v2349_v58 = vld [vmem:[#allocation6 + $0x140] ss:$16 sps:$4 sm:$0xff]   ;;  %v2387_v26 = vld [vmem:[#allocation6 + $0x68] ss:$16 sps:$4 sm:$0xff]  }
  0x4d   :  { %900 = vmatpush1.bf16.msra.mxu1 %v2308_v27  ;;  %860 = vmatprep.subr.bf16.mxu0 %v2309_v28  ;;  %v2347_v57 = vld [vmem:[#allocation6 + $0x344] ss:$16 sps:$4 sm:$0xff]   ;;  %v2350_v59 = vld [vmem:[#allocation6 + $0x340] ss:$16 sps:$4 sm:$0xff]   ;;  %v2390_v27 = vld [vmem:[#allocation6 + $0x268] ss:$16 sps:$4 sm:$0xff]  }
  0x4e   :  { %901 = vmatprep.subr.bf16.mxu1 %v2311_v29  ;;  %v2351_v60 = vld [vmem:[#allocation6 + $0x124] ss:$16 sps:$4 sm:$0xff]   ;;  %v2355_v62 = vld [vmem:[#allocation6 + $0x120] ss:$16 sps:$4 sm:$0xff]   ;;  %v2395_v28 = vld [vmem:[#allocation6 + $0x4c] ss:$16 sps:$4 sm:$0xff]  }
  0x4f   :  { %v2353_v61 = vld [vmem:[#allocation6 + $0x324] ss:$16 sps:$4 sm:$0xff]   ;;  %v2356_v63 = vld [vmem:[#allocation6 + $0x320] ss:$16 sps:$4 sm:$0xff]   ;;  %v2398_v29 = vld [vmem:[#allocation6 + $0x24c] ss:$16 sps:$4 sm:$0xff]  }
  0x50   :  { %861 = vmatpush1.bf16.msra.mxu0 %v2313_v30  ;;  %v2357_v0 = vld [vmem:[#allocation6 + $0x104] ss:$16 sps:$4 sm:$0xff]   ;;  %v2361_v2 = vld [vmem:[#allocation6 + $0x100] ss:$16 sps:$4 sm:$0xff]   ;;  %v2393_v30 = vld [vmem:[#allocation6 + $0x48] ss:$16 sps:$4 sm:$0xff]  }
  0x51   :  { %902 = vmatpush1.bf16.msra.mxu1 %v2314_v31  ;;  %862 = vmatprep.subr.bf16.mxu0 %v2315_v32  ;;  %v2359_v1 = vld [vmem:[#allocation6 + $0x304] ss:$16 sps:$4 sm:$0xff]   ;;  %v2362_v3 = vld [vmem:[#allocation6 + $0x300] ss:$16 sps:$4 sm:$0xff]   ;;  %v2396_v31 = vld [vmem:[#allocation6 + $0x248] ss:$16 sps:$4 sm:$0xff]  }
  0x52   :  { %903 = vmatprep.subr.bf16.mxu1 %v2317_v33  ;;  %v70_v4 = vld [vmem:[#allocation2] sm:$0xff]  ;;  %v72_v5 = vld [vmem:[#allocation2 + $0x10] sm:$0xff]  ;;  %v2401_v32 = vld [vmem:[#allocation6 + $0x2c] ss:$16 sps:$4 sm:$0xff]  }
  0x53   :  { %v2788_v8 = vpack.c.bf16 %v70_v4, %v70_v4  ;;  %v2790_v9 = vpack.c.bf16 %v72_v5, %v72_v5  ;;  %v2404_v33 = vld [vmem:[#allocation6 + $0x22c] ss:$16 sps:$4 sm:$0xff]  }
  0x54   :  { %863 = vmatpush2.bf16.msra.mxu0 %v2319_v34  ;;  %v2399_v34 = vld [vmem:[#allocation6 + $0x28] ss:$16 sps:$4 sm:$0xff]   ;;  %v2455_v4 = vld [vmem:[#allocation6 + $0x10c] ss:$16 sps:$4 sm:$0xff]  }
  0x55   :  { %904 = vmatpush2.bf16.msra.mxu1 %v2320_v35  ;;  %864 = vmatprep.subr.bf16.mxu0 %v2321_v36  ;;  %v2402_v35 = vld [vmem:[#allocation6 + $0x228] ss:$16 sps:$4 sm:$0xff]   ;;  %v2407_v36 = vld [vmem:[#allocation6 + $0xc] ss:$16 sps:$4 sm:$0xff]  }
  0x56   :  { %905 = vmatprep.subr.bf16.mxu1 %v2323_v37  ;;  %v2410_v37 = vld [vmem:[#allocation6 + $0x20c] ss:$16 sps:$4 sm:$0xff]  }
  0x57   :  { %v2458_v5 = vld [vmem:[#allocation6 + $0x30c] ss:$16 sps:$4 sm:$0xff]  }
  0x58   :  { %865 = vmatpush2.bf16.msra.mxu0 %v2325_v38  ;;  %v2405_v38 = vld [vmem:[#allocation6 + $0x8] ss:$16 sps:$4 sm:$0xff]  }
  0x59   :  { %906 = vmatpush2.bf16.msra.mxu1 %v2326_v39  ;;  %866 = vmatprep.subr.bf16.mxu0 %v2327_v40  ;;  %v2408_v39 = vld [vmem:[#allocation6 + $0x208] ss:$16 sps:$4 sm:$0xff]   ;;  %v2413_v40 = vld [vmem:[#allocation6 + $0x1ec] ss:$16 sps:$4 sm:$0xff]  }
  0x5a   :  { %907 = vmatprep.subr.bf16.mxu1 %v2329_v41  ;;  %v2416_v41 = vld [vmem:[#allocation6 + $0x3ec] ss:$16 sps:$4 sm:$0xff]  }
  0x5c   :  { %867 = vmatpush2.bf16.msra.mxu0 %v2331_v42  ;;  %v2411_v42 = vld [vmem:[#allocation6 + $0x1e8] ss:$16 sps:$4 sm:$0xff]  }
  0x5d   :  { %908 = vmatpush2.bf16.msra.mxu1 %v2332_v43  ;;  %868 = vmatprep.subr.bf16.mxu0 %v2333_v44  ;;  %v2414_v43 = vld [vmem:[#allocation6 + $0x3e8] ss:$16 sps:$4 sm:$0xff]   ;;  %v2419_v44 = vld [vmem:[#allocation6 + $0x1cc] ss:$16 sps:$4 sm:$0xff]  }
  0x5e   :  { %909 = vmatprep.subr.bf16.mxu1 %v2335_v45  ;;  %v2422_v45 = vld [vmem:[#allocation6 + $0x3cc] ss:$16 sps:$4 sm:$0xff]  }
  0x60   :  { %869 = vmatpush2.bf16.msra.mxu0 %v2337_v47  ;;  %v2420_v47 = vld [vmem:[#allocation6 + $0x3c8] ss:$16 sps:$4 sm:$0xff]  }
  0x61   :  { %910 = vmatpush2.bf16.msra.mxu1 %v2338_v48  ;;  %870 = vmatprep.subr.bf16.mxu0 %v2339_v51  ;;  %v2425_v48 = vld [vmem:[#allocation6 + $0x1ac] ss:$16 sps:$4 sm:$0xff]   ;;  %v2426_v51 = vld [vmem:[#allocation6 + $0x3a8] ss:$16 sps:$4 sm:$0xff]  }
  0x62   :  { %911 = vmatprep.subr.bf16.mxu1 %v2341_v53  ;;  %v2434_v53 = vld [vmem:[#allocation6 + $0x38c] ss:$16 sps:$4 sm:$0xff]  }
  0x64   :  { %871 = vmatpush2.bf16.msra.mxu0 %v2343_v54  ;;  %v2429_v54 = vld [vmem:[#allocation6 + $0x188] ss:$16 sps:$4 sm:$0xff]  }
  0x65   :  { %912 = vmatpush2.bf16.msra.mxu1 %v2344_v55  ;;  %872 = vmatprep.subr.bf16.mxu0 %v2345_v56  ;;  %v2432_v55 = vld [vmem:[#allocation6 + $0x388] ss:$16 sps:$4 sm:$0xff]   ;;  %v2437_v56 = vld [vmem:[#allocation6 + $0x16c] ss:$16 sps:$4 sm:$0xff]  }
  0x66   :  { %913 = vmatprep.subr.bf16.mxu1 %v2347_v57  ;;  %v2440_v57 = vld [vmem:[#allocation6 + $0x36c] ss:$16 sps:$4 sm:$0xff]  }
  0x68   :  { %873 = vmatpush2.bf16.msra.mxu0 %v2349_v58  ;;  %v2435_v58 = vld [vmem:[#allocation6 + $0x168] ss:$16 sps:$4 sm:$0xff]  }
  0x69   :  { %914 = vmatpush2.bf16.msra.mxu1 %v2350_v59  ;;  %874 = vmatprep.subr.bf16.mxu0 %v2351_v60  ;;  %v2438_v59 = vld [vmem:[#allocation6 + $0x368] ss:$16 sps:$4 sm:$0xff]   ;;  %v2443_v60 = vld [vmem:[#allocation6 + $0x14c] ss:$16 sps:$4 sm:$0xff]  }
  0x6a   :  { %915 = vmatprep.subr.bf16.mxu1 %v2353_v61  ;;  %v2446_v61 = vld [vmem:[#allocation6 + $0x34c] ss:$16 sps:$4 sm:$0xff]  }
  0x6c   :  { %875 = vmatpush2.bf16.msra.mxu0 %v2355_v62  ;;  %v2441_v62 = vld [vmem:[#allocation6 + $0x148] ss:$16 sps:$4 sm:$0xff]  }
  0x6d   :  { %916 = vmatpush2.bf16.msra.mxu1 %v2356_v63  ;;  %876 = vmatprep.subr.bf16.mxu0 %v2357_v0  ;;  %v2444_v63 = vld [vmem:[#allocation6 + $0x348] ss:$16 sps:$4 sm:$0xff]   ;;  %v2449_v0 = vld [vmem:[#allocation6 + $0x12c] ss:$16 sps:$4 sm:$0xff]  }
  0x6e   :  { %917 = vmatprep.subr.bf16.mxu1 %v2359_v1  ;;  %v2452_v1 = vld [vmem:[#allocation6 + $0x32c] ss:$16 sps:$4 sm:$0xff]  }
  0x70   :  { %877 = vmatpush2.bf16.msra.mxu0 %v2361_v2  ;;  %v2447_v2 = vld [vmem:[#allocation6 + $0x128] ss:$16 sps:$4 sm:$0xff]  }
  0x71   :  { %918 = vmatpush2.bf16.msra.mxu1 %v2362_v3  ;;  %928 = vmatprep.subr.bf16.mxu0 %v2365_v6  ;;  %v2450_v3 = vld [vmem:[#allocation6 + $0x328] ss:$16 sps:$4 sm:$0xff]  }
  0x72   :  { %969 = vmatprep.subr.bf16.mxu1 %v2368_v7  ;;  %v2453_v6 = vld [vmem:[#allocation6 + $0x108] ss:$16 sps:$4 sm:$0xff]  }
  0x73   :  { %879 = vmatmul.mubr.bf16.vlgmr.msra.gmra.mxu0 %v2788_v8  ;;  %v2456_v7 = vld [vmem:[#allocation6 + $0x308] ss:$16 sps:$4 sm:$0xff]  }
  0x74   :  { %920 = vmatmul.mubr.bf16.vlgmr.msra.gmra.mxu1 %v2790_v9  ;;  %929 = vmatpush1.bf16.msra.mxu0 %v2363_v10  ;;  %v2461_v10 = vld [vmem:[#allocation7 + $0xe4] ss:$16 sps:$4 sm:$0xff]  }
  0x75   :  { %970 = vmatpush1.bf16.msra.mxu1 %v2366_v11  ;;  %930 = vmatprep.subr.bf16.mxu0 %v2371_v12  ;;  %v2464_v11 = vld [vmem:[#allocation7 + $0x2e4] ss:$16 sps:$4 sm:$0xff]   ;;  %v2459_v12 = vld [vmem:[#allocation7 + $0xe0] ss:$16 sps:$4 sm:$0xff]  }
  0x76   :  { %971 = vmatprep.subr.bf16.mxu1 %v2374_v13  ;;  %960 = vmatprep.mubr.bf16.mxu0 %v2785_v49  ;;  %v2428_v49 = vld [vmem:[#allocation6 + $0x3ac] ss:$16 sps:$4 sm:$0xff]   ;;  %v2462_v13 = vld [vmem:[#allocation7 + $0x2e0] ss:$16 sps:$4 sm:$0xff]  }
  0x77   :  { %1001 = vmatprep.mubr.bf16.mxu1 %v77_v52  ;;  %v2431_v52 = vld [vmem:[#allocation6 + $0x18c] ss:$16 sps:$4 sm:$0xff]  }
  0x78   :  { %931 = vmatpush1.bf16.msra.mxu0 %v2369_v14  ;;  %v2467_v14 = vld [vmem:[#allocation7 + $0xc4] ss:$16 sps:$4 sm:$0xff]  }
  0x79   :  { %972 = vmatpush1.bf16.msra.mxu1 %v2372_v15  ;;  %932 = vmatprep.subr.bf16.mxu0 %v2377_v16  ;;  %v2470_v15 = vld [vmem:[#allocation7 + $0x2c4] ss:$16 sps:$4 sm:$0xff]   ;;  %v1029_v16 = vld [vmem:[#allocation4 + $0x8] sm:$0xff] }
  0x7a   :  { %973 = vmatprep.subr.bf16.mxu1 %v2380_v17  ;;  %v1031_v17 = vld [vmem:[#allocation4 + $0x18] sm:$0xff] }
  0x7c   :  { %933 = vmatpush1.bf16.msra.mxu0 %v2375_v18  ;;  %v2795_v18 = vpack.c.bf16 %v1029_v16, %v1029_v16  ;;  %v2557_v16 = vld [vmem:[#allocation7 + $0xec] ss:$16 sps:$4 sm:$0xff]  }
  0x7d   :  { %974 = vmatpush1.bf16.msra.mxu1 %v2378_v19  ;;  %934 = vmatprep.subr.bf16.mxu0 %v2383_v20  ;;  %v2797_v19 = vpack.c.bf16 %v1031_v17, %v1031_v17  ;;  %v2465_v20 = vld [vmem:[#allocation7 + $0xc0] ss:$16 sps:$4 sm:$0xff]   ;;  %v2560_v17 = vld [vmem:[#allocation7 + $0x2ec] ss:$16 sps:$4 sm:$0xff]  }
  0x7e   :  { %975 = vmatprep.subr.bf16.mxu1 %v2386_v21  ;;  %v2468_v21 = vld [vmem:[#allocation7 + $0x2c0] ss:$16 sps:$4 sm:$0xff]  }
  0x80   :  { %935 = vmatpush1.bf16.msra.mxu0 %v2381_v22  ;;  %v2473_v22 = vld [vmem:[#allocation7 + $0xa4] ss:$16 sps:$4 sm:$0xff]  }
  0x81   :  { %976 = vmatpush1.bf16.msra.mxu1 %v2384_v23  ;;  %936 = vmatprep.subr.bf16.mxu0 %v2389_v24  ;;  %v2476_v23 = vld [vmem:[#allocation7 + $0x2a4] ss:$16 sps:$4 sm:$0xff]   ;;  %v2471_v24 = vld [vmem:[#allocation7 + $0xa0] ss:$16 sps:$4 sm:$0xff]  }
  0x82   :  { %977 = vmatprep.subr.bf16.mxu1 %v2392_v25  ;;  %v2474_v25 = vld [vmem:[#allocation7 + $0x2a0] ss:$16 sps:$4 sm:$0xff]  }
  0x84   :  { %937 = vmatpush1.bf16.msra.mxu0 %v2387_v26  ;;  %v2479_v26 = vld [vmem:[#allocation7 + $0x84] ss:$16 sps:$4 sm:$0xff]  }
  0x85   :  { %978 = vmatpush1.bf16.msra.mxu1 %v2390_v27  ;;  %938 = vmatprep.subr.bf16.mxu0 %v2395_v28  ;;  %v2480_v27 = vld [vmem:[#allocation7 + $0x280] ss:$16 sps:$4 sm:$0xff]   ;;  %v2485_v28 = vld [vmem:[#allocation7 + $0x64] ss:$16 sps:$4 sm:$0xff]  }
  0x86   :  { %979 = vmatprep.subr.bf16.mxu1 %v2398_v29  ;;  %v2488_v29 = vld [vmem:[#allocation7 + $0x264] ss:$16 sps:$4 sm:$0xff]  }
  0x88   :  { %939 = vmatpush1.bf16.msra.mxu0 %v2393_v30  ;;  %v2483_v30 = vld [vmem:[#allocation7 + $0x60] ss:$16 sps:$4 sm:$0xff]  }
  0x89   :  { %980 = vmatpush1.bf16.msra.mxu1 %v2396_v31  ;;  %940 = vmatprep.subr.bf16.mxu0 %v2401_v32  ;;  %v2486_v31 = vld [vmem:[#allocation7 + $0x260] ss:$16 sps:$4 sm:$0xff]   ;;  %v2491_v32 = vld [vmem:[#allocation7 + $0x44] ss:$16 sps:$4 sm:$0xff]  }
  0x8a   :  { %981 = vmatprep.subr.bf16.mxu1 %v2404_v33  ;;  %v2494_v33 = vld [vmem:[#allocation7 + $0x244] ss:$16 sps:$4 sm:$0xff]  }
  0x8c   :  { %941 = vmatpush1.bf16.msra.mxu0 %v2399_v34  ;;  %v2489_v34 = vld [vmem:[#allocation7 + $0x40] ss:$16 sps:$4 sm:$0xff]  }
  0x8d   :  { %982 = vmatpush1.bf16.msra.mxu1 %v2402_v35  ;;  %942 = vmatprep.subr.bf16.mxu0 %v2407_v36  ;;  %v2492_v35 = vld [vmem:[#allocation7 + $0x240] ss:$16 sps:$4 sm:$0xff]   ;;  %v2497_v36 = vld [vmem:[#allocation7 + $0x24] ss:$16 sps:$4 sm:$0xff]  }
  0x8e   :  { %983 = vmatprep.subr.bf16.mxu1 %v2410_v37  ;;  %v2500_v37 = vld [vmem:[#allocation7 + $0x224] ss:$16 sps:$4 sm:$0xff]  }
  0x90   :  { %943 = vmatpush1.bf16.msra.mxu0 %v2405_v38  ;;  %v2495_v38 = vld [vmem:[#allocation7 + $0x20] ss:$16 sps:$4 sm:$0xff]  }
  0x91   :  { %984 = vmatpush1.bf16.msra.mxu1 %v2408_v39  ;;  %944 = vmatprep.subr.bf16.mxu0 %v2413_v40  ;;  %v2498_v39 = vld [vmem:[#allocation7 + $0x220] ss:$16 sps:$4 sm:$0xff]   ;;  %v2503_v40 = vld [vmem:[#allocation7 + $0x4] ss:$16 sps:$4 sm:$0xff]  }
  0x92   :  { %985 = vmatprep.subr.bf16.mxu1 %v2416_v41  ;;  %v2506_v41 = vld [vmem:[#allocation7 + $0x204] ss:$16 sps:$4 sm:$0xff]  }
  0x94   :  { %945 = vmatpush2.bf16.msra.mxu0 %v2411_v42  ;;  %v2501_v42 = vld [vmem:[#allocation7] ss:$16 sps:$4 sm:$0xff]  }
  0x95   :  { %986 = vmatpush2.bf16.msra.mxu1 %v2414_v43  ;;  %946 = vmatprep.subr.bf16.mxu0 %v2419_v44  ;;  %v2504_v43 = vld [vmem:[#allocation7 + $0x200] ss:$16 sps:$4 sm:$0xff]   ;;  %v2509_v44 = vld [vmem:[#allocation7 + $0x1e4] ss:$16 sps:$4 sm:$0xff]  }
  0x96   :  { %987 = vmatprep.subr.bf16.mxu1 %v2422_v45  ;;  %v2512_v45 = vld [vmem:[#allocation7 + $0x3e4] ss:$16 sps:$4 sm:$0xff]  }
  0x98   :  { %947 = vmatpush2.bf16.msra.mxu0 %v2417_v46  ;;  %v2507_v46 = vld [vmem:[#allocation7 + $0x1e0] ss:$16 sps:$4 sm:$0xff]  }
  0x99   :  { %988 = vmatpush2.bf16.msra.mxu1 %v2420_v47  ;;  %948 = vmatprep.subr.bf16.mxu0 %v2425_v48  ;;  %v2510_v47 = vld [vmem:[#allocation7 + $0x3e0] ss:$16 sps:$4 sm:$0xff]   ;;  %v2515_v48 = vld [vmem:[#allocation7 + $0x1c4] ss:$16 sps:$4 sm:$0xff]  }
  0x9a   :  { %989 = vmatprep.subr.bf16.mxu1 %v2428_v49  ;;  %v2518_v49 = vld [vmem:[#allocation7 + $0x3c4] ss:$16 sps:$4 sm:$0xff]  }
  0x9c   :  { %949 = vmatpush2.bf16.msra.mxu0 %v2423_v50  ;;  %v2513_v50 = vld [vmem:[#allocation7 + $0x1c0] ss:$16 sps:$4 sm:$0xff]  }
  0x9d   :  { %990 = vmatpush2.bf16.msra.mxu1 %v2426_v51  ;;  %950 = vmatprep.subr.bf16.mxu0 %v2431_v52  ;;  %v2516_v51 = vld [vmem:[#allocation7 + $0x3c0] ss:$16 sps:$4 sm:$0xff]   ;;  %v2521_v52 = vld [vmem:[#allocation7 + $0x1a4] ss:$16 sps:$4 sm:$0xff]  }
  0x9e   :  { %991 = vmatprep.subr.bf16.mxu1 %v2434_v53  ;;  %v2524_v53 = vld [vmem:[#allocation7 + $0x3a4] ss:$16 sps:$4 sm:$0xff]  }
  0xa0   :  { %951 = vmatpush2.bf16.msra.mxu0 %v2429_v54  ;;  %v2519_v54 = vld [vmem:[#allocation7 + $0x1a0] ss:$16 sps:$4 sm:$0xff]  }
  0xa1   :  { %992 = vmatpush2.bf16.msra.mxu1 %v2432_v55  ;;  %952 = vmatprep.subr.bf16.mxu0 %v2437_v56  ;;  %v2522_v55 = vld [vmem:[#allocation7 + $0x3a0] ss:$16 sps:$4 sm:$0xff]   ;;  %v2527_v56 = vld [vmem:[#allocation7 + $0x184] ss:$16 sps:$4 sm:$0xff]  }
  0xa2   :  { %993 = vmatprep.subr.bf16.mxu1 %v2440_v57  ;;  %v2530_v57 = vld [vmem:[#allocation7 + $0x384] ss:$16 sps:$4 sm:$0xff]  }
  0xa4   :  { %953 = vmatpush2.bf16.msra.mxu0 %v2435_v58  ;;  %v2525_v58 = vld [vmem:[#allocation7 + $0x180] ss:$16 sps:$4 sm:$0xff]  }
  0xa5   :  { %994 = vmatpush2.bf16.msra.mxu1 %v2438_v59  ;;  %954 = vmatprep.subr.bf16.mxu0 %v2443_v60  ;;  %v2528_v59 = vld [vmem:[#allocation7 + $0x380] ss:$16 sps:$4 sm:$0xff]   ;;  %v2533_v60 = vld [vmem:[#allocation7 + $0x164] ss:$16 sps:$4 sm:$0xff]  }
  0xa6   :  { %995 = vmatprep.subr.bf16.mxu1 %v2446_v61  ;;  %v2536_v61 = vld [vmem:[#allocation7 + $0x364] ss:$16 sps:$4 sm:$0xff]  }
  0xa8   :  { %955 = vmatpush2.bf16.msra.mxu0 %v2441_v62  ;;  %v2531_v62 = vld [vmem:[#allocation7 + $0x160] ss:$16 sps:$4 sm:$0xff]  }
  0xa9   :  { %996 = vmatpush2.bf16.msra.mxu1 %v2444_v63  ;;  %956 = vmatprep.subr.bf16.mxu0 %v2449_v0  ;;  %v2534_v63 = vld [vmem:[#allocation7 + $0x360] ss:$16 sps:$4 sm:$0xff]   ;;  %v2539_v0 = vld [vmem:[#allocation7 + $0x144] ss:$16 sps:$4 sm:$0xff]  }
  0xaa   :  { %997 = vmatprep.subr.bf16.mxu1 %v2452_v1  ;;  %v2542_v1 = vld [vmem:[#allocation7 + $0x344] ss:$16 sps:$4 sm:$0xff]  }
  0xac   :  { %957 = vmatpush2.bf16.msra.mxu0 %v2447_v2  ;;  %v2537_v2 = vld [vmem:[#allocation7 + $0x140] ss:$16 sps:$4 sm:$0xff]  }
  0xad   :  { %998 = vmatpush2.bf16.msra.mxu1 %v2450_v3  ;;  %958 = vmatprep.subr.bf16.mxu0 %v2455_v4  ;;  %v2540_v3 = vld [vmem:[#allocation7 + $0x340] ss:$16 sps:$4 sm:$0xff]   ;;  %v2545_v4 = vld [vmem:[#allocation7 + $0x124] ss:$16 sps:$4 sm:$0xff]  }
  0xae   :  { %999 = vmatprep.subr.bf16.mxu1 %v2458_v5  ;;  %v2548_v5 = vld [vmem:[#allocation7 + $0x324] ss:$16 sps:$4 sm:$0xff]  }
  0xb0   :  { %959 = vmatpush2.bf16.msra.mxu0 %v2453_v6  ;;  %v2543_v6 = vld [vmem:[#allocation7 + $0x120] ss:$16 sps:$4 sm:$0xff]  }
  0xb1   :  { %1000 = vmatpush2.bf16.msra.mxu1 %v2456_v7  ;;  %1804 = vmatprep.subr.bf16.mxu0 %v2461_v10  ;;  %v2546_v7 = vld [vmem:[#allocation7 + $0x320] ss:$16 sps:$4 sm:$0xff]   ;;  %v2551_v10 = vld [vmem:[#allocation7 + $0x104] ss:$16 sps:$4 sm:$0xff]  }
  0xb2   :  { %1845 = vmatprep.subr.bf16.mxu1 %v2464_v11  ;;  %v2554_v11 = vld [vmem:[#allocation7 + $0x304] ss:$16 sps:$4 sm:$0xff]  }
  0xb3   :  { %961 = vmatmul.mubr.bf16.vlgmr.msra.gmra.mxu0 %v2788_v8  ;;  %v2482_v8 = vld [vmem:[#allocation7 + $0x284] ss:$16 sps:$4 sm:$0xff]  }
  0xb4   :  { %1002 = vmatmul.mubr.bf16.vlgmr.msra.gmra.mxu1 %v2790_v9  ;;  %1805 = vmatpush1.bf16.msra.mxu0 %v2459_v12  ;;  %v2477_v9 = vld [vmem:[#allocation7 + $0x80] ss:$16 sps:$4 sm:$0xff]  }
  0xb5   :  { %1846 = vmatpush1.bf16.msra.mxu1 %v2462_v13  ;;  %1806 = vmatprep.subr.bf16.mxu0 %v2467_v14  ;;  %v2549_v12 = vld [vmem:[#allocation7 + $0x100] ss:$16 sps:$4 sm:$0xff]  }
  0xb6   :  { %1847 = vmatprep.subr.bf16.mxu1 %v2470_v15  ;;  %1836 = vmatprep.mubr.bf16.mxu0 %v2795_v18  ;;  %v2552_v13 = vld [vmem:[#allocation7 + $0x300] ss:$16 sps:$4 sm:$0xff]  }
  0xb7   :  { %1877 = vmatprep.mubr.bf16.mxu1 %v2797_v19  ;;  %v1028_v14 = vld [vmem:[#allocation4] sm:$0xff]  ;;  %v1030_v15 = vld [vmem:[#allocation4 + $0x10] sm:$0xff] }
  0xb8   :  { %1807 = vmatpush1.bf16.msra.mxu0 %v2465_v20  ;;  %v2803_v20 = vpack.c.bf16 %v1028_v14, %v1028_v14  ;;  %v2647_v14 = vld [vmem:[#allocation7 + $0x10c] ss:$16 sps:$4 sm:$0xff]  }
  0xb9   :  { %1848 = vmatpush1.bf16.msra.mxu1 %v2468_v21  ;;  %1808 = vmatprep.subr.bf16.mxu0 %v2473_v22  ;;  %v2805_v21 = vpack.c.bf16 %v1030_v15, %v1030_v15  ;;  %v2555_v22 = vld [vmem:[#allocation7 + $0xe8] ss:$16 sps:$4 sm:$0xff]   ;;  %v2650_v15 = vld [vmem:[#allocation7 + $0x30c] ss:$16 sps:$4 sm:$0xff]  }
  0xba   :  { %1849 = vmatprep.subr.bf16.mxu1 %v2476_v23  ;;  %v2558_v23 = vld [vmem:[#allocation7 + $0x2e8] ss:$16 sps:$4 sm:$0xff]  }
  0xbc   :  { %1809 = vmatpush1.bf16.msra.mxu0 %v2471_v24  ;;  %v2563_v24 = vld [vmem:[#allocation7 + $0xcc] ss:$16 sps:$4 sm:$0xff]  }
  0xbd   :  { %1850 = vmatpush1.bf16.msra.mxu1 %v2474_v25  ;;  %1810 = vmatprep.subr.bf16.mxu0 %v2479_v26  ;;  %v2566_v25 = vld [vmem:[#allocation7 + $0x2cc] ss:$16 sps:$4 sm:$0xff]   ;;  %v2561_v26 = vld [vmem:[#allocation7 + $0xc8] ss:$16 sps:$4 sm:$0xff]  }
  0xbe   :  { %1851 = vmatprep.subr.bf16.mxu1 %v2482_v8  ;;  %v2564_v8 = vld [vmem:[#allocation7 + $0x2c8] ss:$16 sps:$4 sm:$0xff]  }
  0xc0   :  { %1811 = vmatpush1.bf16.msra.mxu0 %v2477_v9  ;;  %v2569_v9 = vld [vmem:[#allocation7 + $0xac] ss:$16 sps:$4 sm:$0xff]  }
  0xc1   :  { %1852 = vmatpush1.bf16.msra.mxu1 %v2480_v27  ;;  %1812 = vmatprep.subr.bf16.mxu0 %v2485_v28  ;;  %v2572_v27 = vld [vmem:[#allocation7 + $0x2ac] ss:$16 sps:$4 sm:$0xff]   ;;  %v2567_v28 = vld [vmem:[#allocation7 + $0xa8] ss:$16 sps:$4 sm:$0xff]  }
  0xc2   :  { %1853 = vmatprep.subr.bf16.mxu1 %v2488_v29  ;;  %v2570_v29 = vld [vmem:[#allocation7 + $0x2a8] ss:$16 sps:$4 sm:$0xff]  }
  0xc4   :  { %1813 = vmatpush1.bf16.msra.mxu0 %v2483_v30  ;;  %v2575_v30 = vld [vmem:[#allocation7 + $0x8c] ss:$16 sps:$4 sm:$0xff]  }
  0xc5   :  { %1854 = vmatpush1.bf16.msra.mxu1 %v2486_v31  ;;  %1814 = vmatprep.subr.bf16.mxu0 %v2491_v32  ;;  %v2578_v31 = vld [vmem:[#allocation7 + $0x28c] ss:$16 sps:$4 sm:$0xff]   ;;  %v2573_v32 = vld [vmem:[#allocation7 + $0x88] ss:$16 sps:$4 sm:$0xff]  }
  0xc6   :  { %1855 = vmatprep.subr.bf16.mxu1 %v2494_v33  ;;  %v2576_v33 = vld [vmem:[#allocation7 + $0x288] ss:$16 sps:$4 sm:$0xff]  }
  0xc8   :  { %1815 = vmatpush1.bf16.msra.mxu0 %v2489_v34  ;;  %v2581_v34 = vld [vmem:[#allocation7 + $0x6c] ss:$16 sps:$4 sm:$0xff]  }
  0xc9   :  { %1856 = vmatpush1.bf16.msra.mxu1 %v2492_v35  ;;  %1816 = vmatprep.subr.bf16.mxu0 %v2497_v36  ;;  %v2584_v35 = vld [vmem:[#allocation7 + $0x26c] ss:$16 sps:$4 sm:$0xff]  }
  0xca   :  { %1857 = vmatprep.subr.bf16.mxu1 %v2500_v37  ;;  %v2587_v36 = vld [vmem:[#allocation7 + $0x4c] ss:$16 sps:$4 sm:$0xff]  }
  0xcb   :  { %v2590_v37 = vld [vmem:[#allocation7 + $0x24c] ss:$16 sps:$4 sm:$0xff]  }
  0xcc   :  { %1817 = vmatpush1.bf16.msra.mxu0 %v2495_v38  ;;  %v2585_v38 = vld [vmem:[#allocation7 + $0x48] ss:$16 sps:$4 sm:$0xff]  }
  0xcd   :  { %1858 = vmatpush1.bf16.msra.mxu1 %v2498_v39  ;;  %1818 = vmatprep.subr.bf16.mxu0 %v2503_v40  ;;  %v2588_v39 = vld [vmem:[#allocation7 + $0x248] ss:$16 sps:$4 sm:$0xff]   ;;  %v2593_v40 = vld [vmem:[#allocation7 + $0x2c] ss:$16 sps:$4 sm:$0xff]  }
  0xce   :  { %1859 = vmatprep.subr.bf16.mxu1 %v2506_v41  ;;  %v2596_v41 = vld [vmem:[#allocation7 + $0x22c] ss:$16 sps:$4 sm:$0xff]  }
  0xd0   :  { %1819 = vmatpush1.bf16.msra.mxu0 %v2501_v42  ;;  %v2591_v42 = vld [vmem:[#allocation7 + $0x28] ss:$16 sps:$4 sm:$0xff]  }
  0xd1   :  { %1860 = vmatpush1.bf16.msra.mxu1 %v2504_v43  ;;  %1820 = vmatprep.subr.bf16.mxu0 %v2509_v44  ;;  %v2594_v43 = vld [vmem:[#allocation7 + $0x228] ss:$16 sps:$4 sm:$0xff]   ;;  %v2599_v44 = vld [vmem:[#allocation7 + $0xc] ss:$16 sps:$4 sm:$0xff]  }
  0xd2   :  { %1861 = vmatprep.subr.bf16.mxu1 %v2512_v45  ;;  %v2602_v45 = vld [vmem:[#allocation7 + $0x20c] ss:$16 sps:$4 sm:$0xff]  }
  0xd4   :  { %1821 = vmatpush2.bf16.msra.mxu0 %v2507_v46  ;;  %v2597_v46 = vld [vmem:[#allocation7 + $0x8] ss:$16 sps:$4 sm:$0xff]  }
  0xd5   :  { %1862 = vmatpush2.bf16.msra.mxu1 %v2510_v47  ;;  %1822 = vmatprep.subr.bf16.mxu0 %v2515_v48  ;;  %v2600_v47 = vld [vmem:[#allocation7 + $0x208] ss:$16 sps:$4 sm:$0xff]   ;;  %v2605_v48 = vld [vmem:[#allocation7 + $0x1ec] ss:$16 sps:$4 sm:$0xff]  }
  0xd6   :  { %1863 = vmatprep.subr.bf16.mxu1 %v2518_v49  ;;  %v2608_v49 = vld [vmem:[#allocation7 + $0x3ec] ss:$16 sps:$4 sm:$0xff]  }
  0xd8   :  { %1823 = vmatpush2.bf16.msra.mxu0 %v2513_v50  ;;  %v2603_v50 = vld [vmem:[#allocation7 + $0x1e8] ss:$16 sps:$4 sm:$0xff]  }
  0xd9   :  { %1864 = vmatpush2.bf16.msra.mxu1 %v2516_v51  ;;  %1824 = vmatprep.subr.bf16.mxu0 %v2521_v52  ;;  %v2606_v51 = vld [vmem:[#allocation7 + $0x3e8] ss:$16 sps:$4 sm:$0xff]   ;;  %v2611_v52 = vld [vmem:[#allocation7 + $0x1cc] ss:$16 sps:$4 sm:$0xff]  }
  0xda   :  { %1865 = vmatprep.subr.bf16.mxu1 %v2524_v53  ;;  %v2614_v53 = vld [vmem:[#allocation7 + $0x3cc] ss:$16 sps:$4 sm:$0xff]  }
  0xdc   :  { %1825 = vmatpush2.bf16.msra.mxu0 %v2519_v54  ;;  %v2609_v54 = vld [vmem:[#allocation7 + $0x1c8] ss:$16 sps:$4 sm:$0xff]  }
  0xdd   :  { %1866 = vmatpush2.bf16.msra.mxu1 %v2522_v55  ;;  %1826 = vmatprep.subr.bf16.mxu0 %v2527_v56  ;;  %v2612_v55 = vld [vmem:[#allocation7 + $0x3c8] ss:$16 sps:$4 sm:$0xff]   ;;  %v2617_v56 = vld [vmem:[#allocation7 + $0x1ac] ss:$16 sps:$4 sm:$0xff]  }
  0xde   :  { %1867 = vmatprep.subr.bf16.mxu1 %v2530_v57  ;;  %v2620_v57 = vld [vmem:[#allocation7 + $0x3ac] ss:$16 sps:$4 sm:$0xff]  }
  0xe0   :  { %1827 = vmatpush2.bf16.msra.mxu0 %v2525_v58  ;;  %v2615_v58 = vld [vmem:[#allocation7 + $0x1a8] ss:$16 sps:$4 sm:$0xff]  }
  0xe1   :  { %1868 = vmatpush2.bf16.msra.mxu1 %v2528_v59  ;;  %1828 = vmatprep.subr.bf16.mxu0 %v2533_v60  ;;  %v2618_v59 = vld [vmem:[#allocation7 + $0x3a8] ss:$16 sps:$4 sm:$0xff]   ;;  %v2623_v60 = vld [vmem:[#allocation7 + $0x18c] ss:$16 sps:$4 sm:$0xff]  }
  0xe2   :  { %1869 = vmatprep.subr.bf16.mxu1 %v2536_v61  ;;  %v2626_v61 = vld [vmem:[#allocation7 + $0x38c] ss:$16 sps:$4 sm:$0xff]  }
  0xe4   :  { %1829 = vmatpush2.bf16.msra.mxu0 %v2531_v62  ;;  %v2621_v62 = vld [vmem:[#allocation7 + $0x188] ss:$16 sps:$4 sm:$0xff]  }
  0xe5   :  { %1870 = vmatpush2.bf16.msra.mxu1 %v2534_v63  ;;  %1830 = vmatprep.subr.bf16.mxu0 %v2539_v0  ;;  %v2624_v63 = vld [vmem:[#allocation7 + $0x388] ss:$16 sps:$4 sm:$0xff]   ;;  %v2629_v0 = vld [vmem:[#allocation7 + $0x16c] ss:$16 sps:$4 sm:$0xff]  }
  0xe6   :  { %1871 = vmatprep.subr.bf16.mxu1 %v2542_v1  ;;  %v2632_v1 = vld [vmem:[#allocation7 + $0x36c] ss:$16 sps:$4 sm:$0xff]  }
  0xe8   :  { %1831 = vmatpush2.bf16.msra.mxu0 %v2537_v2  ;;  %v2627_v2 = vld [vmem:[#allocation7 + $0x168] ss:$16 sps:$4 sm:$0xff]  }
  0xe9   :  { %1872 = vmatpush2.bf16.msra.mxu1 %v2540_v3  ;;  %1832 = vmatprep.subr.bf16.mxu0 %v2545_v4  ;;  %v2630_v3 = vld [vmem:[#allocation7 + $0x368] ss:$16 sps:$4 sm:$0xff]   ;;  %v2635_v4 = vld [vmem:[#allocation7 + $0x14c] ss:$16 sps:$4 sm:$0xff]  }
  0xea   :  { %1873 = vmatprep.subr.bf16.mxu1 %v2548_v5  ;;  %v2638_v5 = vld [vmem:[#allocation7 + $0x34c] ss:$16 sps:$4 sm:$0xff]  }
  0xec   :  { %1833 = vmatpush2.bf16.msra.mxu0 %v2543_v6  ;;  %v2633_v6 = vld [vmem:[#allocation7 + $0x148] ss:$16 sps:$4 sm:$0xff]  }
  0xed   :  { %1874 = vmatpush2.bf16.msra.mxu1 %v2546_v7  ;;  %1834 = vmatprep.subr.bf16.mxu0 %v2551_v10  ;;  %v2636_v7 = vld [vmem:[#allocation7 + $0x348] ss:$16 sps:$4 sm:$0xff]   ;;  %v2641_v10 = vld [vmem:[#allocation7 + $0x12c] ss:$16 sps:$4 sm:$0xff]  }
  0xee   :  { %1875 = vmatprep.subr.bf16.mxu1 %v2554_v11  ;;  %v2644_v11 = vld [vmem:[#allocation7 + $0x32c] ss:$16 sps:$4 sm:$0xff]  }
  0xf0   :  { %1835 = vmatpush2.bf16.msra.mxu0 %v2549_v12  ;;  %v2639_v12 = vld [vmem:[#allocation7 + $0x128] ss:$16 sps:$4 sm:$0xff]  }
  0xf1   :  { %1876 = vmatpush2.bf16.msra.mxu1 %v2552_v13  ;;  %1886 = vmatprep.subr.bf16.mxu0 %v2557_v16  ;;  %v2642_v13 = vld [vmem:[#allocation7 + $0x328] ss:$16 sps:$4 sm:$0xff]  }
  0xf2   :  { %1927 = vmatprep.subr.bf16.mxu1 %v2560_v17  ;;  %v2645_v16 = vld [vmem:[#allocation7 + $0x108] ss:$16 sps:$4 sm:$0xff]  }
  0xf3   :  { %1837 = vmatmul.mubr.bf16.vlgmr.msra.gmra.mxu0 %v2803_v20  ;;  %v2648_v17 = vld [vmem:[#allocation7 + $0x308] ss:$16 sps:$4 sm:$0xff]  }
  0xf4   :  { %1878 = vmatmul.mubr.bf16.vlgmr.msra.gmra.mxu1 %v2805_v21  ;;  %1887 = vmatpush1.bf16.msra.mxu0 %v2555_v22 }
  0xf5   :  { %1928 = vmatpush1.bf16.msra.mxu1 %v2558_v23  ;;  %1888 = vmatprep.subr.bf16.mxu0 %v2563_v24 }
  0xf6   :  { %1929 = vmatprep.subr.bf16.mxu1 %v2566_v25  ;;  %1918 = vmatprep.mubr.bf16.mxu0 %v2795_v18  ;;  %v2579_v18 = vld [vmem:[#allocation7 + $0x68] ss:$16 sps:$4 sm:$0xff]  }
  0xf7   :  { %1959 = vmatprep.mubr.bf16.mxu1 %v2797_v19  ;;  %v2582_v19 = vld [vmem:[#allocation7 + $0x268] ss:$16 sps:$4 sm:$0xff]  }
  0xf8   :  { %1889 = vmatpush1.bf16.msra.mxu0 %v2561_v26 }
  0xf9   :  { %1930 = vmatpush1.bf16.msra.mxu1 %v2564_v8  ;;  %1890 = vmatprep.subr.bf16.mxu0 %v2569_v9 }
  0xfa   :  { %1931 = vmatprep.subr.bf16.mxu1 %v2572_v27 }
  0xfc   :  { %1891 = vmatpush1.bf16.msra.mxu0 %v2567_v28 }
  0xfd   :  { %1932 = vmatpush1.bf16.msra.mxu1 %v2570_v29  ;;  %1892 = vmatprep.subr.bf16.mxu0 %v2575_v30 }
  0xfe   :  { %1933 = vmatprep.subr.bf16.mxu1 %v2578_v31 }
 0x100   :  { %1893 = vmatpush1.bf16.msra.mxu0 %v2573_v32 }
 0x101   :  { %1934 = vmatpush1.bf16.msra.mxu1 %v2576_v33  ;;  %1894 = vmatprep.subr.bf16.mxu0 %v2581_v34 }
 0x102   :  { %1935 = vmatprep.subr.bf16.mxu1 %v2584_v35 }
 0x104   :  { %1895 = vmatpush1.bf16.msra.mxu0 %v2579_v18 }
 0x105   :  { %1936 = vmatpush1.bf16.msra.mxu1 %v2582_v19  ;;  %1896 = vmatprep.subr.bf16.mxu0 %v2587_v36 }
 0x106   :  { %1937 = vmatprep.subr.bf16.mxu1 %v2590_v37 }
 0x108   :  { %1897 = vmatpush1.bf16.msra.mxu0 %v2585_v38 }
 0x109   :  { %1938 = vmatpush1.bf16.msra.mxu1 %v2588_v39  ;;  %1898 = vmatprep.subr.bf16.mxu0 %v2593_v40 }
 0x10a   :  { %1939 = vmatprep.subr.bf16.mxu1 %v2596_v41 }
 0x10c   :  { %1899 = vmatpush1.bf16.msra.mxu0 %v2591_v42 }
 0x10d   :  { %1940 = vmatpush1.bf16.msra.mxu1 %v2594_v43  ;;  %1900 = vmatprep.subr.bf16.mxu0 %v2599_v44 }
 0x10e   :  { %1941 = vmatprep.subr.bf16.mxu1 %v2602_v45 }
 0x110   :  { %1901 = vmatpush1.bf16.msra.mxu0 %v2597_v46 }
 0x111   :  { %1942 = vmatpush1.bf16.msra.mxu1 %v2600_v47  ;;  %1902 = vmatprep.subr.bf16.mxu0 %v2605_v48 }
 0x112   :  { %1943 = vmatprep.subr.bf16.mxu1 %v2608_v49 }
 0x114   :  { %1903 = vmatpush2.bf16.msra.mxu0 %v2603_v50 }
 0x115   :  { %1944 = vmatpush2.bf16.msra.mxu1 %v2606_v51  ;;  %1904 = vmatprep.subr.bf16.mxu0 %v2611_v52 }
 0x116   :  { %1945 = vmatprep.subr.bf16.mxu1 %v2614_v53 }
 0x118   :  { %1905 = vmatpush2.bf16.msra.mxu0 %v2609_v54 }
 0x119   :  { %1946 = vmatpush2.bf16.msra.mxu1 %v2612_v55  ;;  %1906 = vmatprep.subr.bf16.mxu0 %v2617_v56 }
 0x11a   :  { %1947 = vmatprep.subr.bf16.mxu1 %v2620_v57 }
 0x11c   :  { %1907 = vmatpush2.bf16.msra.mxu0 %v2615_v58 }
 0x11d   :  { %1948 = vmatpush2.bf16.msra.mxu1 %v2618_v59  ;;  %1908 = vmatprep.subr.bf16.mxu0 %v2623_v60 }
 0x11e   :  { %1949 = vmatprep.subr.bf16.mxu1 %v2626_v61 }
 0x120   :  { %1909 = vmatpush2.bf16.msra.mxu0 %v2621_v62 }
 0x121   :  { %1950 = vmatpush2.bf16.msra.mxu1 %v2624_v63  ;;  %1910 = vmatprep.subr.bf16.mxu0 %v2629_v0 }
 0x122   :  { %1951 = vmatprep.subr.bf16.mxu1 %v2632_v1 }
 0x124   :  { %1911 = vmatpush2.bf16.msra.mxu0 %v2627_v2 }
 0x125   :  { %1952 = vmatpush2.bf16.msra.mxu1 %v2630_v3  ;;  %1912 = vmatprep.subr.bf16.mxu0 %v2635_v4 }
 0x126   :  { %1953 = vmatprep.subr.bf16.mxu1 %v2638_v5 }
 0x128   :  { %1913 = vmatpush2.bf16.msra.mxu0 %v2633_v6 }
 0x129   :  { %1954 = vmatpush2.bf16.msra.mxu1 %v2636_v7  ;;  %1914 = vmatprep.subr.bf16.mxu0 %v2641_v10 }
 0x12a   :  { %1955 = vmatprep.subr.bf16.mxu1 %v2644_v11 }
 0x12c   :  { %1915 = vmatpush2.bf16.msra.mxu0 %v2639_v12 }
 0x12d   :  { %1956 = vmatpush2.bf16.msra.mxu1 %v2642_v13  ;;  %1916 = vmatprep.subr.bf16.mxu0 %v2647_v14 }
 0x12e   :  { %1957 = vmatprep.subr.bf16.mxu1 %v2650_v15 }
 0x130   :  { %1917 = vmatpush2.bf16.msra.mxu0 %v2645_v16 }
 0x131   :  { %1958 = vmatpush2.bf16.msra.mxu1 %v2648_v17 }
 0x133   :  { %v880_v22 = vpop.f32.mrf.mxu0  ;;  %1919 = vmatmul.mubr.bf16.vlgmr.msra.gmra.mxu0 %v2803_v20 }
 0x134   :  { %v921_v23 = vpop.f32.mrf.mxu1  ;;  %1960 = vmatmul.mubr.bf16.vlgmr.msra.gmra.mxu1 %v2805_v21 }
 0x135   :  { %v922_v24 = vadd.f32 %v921_v23, %v880_v22  ;;  %v882_v25 = vpop.f32.mrf.mxu0 }
 0x136   :  { %v923_v26 = vpop.f32.mrf.mxu1 }
 0x137   :  { %v924_v8 = vadd.f32 %v923_v26, %v882_v25  ;;  %v884_v9 = vpop.f32.mrf.mxu0 }
 0x138   :  { %v925_v27 = vpop.f32.mrf.mxu1 }
 0x139   :  { %v2257_v28 = vpack.c.bf16 %v924_v8, %v922_v24  ;;  %v885_v29 = vpop.f32.mrf.mxu0 }
 0x13a   :  { %v926_v30 = vpop.f32.mrf.mxu1 }
 0x13b   :  { %1026 = vst [vmem:[%s2829_s4] sm:$0xff] %v2257_v28 }
 0x173   :  { %v962_v31 = vpop.f32.mrf.mxu0 }
 0x174   :  { %v1003_v32 = vpop.f32.mrf.mxu1 }
 0x175   :  { %v1004_v33 = vadd.f32 %v1003_v32, %v962_v31  ;;  %v964_v34 = vpop.f32.mrf.mxu0 }
 0x176   :  { %v1005_v20 = vpop.f32.mrf.mxu1 }
 0x177   :  { %v1006_v35 = vadd.f32 %v1005_v20, %v964_v34  ;;  %v966_v21 = vpop.f32.mrf.mxu0 }
 0x178   :  { %v1007_v18 = vpop.f32.mrf.mxu1 }
 0x179   :  { %v2258_v19 = vpack.c.bf16 %v1006_v35, %v1004_v33  ;;  %v967_v36 = vpop.f32.mrf.mxu0 }
 0x17a   :  { %v1008_v37 = vpop.f32.mrf.mxu1 }
 0x17b   :  { %1027 = vst [vmem:[%s2829_s4 + $0x8] sm:$0xff] %v2258_v19 }
 0x1b3   :  { %v1838_v38 = vpop.f32.mrf.mxu0 }
 0x1b4   :  { %v1879_v39 = vpop.f32.mrf.mxu1 }
 0x1b5   :  { %v1880_v40 = vadd.f32 %v1879_v39, %v1838_v38  ;;  %v1840_v41 = vpop.f32.mrf.mxu0 }
 0x1b6   :  { %v1881_v42 = vpop.f32.mrf.mxu1 }
 0x1b7   :  { %v1882_v43 = vadd.f32 %v1881_v42, %v1840_v41  ;;  %v1842_v44 = vpop.f32.mrf.mxu0 }
 0x1b8   :  { %v1883_v45 = vpop.f32.mrf.mxu1 }
 0x1b9   :  { %v2259_v46 = vpack.c.bf16 %v1882_v43, %v1880_v40  ;;  %v1843_v47 = vpop.f32.mrf.mxu0 }
 0x1ba   :  { %v1884_v48 = vpop.f32.mrf.mxu1 }
 0x1bb   :  { %1984 = vst [vmem:[%s2830_s5] sm:$0xff] %v2259_v46 }
 0x1f3   :  { %v1920_v49 = vpop.f32.mrf.mxu0 }
 0x1f4   :  { %v1961_v50 = vpop.f32.mrf.mxu1 }
 0x1f5   :  { %v1922_v51 = vpop.f32.mrf.mxu0  ;;  %v1962_v53 = vadd.f32 %v1961_v50, %v1920_v49 }
 0x1f6   :  { %v1963_v52 = vpop.f32.mrf.mxu1 }
 0x1f7   :  { %v1964_v54 = vadd.f32 %v1963_v52, %v1922_v51  ;;  %v1924_v55 = vpop.f32.mrf.mxu0 }
 0x1f8   :  { %v1965_v56 = vpop.f32.mrf.mxu1 }
 0x1f9   :  { %v2260_v57 = vpack.c.bf16 %v1964_v54, %v1962_v53  ;;  %v1925_v58 = vpop.f32.mrf.mxu0 }
 0x1fa   :  { %v1966_v59 = vpop.f32.mrf.mxu1 }
 0x1fb   :  { %1985 = vst [vmem:[%s2830_s5 + $0x8] sm:$0xff] %v2260_v57 }
 0x1fc   :  { %1994 = vsyncpa [#allocation3], 1 }
 0x1fd   :  { %1995 = vsyncpa [#allocation5], 1 }
 0x1fe   :  { %1996 = vsyncpa [#allocation8], 1 }

// kernel: multi_head_attention.3
= control target key start
LH: loop header
LB: loop body
LE: loop exit
PB: predicated region body
PF: predicated region fallthrough
CT: control target
= control target key end

     0   :  { %s3739_s17 = smov 64   ;;  %vm974_vm0 = vcmask 523264   ;;  %s4747_s0 = inlined_call_operand.vmem [shape: f32[8,512], index: 0, kind: input, shape index: {}]   ;;  %s4748_s1 = inlined_call_operand.vmem [shape: bf16[8,512], index: 1, kind: input, shape index: {}]   ;;  %s4749_s2 = inlined_call_operand.vmem [shape: bf16[8,512], index: 2, kind: input, shape index: {}]   ;;  %s4750_s3 = inlined_call_operand.vmem [shape: bf16[512,512], index: 3, kind: input, shape index: {}]   ;;  %s4751_s4 = inlined_call_operand.vmem [shape: bf16[512,512], index: 4, kind: input, shape index: {}]   ;;  %s4752_s5 = inlined_call_operand.hbm [shape: f32[8,512], index: 5, kind: output, shape index: {}]  }
   0x1   :  { %v3289_v0 = vld [vmem:[%s4750_s3 + $0xe4] ss:$16 sps:$4 sm:$0xff]   ;;  %v3293_v2 = vld [vmem:[%s4750_s3 + $0xe0] ss:$16 sps:$4 sm:$0xff]   ;;  %v23_v46 = vld [vmem:[%s4747_s0 + $0x8] sm:$0xff] }
   0x2   :  { %v3291_v1 = vld [vmem:[%s4750_s3 + $0x2e4] ss:$16 sps:$4 sm:$0xff]   ;;  %798 = vmatprep.subr.bf16.mxu0 %v3289_v0  ;;  %v3294_v3 = vld [vmem:[%s4750_s3 + $0x2e0] ss:$16 sps:$4 sm:$0xff]   ;;  %v3920_v49 = vpack.c.bf16 %v23_v46, %v23_v46  ;;  %v25_v50 = vld [vmem:[%s4747_s0 + $0x18] sm:$0xff] }
   0x3   :  { %839 = vmatprep.subr.bf16.mxu1 %v3291_v1  ;;  %v3295_v4 = vld [vmem:[%s4750_s3 + $0xc4] ss:$16 sps:$4 sm:$0xff]   ;;  %799 = vmatpush1.bf16.msra.mxu0 %v3293_v2  ;;  %v3299_v6 = vld [vmem:[%s4750_s3 + $0xc0] ss:$16 sps:$4 sm:$0xff]   ;;  %v29_v52 = vpack.c.bf16 %v25_v50, %v25_v50  ;;  %v3441_v46 = vld [vmem:[%s4750_s3 + $0x1cc] ss:$16 sps:$4 sm:$0xff]  }
   0x4   :  { %840 = vmatpush1.bf16.msra.mxu1 %v3294_v3  ;;  %v3297_v5 = vld [vmem:[%s4750_s3 + $0x2c4] ss:$16 sps:$4 sm:$0xff]   ;;  %800 = vmatprep.subr.bf16.mxu0 %v3295_v4  ;;  %v3300_v7 = vld [vmem:[%s4750_s3 + $0x2c0] ss:$16 sps:$4 sm:$0xff]   ;;  %v3447_v50 = vld [vmem:[%s4750_s3 + $0x1ac] ss:$16 sps:$4 sm:$0xff]  }
   0x5   :  { %841 = vmatprep.subr.bf16.mxu1 %v3297_v5  ;;  %v3301_v8 = vld [vmem:[%s4750_s3 + $0xa4] ss:$16 sps:$4 sm:$0xff]   ;;  %v3305_v10 = vld [vmem:[%s4750_s3 + $0xa0] ss:$16 sps:$4 sm:$0xff]   ;;  %830 = vmatprep.mubr.bf16.mxu0 %v3920_v49 }
   0x6   :  { %v3303_v9 = vld [vmem:[%s4750_s3 + $0x2a4] ss:$16 sps:$4 sm:$0xff]   ;;  %v3306_v11 = vld [vmem:[%s4750_s3 + $0x2a0] ss:$16 sps:$4 sm:$0xff]   ;;  %871 = vmatprep.mubr.bf16.mxu1 %v29_v52 }
   0x7   :  { %801 = vmatpush1.bf16.msra.mxu0 %v3299_v6  ;;  %v3307_v12 = vld [vmem:[%s4750_s3 + $0x84] ss:$16 sps:$4 sm:$0xff]   ;;  %v3311_v14 = vld [vmem:[%s4750_s3 + $0x80] ss:$16 sps:$4 sm:$0xff]   ;;  %v3387_v6 = vld [vmem:[%s4750_s3 + $0xec] ss:$16 sps:$4 sm:$0xff]  }
   0x8   :  { %842 = vmatpush1.bf16.msra.mxu1 %v3300_v7  ;;  %802 = vmatprep.subr.bf16.mxu0 %v3301_v8  ;;  %v3309_v13 = vld [vmem:[%s4750_s3 + $0x284] ss:$16 sps:$4 sm:$0xff]   ;;  %v3312_v15 = vld [vmem:[%s4750_s3 + $0x280] ss:$16 sps:$4 sm:$0xff]   ;;  %v3390_v7 = vld [vmem:[%s4750_s3 + $0x2ec] ss:$16 sps:$4 sm:$0xff]  }
   0x9   :  { %843 = vmatprep.subr.bf16.mxu1 %v3303_v9  ;;  %v3313_v16 = vld [vmem:[%s4750_s3 + $0x64] ss:$16 sps:$4 sm:$0xff]   ;;  %v3317_v18 = vld [vmem:[%s4750_s3 + $0x60] ss:$16 sps:$4 sm:$0xff]  }
   0xa   :  { %v3315_v17 = vld [vmem:[%s4750_s3 + $0x264] ss:$16 sps:$4 sm:$0xff]   ;;  %v3318_v19 = vld [vmem:[%s4750_s3 + $0x260] ss:$16 sps:$4 sm:$0xff]  }
   0xb   :  { %803 = vmatpush1.bf16.msra.mxu0 %v3305_v10  ;;  %v3319_v20 = vld [vmem:[%s4750_s3 + $0x44] ss:$16 sps:$4 sm:$0xff]   ;;  %v3323_v22 = vld [vmem:[%s4750_s3 + $0x40] ss:$16 sps:$4 sm:$0xff]   ;;  %v3385_v10 = vld [vmem:[%s4750_s3 + $0xe8] ss:$16 sps:$4 sm:$0xff]  }
   0xc   :  { %844 = vmatpush1.bf16.msra.mxu1 %v3306_v11  ;;  %804 = vmatprep.subr.bf16.mxu0 %v3307_v12  ;;  %v3321_v21 = vld [vmem:[%s4750_s3 + $0x244] ss:$16 sps:$4 sm:$0xff]   ;;  %v3324_v23 = vld [vmem:[%s4750_s3 + $0x240] ss:$16 sps:$4 sm:$0xff]   ;;  %v3388_v11 = vld [vmem:[%s4750_s3 + $0x2e8] ss:$16 sps:$4 sm:$0xff]  }
   0xd   :  { %845 = vmatprep.subr.bf16.mxu1 %v3309_v13  ;;  %v3325_v24 = vld [vmem:[%s4750_s3 + $0x24] ss:$16 sps:$4 sm:$0xff]   ;;  %v3329_v26 = vld [vmem:[%s4750_s3 + $0x20] ss:$16 sps:$4 sm:$0xff]   ;;  %v3393_v12 = vld [vmem:[%s4750_s3 + $0xcc] ss:$16 sps:$4 sm:$0xff]  }
   0xe   :  { %v3327_v25 = vld [vmem:[%s4750_s3 + $0x224] ss:$16 sps:$4 sm:$0xff]   ;;  %v3330_v27 = vld [vmem:[%s4750_s3 + $0x220] ss:$16 sps:$4 sm:$0xff]   ;;  %v3396_v13 = vld [vmem:[%s4750_s3 + $0x2cc] ss:$16 sps:$4 sm:$0xff]  }
   0xf   :  { %805 = vmatpush1.bf16.msra.mxu0 %v3311_v14  ;;  %v3331_v28 = vld [vmem:[%s4750_s3 + $0x4] ss:$16 sps:$4 sm:$0xff]   ;;  %v3335_v30 = vld [vmem:[%s4750_s3] ss:$16 sps:$4 sm:$0xff]   ;;  %v3391_v14 = vld [vmem:[%s4750_s3 + $0xc8] ss:$16 sps:$4 sm:$0xff]  }
  0x10   :  { %846 = vmatpush1.bf16.msra.mxu1 %v3312_v15  ;;  %806 = vmatprep.subr.bf16.mxu0 %v3313_v16  ;;  %v3333_v29 = vld [vmem:[%s4750_s3 + $0x204] ss:$16 sps:$4 sm:$0xff]   ;;  %v3336_v31 = vld [vmem:[%s4750_s3 + $0x200] ss:$16 sps:$4 sm:$0xff]   ;;  %v3394_v15 = vld [vmem:[%s4750_s3 + $0x2c8] ss:$16 sps:$4 sm:$0xff]  }
  0x11   :  { %847 = vmatprep.subr.bf16.mxu1 %v3315_v17  ;;  %v3337_v32 = vld [vmem:[%s4750_s3 + $0x1e4] ss:$16 sps:$4 sm:$0xff]   ;;  %v3341_v34 = vld [vmem:[%s4750_s3 + $0x1e0] ss:$16 sps:$4 sm:$0xff]   ;;  %v3399_v16 = vld [vmem:[%s4750_s3 + $0xac] ss:$16 sps:$4 sm:$0xff]  }
  0x12   :  { %v3339_v33 = vld [vmem:[%s4750_s3 + $0x3e4] ss:$16 sps:$4 sm:$0xff]   ;;  %v3342_v35 = vld [vmem:[%s4750_s3 + $0x3e0] ss:$16 sps:$4 sm:$0xff]   ;;  %v3402_v17 = vld [vmem:[%s4750_s3 + $0x2ac] ss:$16 sps:$4 sm:$0xff]  }
  0x13   :  { %807 = vmatpush1.bf16.msra.mxu0 %v3317_v18  ;;  %v3343_v36 = vld [vmem:[%s4750_s3 + $0x1c4] ss:$16 sps:$4 sm:$0xff]   ;;  %v3347_v38 = vld [vmem:[%s4750_s3 + $0x1c0] ss:$16 sps:$4 sm:$0xff]   ;;  %v3397_v18 = vld [vmem:[%s4750_s3 + $0xa8] ss:$16 sps:$4 sm:$0xff]  }
  0x14   :  { %848 = vmatpush1.bf16.msra.mxu1 %v3318_v19  ;;  %808 = vmatprep.subr.bf16.mxu0 %v3319_v20  ;;  %v3345_v37 = vld [vmem:[%s4750_s3 + $0x3c4] ss:$16 sps:$4 sm:$0xff]   ;;  %v3348_v39 = vld [vmem:[%s4750_s3 + $0x3c0] ss:$16 sps:$4 sm:$0xff]   ;;  %v3400_v19 = vld [vmem:[%s4750_s3 + $0x2a8] ss:$16 sps:$4 sm:$0xff]  }
  0x15   :  { %849 = vmatprep.subr.bf16.mxu1 %v3321_v21  ;;  %v3349_v40 = vld [vmem:[%s4750_s3 + $0x1a4] ss:$16 sps:$4 sm:$0xff]   ;;  %v3353_v42 = vld [vmem:[%s4750_s3 + $0x1a0] ss:$16 sps:$4 sm:$0xff]   ;;  %v3405_v20 = vld [vmem:[%s4750_s3 + $0x8c] ss:$16 sps:$4 sm:$0xff]  }
  0x16   :  { %v3351_v41 = vld [vmem:[%s4750_s3 + $0x3a4] ss:$16 sps:$4 sm:$0xff]   ;;  %v3354_v43 = vld [vmem:[%s4750_s3 + $0x3a0] ss:$16 sps:$4 sm:$0xff]   ;;  %v3408_v21 = vld [vmem:[%s4750_s3 + $0x28c] ss:$16 sps:$4 sm:$0xff]  }
  0x17   :  { %809 = vmatpush1.bf16.msra.mxu0 %v3323_v22  ;;  %v3355_v44 = vld [vmem:[%s4750_s3 + $0x184] ss:$16 sps:$4 sm:$0xff]   ;;  %v3359_v47 = vld [vmem:[%s4750_s3 + $0x180] ss:$16 sps:$4 sm:$0xff]   ;;  %v3403_v22 = vld [vmem:[%s4750_s3 + $0x88] ss:$16 sps:$4 sm:$0xff]  }
  0x18   :  { %850 = vmatpush1.bf16.msra.mxu1 %v3324_v23  ;;  %810 = vmatprep.subr.bf16.mxu0 %v3325_v24  ;;  %v3357_v45 = vld [vmem:[%s4750_s3 + $0x384] ss:$16 sps:$4 sm:$0xff]   ;;  %v3360_v48 = vld [vmem:[%s4750_s3 + $0x380] ss:$16 sps:$4 sm:$0xff]   ;;  %v3406_v23 = vld [vmem:[%s4750_s3 + $0x288] ss:$16 sps:$4 sm:$0xff]  }
  0x19   :  { %851 = vmatprep.subr.bf16.mxu1 %v3327_v25  ;;  %v3361_v51 = vld [vmem:[%s4750_s3 + $0x164] ss:$16 sps:$4 sm:$0xff]   ;;  %v3365_v54 = vld [vmem:[%s4750_s3 + $0x160] ss:$16 sps:$4 sm:$0xff]   ;;  %v3411_v24 = vld [vmem:[%s4750_s3 + $0x6c] ss:$16 sps:$4 sm:$0xff]  }
  0x1a   :  { %v3363_v53 = vld [vmem:[%s4750_s3 + $0x364] ss:$16 sps:$4 sm:$0xff]   ;;  %v3366_v55 = vld [vmem:[%s4750_s3 + $0x360] ss:$16 sps:$4 sm:$0xff]   ;;  %v3414_v25 = vld [vmem:[%s4750_s3 + $0x26c] ss:$16 sps:$4 sm:$0xff]  }
  0x1b   :  { %811 = vmatpush1.bf16.msra.mxu0 %v3329_v26  ;;  %v3367_v56 = vld [vmem:[%s4750_s3 + $0x144] ss:$16 sps:$4 sm:$0xff]   ;;  %v3371_v58 = vld [vmem:[%s4750_s3 + $0x140] ss:$16 sps:$4 sm:$0xff]   ;;  %v3409_v26 = vld [vmem:[%s4750_s3 + $0x68] ss:$16 sps:$4 sm:$0xff]  }
  0x1c   :  { %852 = vmatpush1.bf16.msra.mxu1 %v3330_v27  ;;  %812 = vmatprep.subr.bf16.mxu0 %v3331_v28  ;;  %v3369_v57 = vld [vmem:[%s4750_s3 + $0x344] ss:$16 sps:$4 sm:$0xff]   ;;  %v3372_v59 = vld [vmem:[%s4750_s3 + $0x340] ss:$16 sps:$4 sm:$0xff]   ;;  %v3412_v27 = vld [vmem:[%s4750_s3 + $0x268] ss:$16 sps:$4 sm:$0xff]  }
  0x1d   :  { %853 = vmatprep.subr.bf16.mxu1 %v3333_v29  ;;  %v3373_v60 = vld [vmem:[%s4750_s3 + $0x124] ss:$16 sps:$4 sm:$0xff]   ;;  %v3377_v62 = vld [vmem:[%s4750_s3 + $0x120] ss:$16 sps:$4 sm:$0xff]   ;;  %v3417_v28 = vld [vmem:[%s4750_s3 + $0x4c] ss:$16 sps:$4 sm:$0xff]  }
  0x1e   :  { %v3375_v61 = vld [vmem:[%s4750_s3 + $0x324] ss:$16 sps:$4 sm:$0xff]   ;;  %v3378_v63 = vld [vmem:[%s4750_s3 + $0x320] ss:$16 sps:$4 sm:$0xff]   ;;  %v3420_v29 = vld [vmem:[%s4750_s3 + $0x24c] ss:$16 sps:$4 sm:$0xff]  }
  0x1f   :  { %813 = vmatpush1.bf16.msra.mxu0 %v3335_v30  ;;  %v3379_v0 = vld [vmem:[%s4750_s3 + $0x104] ss:$16 sps:$4 sm:$0xff]   ;;  %v3383_v2 = vld [vmem:[%s4750_s3 + $0x100] ss:$16 sps:$4 sm:$0xff]   ;;  %v3415_v30 = vld [vmem:[%s4750_s3 + $0x48] ss:$16 sps:$4 sm:$0xff]  }
  0x20   :  { %854 = vmatpush1.bf16.msra.mxu1 %v3336_v31  ;;  %814 = vmatprep.subr.bf16.mxu0 %v3337_v32  ;;  %v3381_v1 = vld [vmem:[%s4750_s3 + $0x304] ss:$16 sps:$4 sm:$0xff]   ;;  %v3384_v3 = vld [vmem:[%s4750_s3 + $0x300] ss:$16 sps:$4 sm:$0xff]   ;;  %v3418_v31 = vld [vmem:[%s4750_s3 + $0x248] ss:$16 sps:$4 sm:$0xff]  }
  0x21   :  { %855 = vmatprep.subr.bf16.mxu1 %v3339_v33  ;;  %v22_v4 = vld [vmem:[%s4747_s0] sm:$0xff]  ;;  %v24_v5 = vld [vmem:[%s4747_s0 + $0x10] sm:$0xff]  ;;  %v3423_v32 = vld [vmem:[%s4750_s3 + $0x2c] ss:$16 sps:$4 sm:$0xff]  }
  0x22   :  { %v3986_v8 = vpack.c.bf16 %v22_v4, %v22_v4  ;;  %v3988_v9 = vpack.c.bf16 %v24_v5, %v24_v5  ;;  %v3426_v33 = vld [vmem:[%s4750_s3 + $0x22c] ss:$16 sps:$4 sm:$0xff]   ;;  %v3469_v4 = vld [vmem:[%s4750_s3 + $0x128] ss:$16 sps:$4 sm:$0xff]  }
  0x23   :  { %815 = vmatpush2.bf16.msra.mxu0 %v3341_v34  ;;  %v3421_v34 = vld [vmem:[%s4750_s3 + $0x28] ss:$16 sps:$4 sm:$0xff]  }
  0x24   :  { %856 = vmatpush2.bf16.msra.mxu1 %v3342_v35  ;;  %816 = vmatprep.subr.bf16.mxu0 %v3343_v36  ;;  %v3424_v35 = vld [vmem:[%s4750_s3 + $0x228] ss:$16 sps:$4 sm:$0xff]   ;;  %v4074_v36 = vld [vmem:[%s4748_s1] sm:$0xff] }
  0x25   :  { %857 = vmatprep.subr.bf16.mxu1 %v3345_v37  ;;  %v3429_v37 = vld [vmem:[%s4750_s3 + $0xc] ss:$16 sps:$4 sm:$0xff]   ;;  %v3472_v5 = vld [vmem:[%s4750_s3 + $0x328] ss:$16 sps:$4 sm:$0xff]  }
  0x27   :  { %817 = vmatpush2.bf16.msra.mxu0 %v3347_v38  ;;  %v3432_v38 = vld [vmem:[%s4750_s3 + $0x20c] ss:$16 sps:$4 sm:$0xff]  }
  0x28   :  { %858 = vmatpush2.bf16.msra.mxu1 %v3348_v39  ;;  %818 = vmatprep.subr.bf16.mxu0 %v3349_v40  ;;  %v2995_v39 = vcombine.low %v4074_v36, %v4074_v36  ;;  %v3427_v40 = vld [vmem:[%s4750_s3 + $0x8] ss:$16 sps:$4 sm:$0xff]  }
  0x29   :  { %859 = vmatprep.subr.bf16.mxu1 %v3351_v41  ;;  %v3430_v41 = vld [vmem:[%s4750_s3 + $0x208] ss:$16 sps:$4 sm:$0xff]  }
  0x2a   :  { %1090 = vrot.lane.b32.xlu0 %v2995_v39, %s3739_s17 }
  0x2b   :  { %819 = vmatpush2.bf16.msra.mxu0 %v3353_v42  ;;  %v3435_v42 = vld [vmem:[%s4750_s3 + $0x1ec] ss:$16 sps:$4 sm:$0xff]  }
  0x2c   :  { %860 = vmatpush2.bf16.msra.mxu1 %v3354_v43  ;;  %820 = vmatprep.subr.bf16.mxu0 %v3355_v44  ;;  %v3438_v43 = vld [vmem:[%s4750_s3 + $0x3ec] ss:$16 sps:$4 sm:$0xff]   ;;  %v3433_v44 = vld [vmem:[%s4750_s3 + $0x1e8] ss:$16 sps:$4 sm:$0xff]  }
  0x2d   :  { %861 = vmatprep.subr.bf16.mxu1 %v3357_v45  ;;  %v3436_v45 = vld [vmem:[%s4750_s3 + $0x3e8] ss:$16 sps:$4 sm:$0xff]  }
  0x2f   :  { %821 = vmatpush2.bf16.msra.mxu0 %v3359_v47  ;;  %v3444_v47 = vld [vmem:[%s4750_s3 + $0x3cc] ss:$16 sps:$4 sm:$0xff]  }
  0x30   :  { %862 = vmatpush2.bf16.msra.mxu1 %v3360_v48  ;;  %822 = vmatprep.subr.bf16.mxu0 %v3361_v51  ;;  %v3439_v48 = vld [vmem:[%s4750_s3 + $0x1c8] ss:$16 sps:$4 sm:$0xff]   ;;  %v3450_v51 = vld [vmem:[%s4750_s3 + $0x3ac] ss:$16 sps:$4 sm:$0xff]  }
  0x31   :  { %863 = vmatprep.subr.bf16.mxu1 %v3363_v53  ;;  %v3448_v53 = vld [vmem:[%s4750_s3 + $0x3a8] ss:$16 sps:$4 sm:$0xff]  }
  0x33   :  { %823 = vmatpush2.bf16.msra.mxu0 %v3365_v54  ;;  %v3453_v54 = vld [vmem:[%s4750_s3 + $0x18c] ss:$16 sps:$4 sm:$0xff]  }
  0x34   :  { %864 = vmatpush2.bf16.msra.mxu1 %v3366_v55  ;;  %824 = vmatprep.subr.bf16.mxu0 %v3367_v56  ;;  %v3456_v55 = vld [vmem:[%s4750_s3 + $0x38c] ss:$16 sps:$4 sm:$0xff]   ;;  %v3451_v56 = vld [vmem:[%s4750_s3 + $0x188] ss:$16 sps:$4 sm:$0xff]  }
  0x35   :  { %865 = vmatprep.subr.bf16.mxu1 %v3369_v57  ;;  %v3454_v57 = vld [vmem:[%s4750_s3 + $0x388] ss:$16 sps:$4 sm:$0xff]  }
  0x37   :  { %825 = vmatpush2.bf16.msra.mxu0 %v3371_v58  ;;  %v3459_v58 = vld [vmem:[%s4750_s3 + $0x16c] ss:$16 sps:$4 sm:$0xff]  }
  0x38   :  { %866 = vmatpush2.bf16.msra.mxu1 %v3372_v59  ;;  %826 = vmatprep.subr.bf16.mxu0 %v3373_v60  ;;  %v3462_v59 = vld [vmem:[%s4750_s3 + $0x36c] ss:$16 sps:$4 sm:$0xff]   ;;  %v3457_v60 = vld [vmem:[%s4750_s3 + $0x168] ss:$16 sps:$4 sm:$0xff]  }
  0x39   :  { %867 = vmatprep.subr.bf16.mxu1 %v3375_v61  ;;  %v3460_v61 = vld [vmem:[%s4750_s3 + $0x368] ss:$16 sps:$4 sm:$0xff]  }
  0x3b   :  { %827 = vmatpush2.bf16.msra.mxu0 %v3377_v62  ;;  %v3465_v62 = vld [vmem:[%s4750_s3 + $0x14c] ss:$16 sps:$4 sm:$0xff]  }
  0x3c   :  { %868 = vmatpush2.bf16.msra.mxu1 %v3378_v63  ;;  %828 = vmatprep.subr.bf16.mxu0 %v3379_v0  ;;  %v3468_v63 = vld [vmem:[%s4750_s3 + $0x34c] ss:$16 sps:$4 sm:$0xff]   ;;  %v3463_v0 = vld [vmem:[%s4750_s3 + $0x148] ss:$16 sps:$4 sm:$0xff]  }
  0x3d   :  { %869 = vmatprep.subr.bf16.mxu1 %v3381_v1  ;;  %v3466_v1 = vld [vmem:[%s4750_s3 + $0x348] ss:$16 sps:$4 sm:$0xff]  }
  0x3f   :  { %829 = vmatpush2.bf16.msra.mxu0 %v3383_v2  ;;  %v3471_v2 = vld [vmem:[%s4750_s3 + $0x12c] ss:$16 sps:$4 sm:$0xff]  }
  0x40   :  { %870 = vmatpush2.bf16.msra.mxu1 %v3384_v3  ;;  %880 = vmatprep.subr.bf16.mxu0 %v3387_v6  ;;  %v3474_v3 = vld [vmem:[%s4750_s3 + $0x32c] ss:$16 sps:$4 sm:$0xff]  }
  0x41   :  { %921 = vmatprep.subr.bf16.mxu1 %v3390_v7  ;;  %v3477_v6 = vld [vmem:[%s4750_s3 + $0x10c] ss:$16 sps:$4 sm:$0xff]  }
  0x42   :  { %831 = vmatmul.mubr.bf16.vlgmr.msra.gmra.mxu0 %v3986_v8  ;;  %v3480_v7 = vld [vmem:[%s4750_s3 + $0x30c] ss:$16 sps:$4 sm:$0xff]  }
  0x43   :  { %872 = vmatmul.mubr.bf16.vlgmr.msra.gmra.mxu1 %v3988_v9  ;;  %881 = vmatpush1.bf16.msra.mxu0 %v3385_v10  ;;  %v3475_v10 = vld [vmem:[%s4750_s3 + $0x108] ss:$16 sps:$4 sm:$0xff]  }
  0x44   :  { %922 = vmatpush1.bf16.msra.mxu1 %v3388_v11  ;;  %882 = vmatprep.subr.bf16.mxu0 %v3393_v12  ;;  %v3478_v11 = vld [vmem:[%s4750_s3 + $0x308] ss:$16 sps:$4 sm:$0xff]   ;;  %v3740_v12 = vmov 0.0  }
  0x45   :  { %923 = vmatprep.subr.bf16.mxu1 %v3396_v13  ;;  %912 = vmatprep.mubr.bf16.mxu0 %v3920_v49  ;;  %v3442_v49 = vld [vmem:[%s4750_s3 + $0x3c8] ss:$16 sps:$4 sm:$0xff]  }
  0x46   :  { %953 = vmatprep.mubr.bf16.mxu1 %v29_v52  ;;  %v3445_v52 = vld [vmem:[%s4750_s3 + $0x1a8] ss:$16 sps:$4 sm:$0xff]  }
  0x47   :  { %883 = vmatpush1.bf16.msra.mxu0 %v3391_v14 }
  0x48   :  { %924 = vmatpush1.bf16.msra.mxu1 %v3394_v15  ;;  %884 = vmatprep.subr.bf16.mxu0 %v3399_v16 }
  0x49   :  { %925 = vmatprep.subr.bf16.mxu1 %v3402_v17 }
  0x4b   :  { %885 = vmatpush1.bf16.msra.mxu0 %v3397_v18 }
  0x4c   :  { %926 = vmatpush1.bf16.msra.mxu1 %v3400_v19  ;;  %886 = vmatprep.subr.bf16.mxu0 %v3405_v20 }
  0x4d   :  { %927 = vmatprep.subr.bf16.mxu1 %v3408_v21 }
  0x4f   :  { %887 = vmatpush1.bf16.msra.mxu0 %v3403_v22 }
  0x50   :  { %928 = vmatpush1.bf16.msra.mxu1 %v3406_v23  ;;  %888 = vmatprep.subr.bf16.mxu0 %v3411_v24 }
  0x51   :  { %929 = vmatprep.subr.bf16.mxu1 %v3414_v25 }
  0x53   :  { %889 = vmatpush1.bf16.msra.mxu0 %v3409_v26 }
  0x54   :  { %930 = vmatpush1.bf16.msra.mxu1 %v3412_v27  ;;  %890 = vmatprep.subr.bf16.mxu0 %v3417_v28 }
  0x55   :  { %931 = vmatprep.subr.bf16.mxu1 %v3420_v29 }
  0x57   :  { %891 = vmatpush1.bf16.msra.mxu0 %v3415_v30 }
  0x58   :  { %932 = vmatpush1.bf16.msra.mxu1 %v3418_v31  ;;  %892 = vmatprep.subr.bf16.mxu0 %v3423_v32 }
  0x59   :  { %933 = vmatprep.subr.bf16.mxu1 %v3426_v33 }
  0x5b   :  { %893 = vmatpush1.bf16.msra.mxu0 %v3421_v34 }
  0x5c   :  { %934 = vmatpush1.bf16.msra.mxu1 %v3424_v35  ;;  %894 = vmatprep.subr.bf16.mxu0 %v3429_v37 }
  0x5d   :  { %935 = vmatprep.subr.bf16.mxu1 %v3432_v38 }
  0x5f   :  { %895 = vmatpush1.bf16.msra.mxu0 %v3427_v40 }
  0x60   :  { %936 = vmatpush1.bf16.msra.mxu1 %v3430_v41  ;;  %896 = vmatprep.subr.bf16.mxu0 %v3435_v42 }
  0x61   :  { %937 = vmatprep.subr.bf16.mxu1 %v3438_v43 }
  0x63   :  { %897 = vmatpush2.bf16.msra.mxu0 %v3433_v44 }
  0x64   :  { %938 = vmatpush2.bf16.msra.mxu1 %v3436_v45  ;;  %898 = vmatprep.subr.bf16.mxu0 %v3441_v46 }
  0x65   :  { %939 = vmatprep.subr.bf16.mxu1 %v3444_v47 }
  0x67   :  { %899 = vmatpush2.bf16.msra.mxu0 %v3439_v48 }
  0x68   :  { %940 = vmatpush2.bf16.msra.mxu1 %v3442_v49  ;;  %900 = vmatprep.subr.bf16.mxu0 %v3447_v50 }
  0x69   :  { %941 = vmatprep.subr.bf16.mxu1 %v3450_v51 }
  0x6b   :  { %901 = vmatpush2.bf16.msra.mxu0 %v3445_v52 }
  0x6c   :  { %942 = vmatpush2.bf16.msra.mxu1 %v3448_v53  ;;  %902 = vmatprep.subr.bf16.mxu0 %v3453_v54 }
  0x6d   :  { %943 = vmatprep.subr.bf16.mxu1 %v3456_v55 }
  0x6f   :  { %903 = vmatpush2.bf16.msra.mxu0 %v3451_v56 }
  0x70   :  { %944 = vmatpush2.bf16.msra.mxu1 %v3454_v57  ;;  %904 = vmatprep.subr.bf16.mxu0 %v3459_v58 }
  0x71   :  { %945 = vmatprep.subr.bf16.mxu1 %v3462_v59 }
  0x73   :  { %905 = vmatpush2.bf16.msra.mxu0 %v3457_v60 }
  0x74   :  { %946 = vmatpush2.bf16.msra.mxu1 %v3460_v61  ;;  %906 = vmatprep.subr.bf16.mxu0 %v3465_v62 }
  0x75   :  { %947 = vmatprep.subr.bf16.mxu1 %v3468_v63 }
  0x77   :  { %907 = vmatpush2.bf16.msra.mxu0 %v3463_v0 }
  0x78   :  { %948 = vmatpush2.bf16.msra.mxu1 %v3466_v1  ;;  %908 = vmatprep.subr.bf16.mxu0 %v3471_v2 }
  0x79   :  { %949 = vmatprep.subr.bf16.mxu1 %v3474_v3 }
  0x7b   :  { %909 = vmatpush2.bf16.msra.mxu0 %v3469_v4 }
  0x7c   :  { %950 = vmatpush2.bf16.msra.mxu1 %v3472_v5  ;;  %910 = vmatprep.subr.bf16.mxu0 %v3477_v6 }
  0x7d   :  { %951 = vmatprep.subr.bf16.mxu1 %v3480_v7 }
  0x7f   :  { %911 = vmatpush2.bf16.msra.mxu0 %v3475_v10 }
  0x80   :  { %952 = vmatpush2.bf16.msra.mxu1 %v3478_v11  ;;  %3189 = vmatprep.subr.bf16.mxu0 %v3740_v12 }
  0x81   :  { %3195 = vmatprep.subr.bf16.mxu1 %v3740_v12 }
  0x82   :  { %10 = vsyncpa [#allocation4], 0  ;;  %v979_v13 = vsel %vm974_vm0, %v4074_v36, 0  ;;  %913 = vmatmul.mubr.bf16.vlgmr.msra.gmra.mxu0 %v3986_v8  ;;  %v3000_v14 = vcombine.high %v4074_v36, %v4074_v36  ;;  %vm3741_vm1 = vmmov 0   ;;  %v971_v23 = vld [vmem:[%s4748_s1 + $0x8] sm:$0xff]  ;;  %vm1021_vm2 = vcmask 64512  }
  0x83   :  { %954 = vmatmul.mubr.bf16.vlgmr.msra.gmra.mxu1 %v3988_v9  ;;  %3190 = vmatpush3.bf16.xpose.msra.mxu0 %v979_v13  ;;  %v3009_v30 = vcombine.low %v971_v23, %v971_v23  ;;  %v3014_v31 = vcombine.high %v971_v23, %v971_v23  ;;  %v1443_v50 = vsel %vm974_vm0, %v971_v23, 0  ;;  %vm1037_vm3 = vcmask 1043456  }
  0x84   :  { %3201 = vmatprep.subr.bf16.mxu0 %v3740_v12  ;;  %1323 = vrot.lane.b32.xlu1 %v3000_v14, %s3739_s17  ;;  %v1216_v46 = vsel %vm974_vm0, %v3000_v14, 0  ;;  %vm1082_vm4 = vcmask 519168   ;;  %vm1208_vm5 = vcmask 1043968  }
  0x85   :  { %3191 = vmatprep.mubr.msk.bf16.mxu0 %vm3741_vm1, %v3740_v12  ;;  %3197 = vmatprep.mubr.msk.bf16.mxu1 %vm3741_vm1, %v3740_v12  ;;  %v1676_v54 = vsel %vm974_vm0, %v3014_v31, 0 }
  0x9c   :  { %v1091_v17 = vpop.permute.xlu0 %1090 }
  0x9d   :  { %v1096_v26 = vsel %vm974_vm0, %v1091_v17, 0 }
  0xf6   :  { %v1324_v48 = vpop.permute.xlu1 %1323 }
  0xf7   :  { %v1329_v49 = vsel %vm974_vm0, %v1324_v48, 0 }
 0x102   :  { %v832_v15 = vpop.f32.mrf.mxu0 }
 0x103   :  { %v873_v16 = vpop.f32.mrf.mxu1 }
 0x104   :  { %v874_v8 = vadd.f32 %v873_v16, %v832_v15  ;;  %v834_v9 = vpop.f32.mrf.mxu0 }
 0x105   :  { %v875_v18 = vpop.f32.mrf.mxu1 }
 0x106   :  { %v962_v19 = vmul.f32 0.125, %v874_v8  ;;  %v876_v20 = vadd.f32 %v875_v18, %v834_v9  ;;  %v836_v21 = vpop.f32.mrf.mxu0 }
 0x107   :  { %v877_v22 = vpop.f32.mrf.mxu1 }
 0x108   :  { %v966_v24 = vpack.c.bf16 %v962_v19, %v962_v19  ;;  %v963_v25 = vmul.f32 0.125, %v876_v20  ;;  %v837_v27 = vpop.f32.mrf.mxu0 }
 0x109   :  { %v878_v28 = vpop.f32.mrf.mxu1 }
 0x10a   :  { %v967_v29 = vpack.c.bf16 %v963_v25, %v963_v25  ;;  %1085 = vrot.lane.b32.xlu0 %v966_v24, %s3739_s17  ;;  %3192 = vmatmul.mubr.msk.bf16.vlgmr.msra.gmra.mxu0 %vm974_vm0, %v966_v24 }
 0x10b   :  { %3202 = vmatpush3.bf16.xpose.msra.mxu0 %v1096_v26  ;;  %3203 = vmatprep.mubr.msk.bf16.mxu0 %vm3741_vm1, %v3740_v12 }
 0x10c   :  { %1321 = vrot.lane.b32.xlu1 %v967_v29, %s3739_s17  ;;  %3213 = vmatprep.subr.bf16.mxu0 %v3740_v12 }
 0x10e   :  { %1551 = vrot.lane.b32.xlu0 %v3009_v30, %s3739_s17 }
 0x112   :  { %1783 = vrot.lane.b32.xlu0 %v3014_v31, %s3739_s17 }
 0x142   :  { %v914_v32 = vpop.f32.mrf.mxu0 }
 0x143   :  { %v955_v33 = vpop.f32.mrf.mxu1 }
 0x144   :  { %v956_v34 = vadd.f32 %v955_v33, %v914_v32  ;;  %v916_v35 = vpop.f32.mrf.mxu0 }
 0x145   :  { %v957_v36 = vpop.f32.mrf.mxu1 }
 0x146   :  { %v964_v37 = vmul.f32 0.125, %v956_v34  ;;  %v958_v38 = vadd.f32 %v957_v36, %v916_v35  ;;  %v918_v39 = vpop.f32.mrf.mxu0 }
 0x147   :  { %v959_v40 = vpop.f32.mrf.mxu1 }
 0x148   :  { %v968_v41 = vpack.c.bf16 %v964_v37, %v964_v37  ;;  %v965_v42 = vmul.f32 0.125, %v958_v38  ;;  %v919_v43 = vpop.f32.mrf.mxu0 }
 0x149   :  { %v960_v44 = vpop.f32.mrf.mxu1 }
 0x14a   :  { %v969_v45 = vpack.c.bf16 %v965_v42, %v965_v42  ;;  %1546 = vrot.lane.b32.xlu1 %v968_v41, %s3739_s17 }
 0x14e   :  { %1781 = vrot.lane.b32.xlu1 %v969_v45, %s3739_s17 }
 0x17c   :  { %v1086_v47 = vpop.permute.xlu0 %1085 }
 0x17d   :  { %3204 = vmatmul.mubr.msk.bf16.vlgmr.msra.gmra.mxu0 %vm974_vm0, %v1086_v47 }
 0x17e   :  { %3214 = vmatpush3.bf16.xpose.msra.mxu0 %v1216_v46  ;;  %3215 = vmatprep.mubr.msk.bf16.mxu0 %vm3741_vm1, %v3740_v12  ;;  %v1322_v51 = vpop.permute.xlu1 %1321 }
 0x17f   :  { %3225 = vmatprep.subr.bf16.mxu0 %v3740_v12 }
 0x180   :  { %v1552_v52 = vpop.permute.xlu0 %1551 }
 0x181   :  { %v1557_v53 = vsel %vm974_vm0, %v1552_v52, 0 }
 0x184   :  { %v1784_v56 = vpop.permute.xlu0 %1783 }
 0x185   :  { %3216 = vmatmul.mubr.msk.bf16.vlgmr.msra.gmra.mxu0 %vm974_vm0, %v967_v29  ;;  %v1789_v57 = vsel %vm974_vm0, %v1784_v56, 0 }
 0x186   :  { %3226 = vmatpush3.bf16.xpose.msra.mxu0 %v1329_v49  ;;  %3227 = vmatprep.mubr.msk.bf16.mxu0 %vm3741_vm1, %v3740_v12 }
 0x187   :  { %3237 = vmatprep.subr.bf16.mxu0 %v3740_v12 }
 0x18d   :  { %3228 = vmatmul.mubr.msk.bf16.vlgmr.msra.gmra.mxu0 %vm974_vm0, %v1322_v51 }
 0x18e   :  { %3238 = vmatpush3.bf16.xpose.msra.mxu0 %v1443_v50  ;;  %3239 = vmatprep.mubr.msk.bf16.mxu0 %vm3741_vm1, %v3740_v12 }
 0x18f   :  { %3249 = vmatprep.subr.bf16.mxu0 %v3740_v12 }
 0x195   :  { %3240 = vmatmul.mubr.msk.bf16.vlgmr.msra.gmra.mxu0 %vm974_vm0, %v968_v41  ;;  %v972_v41 = vld [vmem:[%s4749_s2] sm:$0xff] }
 0x196   :  { %3250 = vmatpush3.bf16.xpose.msra.mxu0 %v1557_v53  ;;  %3251 = vmatprep.mubr.msk.bf16.mxu0 %vm3741_vm1, %v3740_v12  ;;  %v1039_v42 = vsel %vm1037_vm3, %v972_v41, 0 }
 0x197   :  { %3261 = vmatprep.subr.bf16.mxu0 %v3740_v12  ;;  %3196 = vmatpush3.bf16.msra.mxu1 %v1039_v42 }
 0x198   :  { %3207 = vmatprep.subr.bf16.mxu1 %v3740_v12 }
 0x1bc   :  { %v1547_v55 = vpop.permute.xlu1 %1546 }
 0x1bd   :  { %3252 = vmatmul.mubr.msk.bf16.vlgmr.msra.gmra.mxu0 %vm974_vm0, %v1547_v55 }
 0x1be   :  { %3262 = vmatpush3.bf16.xpose.msra.mxu0 %v1676_v54  ;;  %3263 = vmatprep.mubr.msk.bf16.mxu0 %vm3741_vm1, %v3740_v12 }
 0x1bf   :  { %3273 = vmatprep.subr.bf16.mxu0 %v3740_v12 }
 0x1c0   :  { %v1782_v60 = vpop.permute.xlu1 %1781 }
 0x1c5   :  { %3264 = vmatmul.mubr.msk.bf16.vlgmr.msra.gmra.mxu0 %vm974_vm0, %v969_v45 }
 0x1c6   :  { %3274 = vmatpush3.bf16.xpose.msra.mxu0 %v1789_v57  ;;  %3275 = vmatprep.mubr.msk.bf16.mxu0 %vm3741_vm1, %v3740_v12 }
 0x1ca   :  { %v1015_v58 = vpop.f32.mrf.mxu0 }
 0x1cb   :  { %v1022_v59 = vsel %vm1021_vm2, %v1015_v58, -inf }
 0x1cc   :  { %1023 = vmax.xlane.f32.xlu0 %v1022_v59  ;;  %v3193_v61 = vpop.f32.mrf.mxu0 }
 0x1cd   :  { %3276 = vmatmul.mubr.msk.bf16.vlgmr.msra.gmra.mxu0 %vm974_vm0, %v1782_v60  ;;  %v2997_v60 = vcombine.low %v972_v41, %v972_v41 }
 0x1ce   :  { %v1018_v62 = vpop.f32.mrf.mxu0 }
 0x1d0   :  { %v3194_v63 = vpop.f32.mrf.mxu0 }
 0x23d   :  { %v1132_v0 = vpop.f32.mrf.mxu0 }
 0x23e   :  { %v1138_v1 = vsel %vm1021_vm2, %v1132_v0, -inf }
 0x23f   :  { %1139 = vmax.xlane.f32.xlu1 %v1138_v1  ;;  %v3205_v2 = vpop.f32.mrf.mxu0 }
 0x241   :  { %v1135_v3 = vpop.f32.mrf.mxu0 }
 0x243   :  { %v3206_v4 = vpop.f32.mrf.mxu0 }
 0x245   :  { %v1252_v5 = vpop.f32.mrf.mxu0 }
 0x246   :  { %v1258_v6 = vsel %vm1021_vm2, %v1252_v5, -inf }
 0x247   :  { %1259 = vmax.xlane.f32.xlu0 %v1258_v6  ;;  %v3217_v7 = vpop.f32.mrf.mxu0 }
 0x249   :  { %v1255_v10 = vpop.f32.mrf.mxu0 }
 0x24b   :  { %v3218_v11 = vpop.f32.mrf.mxu0 }
 0x24d   :  { %v1365_v13 = vpop.f32.mrf.mxu0 }
 0x24e   :  { %v1371_v14 = vsel %vm1021_vm2, %v1365_v13, -inf }
 0x24f   :  { %1372 = vmax.xlane.f32.xlu0 %v1371_v14  ;;  %v3229_v15 = vpop.f32.mrf.mxu0 }
 0x251   :  { %v1368_v16 = vpop.f32.mrf.mxu0 }
 0x253   :  { %v3230_v8 = vpop.f32.mrf.mxu0 }
 0x255   :  { %v4249_v17 = vpop.f32.mrf.mxu0  ;;  %v1024_v21 = vpop.xlane.xlu0 %1023 }
 0x256   :  { %v1485_v9 = vsel %vm1021_vm2, %v4249_v17, -inf  ;;  %v1025_v22 = vsub.f32 %v1015_v58, %v1024_v21  ;;  %v3002_v58 = vcombine.high %v972_v41, %v972_v41  ;;  %v973_v21 = vld [vmem:[%s4749_s2 + $0x8] sm:$0xff] }
 0x257   :  { %1486 = vmax.xlane.f32.xlu1 %v1485_v9  ;;  %v3241_v18 = vpop.f32.mrf.mxu0  ;;  %v1501_v41 = vsel %vm1037_vm3, %v973_v21, 0 }
 0x258   :  { %v1026_v23 = vmul.f32 1.442695, %v1025_v22  ;;  %v3011_v22 = vcombine.low %v973_v21, %v973_v21 }
 0x259   :  { %v1482_v19 = vpop.f32.mrf.mxu0 }
 0x25a   :  { %3685 = vpow2.f32 %v1026_v23  ;;  %v3016_v23 = vcombine.high %v973_v21, %v973_v21  ;;  %v3513_v21 = vld [vmem:[%s4751_s4 + $0x1e0] ss:$16 sps:$4 sm:$0xff]  }
 0x25b   :  { %v3242_v20 = vpop.f32.mrf.mxu0 }
 0x267   :  { %v4255_v31 = vpop.eup %3685 }
 0x268   :  { %v1028_v34 = vsel %vm1021_vm2, %v4255_v31, 0.0 }
 0x27d   :  { %v1593_v24 = vpop.f32.mrf.mxu0 }
 0x27e   :  { %v1599_v25 = vsel %vm1021_vm2, %v1593_v24, -inf }
 0x27f   :  { %1600 = vmax.xlane.f32.xlu0 %v1599_v25  ;;  %v3253_v26 = vpop.f32.mrf.mxu0 }
 0x281   :  { %v1596_v27 = vpop.f32.mrf.mxu0 }
 0x283   :  { %v3254_v28 = vpop.f32.mrf.mxu0 }
 0x285   :  { %v1712_v29 = vpop.f32.mrf.mxu0 }
 0x286   :  { %v1718_v30 = vsel %vm1021_vm2, %v1712_v29, -inf }
 0x287   :  { %1719 = vmax.xlane.f32.xlu1 %v1718_v30  ;;  %v3265_v32 = vpop.f32.mrf.mxu0 }
 0x288   :  { %v1276_v32 = vsel %vm1037_vm3, %v3002_v58, 0 }
 0x289   :  { %v1715_v33 = vpop.f32.mrf.mxu0 }
 0x28b   :  { %1029 = vadd.xlane.f32.xlu1 %v1028_v34  ;;  %v3266_v35 = vpop.f32.mrf.mxu0 }
 0x28d   :  { %v1825_v36 = vpop.f32.mrf.mxu0 }
 0x28e   :  { %v1831_v37 = vsel %vm1021_vm2, %v1825_v36, -inf }
 0x28f   :  { %1832 = vmax.xlane.f32.xlu0 %v1831_v37  ;;  %v3277_v38 = vpop.f32.mrf.mxu0 }
 0x291   :  { %v1828_v39 = vpop.f32.mrf.mxu0 }
 0x293   :  { %v3278_v40 = vpop.f32.mrf.mxu0 }
 0x2c8   :  { %v1140_v43 = vpop.xlane.xlu1 %1139 }
 0x2c9   :  { %v1141_v44 = vsub.f32 %v1132_v0, %v1140_v43 }
 0x2cb   :  { %v1142_v45 = vmul.f32 1.442695, %v1141_v44 }
 0x2cd   :  { %3687 = vpow2.f32 %v1142_v45 }
 0x2d0   :  { %v1260_v46 = vpop.xlane.xlu0 %1259 }
 0x2d1   :  { %v1261_v47 = vsub.f32 %v1252_v5, %v1260_v46 }
 0x2d3   :  { %v1262_v48 = vmul.f32 1.442695, %v1261_v47 }
 0x2d5   :  { %3689 = vpow2.f32 %v1262_v48 }
 0x2d8   :  { %v1373_v49 = vpop.xlane.xlu0 %1372 }
 0x2d9   :  { %v1374_v50 = vsub.f32 %v1365_v13, %v1373_v49 }
 0x2da   :  { %v3688_v51 = vpop.eup %3687 }
 0x2db   :  { %v1375_v52 = vmul.f32 1.442695, %v1374_v50  ;;  %v1144_v53 = vsel %vm1021_vm2, %v3688_v51, 0.0 }
 0x2dc   :  { %1145 = vadd.xlane.f32.xlu0 %v1144_v53 }
 0x2dd   :  { %3691 = vpow2.f32 %v1375_v52 }
 0x2e0   :  { %v1487_v59 = vpop.xlane.xlu1 %1486 }
 0x2e1   :  { %v1488_v61 = vsub.f32 %v4249_v17, %v1487_v59 }
 0x2e2   :  { %v4266_v54 = vpop.eup %3689 }
 0x2e3   :  { %v1264_v55 = vsel %vm1021_vm2, %v4266_v54, 0.0  ;;  %v1489_v62 = vmul.f32 1.442695, %v1488_v61 }
 0x2e4   :  { %1265 = vadd.xlane.f32.xlu1 %v1264_v55 }
 0x2e5   :  { %3693 = vpow2.f32 %v1489_v62 }
 0x2ea   :  { %v4270_v56 = vpop.eup %3691 }
 0x2eb   :  { %v1377_v57 = vsel %vm1021_vm2, %v4270_v56, 0.0 }
 0x2ec   :  { %1378 = vadd.xlane.f32.xlu0 %v1377_v57 }
 0x2f2   :  { %v4277_v6 = vpop.eup %3693 }
 0x2f3   :  { %v1491_v10 = vsel %vm1021_vm2, %v4277_v6, 0.0 }
 0x2f5   :  { %1383 = vrot.lane.b32.xlu1 %v3002_v58, %s3739_s17 }
 0x302   :  { %1153 = vrot.lane.b32.xlu0 %v2997_v60, %s3739_s17 }
 0x308   :  { %v1601_v63 = vpop.xlane.xlu0 %1600 }
 0x309   :  { %v1602_v0 = vsub.f32 %v1593_v24, %v1601_v63 }
 0x30b   :  { %v1603_v1 = vmul.f32 1.442695, %v1602_v0 }
 0x30d   :  { %3695 = vpow2.f32 %v1603_v1 }
 0x310   :  { %v1720_v2 = vpop.xlane.xlu1 %1719 }
 0x311   :  { %v1721_v3 = vsub.f32 %v1712_v29, %v1720_v2 }
 0x313   :  { %v1722_v4 = vmul.f32 1.442695, %v1721_v3 }
 0x314   :  { %v1030_v5 = vpop.xlane.xlu1 %1029 }
 0x315   :  { %3697 = vpow2.f32 %v1722_v4  ;;  %v3491_v4 = vld [vmem:[%s4751_s4 + $0xe4] ss:$16 sps:$4 sm:$0xff]  }
 0x316   :  { %3699 = vrcp.f32 %v1030_v5  ;;  %2683 = vmatprep.subr.bf16.mxu0 %v3491_v4  ;;  %v3492_v5 = vld [vmem:[%s4751_s4 + $0xc0] ss:$16 sps:$4 sm:$0xff]  }
 0x317   :  { %v3587_v4 = vld [vmem:[%s4751_s4 + $0x3e0] ss:$16 sps:$4 sm:$0xff]  }
 0x318   :  { %v1833_v7 = vpop.xlane.xlu0 %1832 }
 0x319   :  { %v1834_v11 = vsub.f32 %v1825_v36, %v1833_v7  ;;  %1492 = vadd.xlane.f32.xlu1 %v1491_v10  ;;  %v3497_v7 = vld [vmem:[%s4751_s4 + $0xa4] ss:$16 sps:$4 sm:$0xff]   ;;  %v3495_v10 = vld [vmem:[%s4751_s4 + $0xa0] ss:$16 sps:$4 sm:$0xff]  }
 0x31a   :  { %v4281_v13 = vpop.eup %3695 }
 0x31b   :  { %v1835_v14 = vmul.f32 1.442695, %v1834_v11  ;;  %v1605_v15 = vsel %vm1021_vm2, %v4281_v13, 0.0  ;;  %v3500_v11 = vld [vmem:[%s4751_s4 + $0x84] ss:$16 sps:$4 sm:$0xff]  }
 0x31d   :  { %3701 = vpow2.f32 %v1835_v14  ;;  %1606 = vadd.xlane.f32.xlu1 %v1605_v15  ;;  %v3503_v14 = vld [vmem:[%s4751_s4 + $0x64] ss:$16 sps:$4 sm:$0xff]   ;;  %v3501_v15 = vld [vmem:[%s4751_s4 + $0x60] ss:$16 sps:$4 sm:$0xff]  }
 0x322   :  { %v4285_v16 = vpop.eup %3697 }
 0x323   :  { %v3700_v8 = vpop.eup %3699  ;;  %v1724_v17 = vsel %vm1021_vm2, %v4285_v16, 0.0 }
 0x324   :  { %1725 = vadd.xlane.f32.xlu1 %v1724_v17  ;;  %v1032_v9 = vmul.f32 %v3700_v8, %v4255_v31  ;;  %v3504_v8 = vld [vmem:[%s4751_s4 + $0x40] ss:$16 sps:$4 sm:$0xff]   ;;  %v3509_v17 = vld [vmem:[%s4751_s4 + $0x24] ss:$16 sps:$4 sm:$0xff]  }
 0x326   :  { %v1033_v18 = vpack.c.bf16 %v1032_v9, %v1032_v9  ;;  %v3507_v9 = vld [vmem:[%s4751_s4 + $0x20] ss:$16 sps:$4 sm:$0xff]  }
 0x328   :  { %3198 = vmatmul.mubr.msk.bf16.vlgmr.msra.gmra.mxu1 %vm1021_vm2, %v1033_v18  ;;  %v3512_v18 = vld [vmem:[%s4751_s4 + $0x4] ss:$16 sps:$4 sm:$0xff]  }
 0x329   :  { %3209 = vmatprep.mubr.msk.bf16.mxu1 %vm3741_vm1, %v3740_v12 }
 0x32a   :  { %v4293_v19 = vpop.eup %3701 }
 0x32b   :  { %v1837_v20 = vsel %vm1021_vm2, %v4293_v19, 0.0 }
 0x32c   :  { %1838 = vadd.xlane.f32.xlu0 %v1837_v20  ;;  %v3515_v20 = vld [vmem:[%s4751_s4 + $0x1e4] ss:$16 sps:$4 sm:$0xff]  }
 0x335   :  { %1614 = vrot.lane.b32.xlu1 %v3011_v22, %s3739_s17  ;;  %v3518_v22 = vld [vmem:[%s4751_s4 + $0x1c4] ss:$16 sps:$4 sm:$0xff]  }
 0x339   :  { %1843 = vrot.lane.b32.xlu1 %v3016_v23, %s3739_s17 }
 0x365   :  { %v1146_v24 = vpop.xlane.xlu0 %1145 }
 0x366   :  { %3703 = vrcp.f32 %v1146_v24  ;;  %v3519_v24 = vld [vmem:[%s4751_s4 + $0x1a0] ss:$16 sps:$4 sm:$0xff]  }
 0x36d   :  { %v1266_v25 = vpop.xlane.xlu1 %1265 }
 0x36e   :  { %3705 = vrcp.f32 %v1266_v25  ;;  %v3521_v25 = vld [vmem:[%s4751_s4 + $0x1a4] ss:$16 sps:$4 sm:$0xff]  }
 0x371   :  { %v1384_v35 = vpop.permute.xlu1 %1383 }
 0x372   :  { %v1389_v38 = vsel %vm1037_vm3, %v1384_v35, 0 }
 0x373   :  { %v3704_v26 = vpop.eup %3703 }
 0x374   :  { %v1148_v28 = vmul.f32 %v3704_v26, %v3688_v51  ;;  %v3524_v26 = vld [vmem:[%s4751_s4 + $0x184] ss:$16 sps:$4 sm:$0xff]  }
 0x375   :  { %v1379_v27 = vpop.xlane.xlu0 %1378 }
 0x376   :  { %3707 = vrcp.f32 %v1379_v27  ;;  %v1149_v31 = vpack.c.bf16 %v1148_v28, %v1148_v28  ;;  %v3522_v27 = vld [vmem:[%s4751_s4 + $0x180] ss:$16 sps:$4 sm:$0xff]   ;;  %v3527_v28 = vld [vmem:[%s4751_s4 + $0x164] ss:$16 sps:$4 sm:$0xff]  }
 0x379   :  { %v1154_v29 = vpop.permute.xlu0 %1153 }
 0x37a   :  { %v1159_v30 = vsel %vm1037_vm3, %v1154_v29, 0  ;;  %v3525_v29 = vld [vmem:[%s4751_s4 + $0x160] ss:$16 sps:$4 sm:$0xff]  }
 0x37b   :  { %3208 = vmatpush3.bf16.msra.mxu1 %v1159_v30  ;;  %v3706_v33 = vpop.eup %3705  ;;  %v3530_v30 = vld [vmem:[%s4751_s4 + $0x144] ss:$16 sps:$4 sm:$0xff]  }
 0x37c   :  { %3219 = vmatprep.subr.bf16.mxu1 %v3740_v12  ;;  %v1268_v34 = vmul.f32 %v3706_v33, %v4266_v54  ;;  %v1736_v54 = vsel %vm1037_vm3, %v3016_v23, 0  ;;  %v3516_v23 = vld [vmem:[%s4751_s4 + $0x1c0] ss:$16 sps:$4 sm:$0xff]  }
 0x37e   :  { %3210 = vmatmul.mubr.msk.bf16.vlgmr.msra.gmra.mxu1 %vm1021_vm2, %v1149_v31  ;;  %v1269_v36 = vpack.c.bf16 %v1268_v34, %v1268_v34  ;;  %v3528_v34 = vld [vmem:[%s4751_s4 + $0x140] ss:$16 sps:$4 sm:$0xff]  }
 0x37f   :  { %3220 = vmatpush3.bf16.msra.mxu1 %v1276_v32  ;;  %3221 = vmatprep.mubr.msk.bf16.mxu1 %vm3741_vm1, %v3740_v12 }
 0x380   :  { %3231 = vmatprep.subr.bf16.mxu1 %v3740_v12 }
 0x383   :  { %v3708_v37 = vpop.eup %3707 }
 0x384   :  { %v1381_v39 = vmul.f32 %v3708_v37, %v4270_v56  ;;  %v3531_v37 = vld [vmem:[%s4751_s4 + $0x120] ss:$16 sps:$4 sm:$0xff]  }
 0x386   :  { %3222 = vmatmul.mubr.msk.bf16.vlgmr.msra.gmra.mxu1 %vm1021_vm2, %v1269_v36  ;;  %v1382_v40 = vpack.c.bf16 %v1381_v39, %v1381_v39  ;;  %v3536_v39 = vld [vmem:[%s4751_s4 + $0x104] ss:$16 sps:$4 sm:$0xff]  }
 0x387   :  { %3232 = vmatpush3.bf16.msra.mxu1 %v1389_v38  ;;  %3233 = vmatprep.mubr.msk.bf16.mxu1 %vm3741_vm1, %v3740_v12  ;;  %v3533_v38 = vld [vmem:[%s4751_s4 + $0x124] ss:$16 sps:$4 sm:$0xff]  }
 0x388   :  { %3243 = vmatprep.subr.bf16.mxu1 %v3740_v12 }
 0x38e   :  { %3234 = vmatmul.mubr.msk.bf16.vlgmr.msra.gmra.mxu1 %vm1021_vm2, %v1382_v40  ;;  %v3537_v40 = vld [vmem:[%s4751_s4 + $0x2e0] ss:$16 sps:$4 sm:$0xff]  }
 0x38f   :  { %3244 = vmatpush3.bf16.msra.mxu1 %v1501_v41  ;;  %3245 = vmatprep.mubr.msk.bf16.mxu1 %vm3741_vm1, %v3740_v12  ;;  %v3539_v41 = vld [vmem:[%s4751_s4 + $0x2e4] ss:$16 sps:$4 sm:$0xff]  }
 0x390   :  { %3255 = vmatprep.subr.bf16.mxu1 %v3740_v12 }
 0x3a2   :  { %v1493_v42 = vpop.xlane.xlu1 %1492 }
 0x3a3   :  { %3709 = vrcp.f32 %v1493_v42 }
 0x3a6   :  { %v1607_v43 = vpop.xlane.xlu1 %1606 }
 0x3a7   :  { %3711 = vrcp.f32 %v1607_v43 }
 0x3ad   :  { %v1726_v44 = vpop.xlane.xlu1 %1725 }
 0x3ae   :  { %3713 = vrcp.f32 %v1726_v44 }
 0x3b0   :  { %v3710_v45 = vpop.eup %3709 }
 0x3b1   :  { %v1615_v46 = vpop.permute.xlu1 %1614  ;;  %v1495_v47 = vmul.f32 %v3710_v45, %v4277_v6  ;;  %v3494_v6 = vld [vmem:[%s4751_s4 + $0xc4] ss:$16 sps:$4 sm:$0xff]   ;;  %v3534_v45 = vld [vmem:[%s4751_s4 + $0x100] ss:$16 sps:$4 sm:$0xff]  }
 0x3b2   :  { %v1620_v48 = vsel %vm1037_vm3, %v1615_v46, 0 }
 0x3b3   :  { %v1496_v49 = vpack.c.bf16 %v1495_v47, %v1495_v47 }
 0x3b4   :  { %v3712_v50 = vpop.eup %3711 }
 0x3b5   :  { %3246 = vmatmul.mubr.msk.bf16.vlgmr.msra.gmra.mxu1 %vm1021_vm2, %v1496_v49  ;;  %v1839_v51 = vpop.xlane.xlu0 %1838  ;;  %v1609_v52 = vmul.f32 %v3712_v50, %v4281_v13  ;;  %v1844_v57 = vpop.permute.xlu1 %1843  ;;  %v3498_v13 = vld [vmem:[%s4751_s4 + $0x80] ss:$16 sps:$4 sm:$0xff]  }
 0x3b6   :  { %3256 = vmatpush3.bf16.msra.mxu1 %v1620_v48  ;;  %3257 = vmatprep.mubr.msk.bf16.mxu1 %vm3741_vm1, %v3740_v12  ;;  %3715 = vrcp.f32 %v1839_v51  ;;  %v1849_v58 = vsel %vm1037_vm3, %v1844_v57, 0  ;;  %v3544_v48 = vld [vmem:[%s4751_s4 + $0xec] ss:$16 sps:$4 sm:$0xff]   ;;  %v3553_v57 = vld [vmem:[%s4751_s4 + $0x2a4] ss:$16 sps:$4 sm:$0xff]  }
 0x3b7   :  { %3267 = vmatprep.subr.bf16.mxu1 %v3740_v12  ;;  %v1610_v53 = vpack.c.bf16 %v1609_v52, %v1609_v52  ;;  %v3545_v52 = vld [vmem:[%s4751_s4 + $0x2c0] ss:$16 sps:$4 sm:$0xff]  }
 0x3bb   :  { %v3714_v55 = vpop.eup %3713 }
 0x3bc   :  { %v1728_v56 = vmul.f32 %v3714_v55, %v4285_v16  ;;  %v3506_v16 = vld [vmem:[%s4751_s4 + $0x44] ss:$16 sps:$4 sm:$0xff]  }
 0x3bd   :  { %3258 = vmatmul.mubr.msk.bf16.vlgmr.msra.gmra.mxu1 %vm1021_vm2, %v1610_v53  ;;  %v3547_v53 = vld [vmem:[%s4751_s4 + $0x2c4] ss:$16 sps:$4 sm:$0xff]  }
 0x3be   :  { %3268 = vmatpush3.bf16.msra.mxu1 %v1736_v54  ;;  %3269 = vmatprep.mubr.msk.bf16.mxu1 %vm3741_vm1, %v3740_v12  ;;  %v1729_v59 = vpack.c.bf16 %v1728_v56, %v1728_v56  ;;  %v3551_v56 = vld [vmem:[%s4751_s4 + $0x2a0] ss:$16 sps:$4 sm:$0xff]  }
 0x3bf   :  { %3279 = vmatprep.subr.bf16.mxu1 %v3740_v12 }
 0x3c3   :  { %v3716_v60 = vpop.eup %3715 }
 0x3c4   :  { %v1841_v61 = vmul.f32 %v3716_v60, %v4293_v19  ;;  %v3510_v19 = vld [vmem:[%s4751_s4] ss:$16 sps:$4 sm:$0xff]  }
 0x3c5   :  { %3270 = vmatmul.mubr.msk.bf16.vlgmr.msra.gmra.mxu1 %vm1021_vm2, %v1729_v59  ;;  %v3559_v59 = vld [vmem:[%s4751_s4 + $0x284] ss:$16 sps:$4 sm:$0xff]   ;;  %v3563_v60 = vld [vmem:[%s4751_s4 + $0x260] ss:$16 sps:$4 sm:$0xff]  }
 0x3c6   :  { %3280 = vmatpush3.bf16.msra.mxu1 %v1849_v58  ;;  %3281 = vmatprep.mubr.msk.bf16.mxu1 %vm3741_vm1, %v3740_v12  ;;  %v1842_v62 = vpack.c.bf16 %v1841_v61, %v1841_v61  ;;  %v3489_v12 = vld [vmem:[%s4751_s4 + $0xe0] ss:$16 sps:$4 sm:$0xff]   ;;  %v3565_v61 = vld [vmem:[%s4751_s4 + $0x264] ss:$16 sps:$4 sm:$0xff]  }
 0x3c7   :  { %2684 = vmatpush1.bf16.msra.mxu0 %v3489_v12  ;;  %2724 = vmatprep.subr.bf16.mxu1 %v3539_v41  ;;  %v3557_v58 = vld [vmem:[%s4751_s4 + $0x280] ss:$16 sps:$4 sm:$0xff]   ;;  %v3589_v12 = vld [vmem:[%s4751_s4 + $0x3e4] ss:$16 sps:$4 sm:$0xff]  }
 0x3c8   :  { %2685 = vmatprep.subr.bf16.mxu0 %v3494_v6  ;;  %v3595_v6 = vld [vmem:[%s4751_s4 + $0x3c4] ss:$16 sps:$4 sm:$0xff]  }
 0x3cb   :  { %2686 = vmatpush1.bf16.msra.mxu0 %v3492_v5  ;;  %v3593_v5 = vld [vmem:[%s4751_s4 + $0x3c0] ss:$16 sps:$4 sm:$0xff]  }
 0x3cc   :  { %2687 = vmatprep.subr.bf16.mxu0 %v3497_v7  ;;  %v3599_v7 = vld [vmem:[%s4751_s4 + $0x3a0] ss:$16 sps:$4 sm:$0xff]  }
 0x3cd   :  { %3282 = vmatmul.mubr.msk.bf16.vlgmr.msra.gmra.mxu1 %vm1021_vm2, %v1842_v62  ;;  %v3569_v62 = vld [vmem:[%s4751_s4 + $0x240] ss:$16 sps:$4 sm:$0xff]  }
 0x3ce   :  { %2725 = vmatpush1.bf16.msra.mxu1 %v3537_v40 }
 0x3cf   :  { %2688 = vmatpush1.bf16.msra.mxu0 %v3495_v10  ;;  %2726 = vmatprep.subr.bf16.mxu1 %v3547_v53  ;;  %v3601_v10 = vld [vmem:[%s4751_s4 + $0x3a4] ss:$16 sps:$4 sm:$0xff]   ;;  %v3568_v53 = vld [vmem:[%s4751_s4 + $0x6c] ss:$16 sps:$4 sm:$0xff]  }
 0x3d0   :  { %2689 = vmatprep.subr.bf16.mxu0 %v3500_v11 }
 0x3d2   :  { %2727 = vmatpush1.bf16.msra.mxu1 %v3545_v52  ;;  %v3560_v52 = vld [vmem:[%s4751_s4 + $0x88] ss:$16 sps:$4 sm:$0xff]  }
 0x3d3   :  { %2690 = vmatpush1.bf16.msra.mxu0 %v3498_v13  ;;  %2728 = vmatprep.subr.bf16.mxu1 %v3553_v57  ;;  %v3580_v57 = vld [vmem:[%s4751_s4 + $0x2c] ss:$16 sps:$4 sm:$0xff]  }
 0x3d4   :  { %2691 = vmatprep.subr.bf16.mxu0 %v3503_v14 }
 0x3d6   :  { %2729 = vmatpush1.bf16.msra.mxu1 %v3551_v56  ;;  %v3572_v56 = vld [vmem:[%s4751_s4 + $0x48] ss:$16 sps:$4 sm:$0xff]  }
 0x3d7   :  { %2692 = vmatpush1.bf16.msra.mxu0 %v3501_v15  ;;  %2730 = vmatprep.subr.bf16.mxu1 %v3559_v59  ;;  %v3605_v15 = vld [vmem:[%s4751_s4 + $0x380] ss:$16 sps:$4 sm:$0xff]   ;;  %v3586_v59 = vld [vmem:[%s4751_s4 + $0xc] ss:$16 sps:$4 sm:$0xff]  }
 0x3d8   :  { %2693 = vmatprep.subr.bf16.mxu0 %v3506_v16  ;;  %v3607_v16 = vld [vmem:[%s4751_s4 + $0x384] ss:$16 sps:$4 sm:$0xff]  }
 0x3da   :  { %2731 = vmatpush1.bf16.msra.mxu1 %v3557_v58  ;;  %v3578_v58 = vld [vmem:[%s4751_s4 + $0x28] ss:$16 sps:$4 sm:$0xff]  }
 0x3db   :  { %2694 = vmatpush1.bf16.msra.mxu0 %v3504_v8  ;;  %2732 = vmatprep.subr.bf16.mxu1 %v3565_v61  ;;  %v3592_v61 = vld [vmem:[%s4751_s4 + $0x1ec] ss:$16 sps:$4 sm:$0xff]  }
 0x3dc   :  { %2695 = vmatprep.subr.bf16.mxu0 %v3509_v17 }
 0x3de   :  { %2733 = vmatpush1.bf16.msra.mxu1 %v3563_v60  ;;  %v3584_v60 = vld [vmem:[%s4751_s4 + $0x8] ss:$16 sps:$4 sm:$0xff]  }
 0x3df   :  { %2696 = vmatpush1.bf16.msra.mxu0 %v3507_v9  ;;  %v3611_v9 = vld [vmem:[%s4751_s4 + $0x360] ss:$16 sps:$4 sm:$0xff]  }
 0x3e0   :  { %2697 = vmatprep.subr.bf16.mxu0 %v3512_v18  ;;  %v3613_v18 = vld [vmem:[%s4751_s4 + $0x364] ss:$16 sps:$4 sm:$0xff]  }
 0x3e3   :  { %2698 = vmatpush1.bf16.msra.mxu0 %v3510_v19 }
 0x3e4   :  { %2699 = vmatprep.subr.bf16.mxu0 %v3515_v20 }
 0x3e7   :  { %2700 = vmatpush2.bf16.msra.mxu0 %v3513_v21 }
 0x3e8   :  { %v1075_v63 = vpop.f32.mrf.mxu1  ;;  %2701 = vmatprep.subr.bf16.mxu0 %v3518_v22  ;;  %v3617_v22 = vld [vmem:[%s4751_s4 + $0x340] ss:$16 sps:$4 sm:$0xff]  }
 0x3e9   :  { %v1081_v0 = vpack.c.bf16 %v1075_v63, %v1075_v63  ;;  %v3571_v63 = vld [vmem:[%s4751_s4 + $0x244] ss:$16 sps:$4 sm:$0xff]  }
 0x3ea   :  { %v3199_v1 = vpop.f32.mrf.mxu1  ;;  %2734 = vmatprep.subr.bf16.mxu1 %v3571_v63  ;;  %v3598_v63 = vld [vmem:[%s4751_s4 + $0x1cc] ss:$16 sps:$4 sm:$0xff]  }
 0x3eb   :  { %1083 = vst.msk [vmem:[#allocation2] sm:$0xf] %vm1082_vm4, %v1081_v0  ;;  %2702 = vmatpush2.bf16.msra.mxu0 %v3516_v23  ;;  %2735 = vmatpush1.bf16.msra.mxu1 %v3569_v62  ;;  %v3575_v0 = vld [vmem:[%s4751_s4 + $0x220] ss:$16 sps:$4 sm:$0xff]   ;;  %v3577_v1 = vld [vmem:[%s4751_s4 + $0x224] ss:$16 sps:$4 sm:$0xff]  }
 0x3ec   :  { %v1078_v2 = vpop.f32.mrf.mxu1  ;;  %2703 = vmatprep.subr.bf16.mxu0 %v3521_v25  ;;  %2736 = vmatprep.subr.bf16.mxu1 %v3577_v1  ;;  %v3619_v23 = vld [vmem:[%s4751_s4 + $0x344] ss:$16 sps:$4 sm:$0xff]   ;;  %v3590_v62 = vld [vmem:[%s4751_s4 + $0x1e8] ss:$16 sps:$4 sm:$0xff]   ;;  %v3604_v1 = vld [vmem:[%s4751_s4 + $0x1ac] ss:$16 sps:$4 sm:$0xff]  }
 0x3ed   :  { %v3581_v2 = vld [vmem:[%s4751_s4 + $0x200] ss:$16 sps:$4 sm:$0xff]  }
 0x3ee   :  { %v3200_v3 = vpop.f32.mrf.mxu1 }
 0x3ef   :  { %2704 = vmatpush2.bf16.msra.mxu0 %v3519_v24  ;;  %2737 = vmatpush1.bf16.msra.mxu1 %v3575_v0  ;;  %v3583_v3 = vld [vmem:[%s4751_s4 + $0x204] ss:$16 sps:$4 sm:$0xff]   ;;  %v3596_v0 = vld [vmem:[%s4751_s4 + $0x1c8] ss:$16 sps:$4 sm:$0xff]  }
 0x3f0   :  { %2705 = vmatprep.subr.bf16.mxu0 %v3524_v26  ;;  %2738 = vmatprep.subr.bf16.mxu1 %v3583_v3  ;;  %v3623_v26 = vld [vmem:[%s4751_s4 + $0x320] ss:$16 sps:$4 sm:$0xff]   ;;  %v3602_v3 = vld [vmem:[%s4751_s4 + $0x1a8] ss:$16 sps:$4 sm:$0xff]  }
 0x3f3   :  { %2706 = vmatpush2.bf16.msra.mxu0 %v3522_v27  ;;  %2739 = vmatpush1.bf16.msra.mxu1 %v3581_v2  ;;  %v3625_v27 = vld [vmem:[%s4751_s4 + $0x324] ss:$16 sps:$4 sm:$0xff]  }
 0x3f4   :  { %2707 = vmatprep.subr.bf16.mxu0 %v3527_v28  ;;  %2740 = vmatprep.subr.bf16.mxu1 %v3589_v12  ;;  %v3608_v12 = vld [vmem:[%s4751_s4 + $0x188] ss:$16 sps:$4 sm:$0xff]  }
 0x3f7   :  { %2708 = vmatpush2.bf16.msra.mxu0 %v3525_v29  ;;  %2741 = vmatpush2.bf16.msra.mxu1 %v3587_v4  ;;  %v3610_v4 = vld [vmem:[%s4751_s4 + $0x18c] ss:$16 sps:$4 sm:$0xff]  }
 0x3f8   :  { %2709 = vmatprep.subr.bf16.mxu0 %v3530_v30  ;;  %2742 = vmatprep.subr.bf16.mxu1 %v3595_v6  ;;  %v3614_v6 = vld [vmem:[%s4751_s4 + $0x168] ss:$16 sps:$4 sm:$0xff]  }
 0x3fb   :  { %2710 = vmatpush2.bf16.msra.mxu0 %v3528_v34  ;;  %2743 = vmatpush2.bf16.msra.mxu1 %v3593_v5  ;;  %v3616_v5 = vld [vmem:[%s4751_s4 + $0x16c] ss:$16 sps:$4 sm:$0xff]  }
 0x3fc   :  { %2711 = vmatprep.subr.bf16.mxu0 %v3533_v38  ;;  %2744 = vmatprep.subr.bf16.mxu1 %v3601_v10  ;;  %v3620_v10 = vld [vmem:[%s4751_s4 + $0x148] ss:$16 sps:$4 sm:$0xff]  }
 0x3ff   :  { %2712 = vmatpush2.bf16.msra.mxu0 %v3531_v37  ;;  %2745 = vmatpush2.bf16.msra.mxu1 %v3599_v7  ;;  %v3622_v7 = vld [vmem:[%s4751_s4 + $0x14c] ss:$16 sps:$4 sm:$0xff]  }
 0x400   :  { %2713 = vmatprep.subr.bf16.mxu0 %v3536_v39  ;;  %2746 = vmatprep.subr.bf16.mxu1 %v3607_v16  ;;  %v3632_v16 = vld [vmem:[%s4751_s4 + $0x108] ss:$16 sps:$4 sm:$0xff]  }
 0x403   :  { %2714 = vmatpush2.bf16.msra.mxu0 %v3534_v45  ;;  %2747 = vmatpush2.bf16.msra.mxu1 %v3605_v15  ;;  %v3634_v15 = vld [vmem:[%s4751_s4 + $0x10c] ss:$16 sps:$4 sm:$0xff]  }
 0x404   :  { %2765 = vmatprep.subr.bf16.mxu0 %v3544_v48  ;;  %2748 = vmatprep.subr.bf16.mxu1 %v3613_v18  ;;  %v3548_v48 = vld [vmem:[%s4751_s4 + $0xc8] ss:$16 sps:$4 sm:$0xff]  }
 0x405   :  { %v3637_v18 = vld [vmem:[%s4751_s4 + $0x2e8] ss:$16 sps:$4 sm:$0xff]  }
 0x407   :  { %2749 = vmatpush2.bf16.msra.mxu1 %v3611_v9 }
 0x408   :  { %2750 = vmatprep.subr.bf16.mxu1 %v3619_v23  ;;  %v3648_v23 = vld [vmem:[%s4751_s4 + $0x28c] ss:$16 sps:$4 sm:$0xff]  }
 0x40b   :  { %2751 = vmatpush2.bf16.msra.mxu1 %v3617_v22  ;;  %v3643_v22 = vld [vmem:[%s4751_s4 + $0x2a8] ss:$16 sps:$4 sm:$0xff]  }
 0x40c   :  { %2752 = vmatprep.subr.bf16.mxu1 %v3625_v27  ;;  %v3654_v27 = vld [vmem:[%s4751_s4 + $0x24c] ss:$16 sps:$4 sm:$0xff]  }
 0x40f   :  { %2753 = vmatpush2.bf16.msra.mxu1 %v3623_v26  ;;  %v3649_v26 = vld [vmem:[%s4751_s4 + $0x268] ss:$16 sps:$4 sm:$0xff]  }
 0x43e   :  { %v1195_v31 = vpop.f32.mrf.mxu1 }
 0x43f   :  { %v3153_v32 = vpack.c.bf16 %v1195_v31, %v1195_v31  ;;  %v3629_v31 = vld [vmem:[%s4751_s4 + $0x300] ss:$16 sps:$4 sm:$0xff]  }
 0x440   :  { %v3211_v33 = vpop.f32.mrf.mxu1 }
 0x441   :  { %1205 = vrot.lane.b32.xlu1 %v3153_v32, %s3739_s17  ;;  %v3631_v32 = vld [vmem:[%s4751_s4 + $0x304] ss:$16 sps:$4 sm:$0xff]  }
 0x442   :  { %v1198_v35 = vpop.f32.mrf.mxu1  ;;  %2754 = vmatprep.subr.bf16.mxu1 %v3631_v32  ;;  %v3658_v32 = vld [vmem:[%s4751_s4 + $0x208] ss:$16 sps:$4 sm:$0xff]  }
 0x443   :  { %2755 = vmatpush2.bf16.msra.mxu1 %v3629_v31  ;;  %v3639_v35 = vld [vmem:[%s4751_s4 + $0x2ec] ss:$16 sps:$4 sm:$0xff]  }
 0x444   :  { %v3212_v36 = vpop.f32.mrf.mxu1  ;;  %2806 = vmatprep.subr.bf16.mxu1 %v3639_v35  ;;  %v3660_v31 = vld [vmem:[%s4751_s4 + $0x20c] ss:$16 sps:$4 sm:$0xff]  }
 0x445   :  { %v3666_v35 = vld [vmem:[%s4751_s4 + $0x3cc] ss:$16 sps:$4 sm:$0xff]  }
 0x446   :  { %v1312_v42 = vpop.f32.mrf.mxu1 }
 0x447   :  { %v1318_v43 = vpack.c.bf16 %v1312_v42, %v1312_v42 }
 0x448   :  { %v3223_v44 = vpop.f32.mrf.mxu1 }
 0x449   :  { %1319 = vst.msk [vmem:[#allocation2 + $0x4] sm:$0xf] %vm1082_vm4, %v1318_v43 }
 0x44a   :  { %v1315_v46 = vpop.f32.mrf.mxu1 }
 0x44b   :  { %v3542_v46 = vld [vmem:[%s4751_s4 + $0xe8] ss:$16 sps:$4 sm:$0xff]  }
 0x44c   :  { %v3224_v47 = vpop.f32.mrf.mxu1 }
 0x44d   :  { %v3550_v47 = vld [vmem:[%s4751_s4 + $0xcc] ss:$16 sps:$4 sm:$0xff]  }
 0x44e   :  { %v1425_v49 = vpop.f32.mrf.mxu1 }
 0x44f   :  { %v3154_v50 = vpack.c.bf16 %v1425_v49, %v1425_v49  ;;  %v3556_v49 = vld [vmem:[%s4751_s4 + $0xac] ss:$16 sps:$4 sm:$0xff]  }
 0x450   :  { %v3235_v51 = vpop.f32.mrf.mxu1 }
 0x451   :  { %1435 = vrot.lane.b32.xlu1 %v3154_v50, %s3739_s17  ;;  %v3554_v50 = vld [vmem:[%s4751_s4 + $0xa8] ss:$16 sps:$4 sm:$0xff]   ;;  %v3562_v51 = vld [vmem:[%s4751_s4 + $0x8c] ss:$16 sps:$4 sm:$0xff]  }
 0x452   :  { %v1428_v54 = vpop.f32.mrf.mxu1 }
 0x453   :  { %v3566_v54 = vld [vmem:[%s4751_s4 + $0x68] ss:$16 sps:$4 sm:$0xff]  }
 0x454   :  { %v3236_v55 = vpop.f32.mrf.mxu1 }
 0x455   :  { %v3574_v55 = vld [vmem:[%s4751_s4 + $0x4c] ss:$16 sps:$4 sm:$0xff]  }
 0x475   :  { %v1537_v11 = vpop.f32.mrf.mxu1 }
 0x476   :  { %v1543_v13 = vpack.c.bf16 %v1537_v11, %v1537_v11  ;;  %v3628_v11 = vld [vmem:[%s4751_s4 + $0x12c] ss:$16 sps:$4 sm:$0xff]  }
 0x477   :  { %v3247_v14 = vpop.f32.mrf.mxu1 }
 0x478   :  { %1544 = vst.msk [vmem:[#allocation2 + $0x8] sm:$0xf] %vm1082_vm4, %v1543_v13  ;;  %v3626_v14 = vld [vmem:[%s4751_s4 + $0x128] ss:$16 sps:$4 sm:$0xff]  }
 0x479   :  { %v1540_v8 = vpop.f32.mrf.mxu1 }
 0x47b   :  { %v3248_v17 = vpop.f32.mrf.mxu1 }
 0x47d   :  { %v1656_v19 = vpop.f32.mrf.mxu1 }
 0x47e   :  { %v3155_v20 = vpack.c.bf16 %v1656_v19, %v1656_v19  ;;  %v3642_v19 = vld [vmem:[%s4751_s4 + $0x2cc] ss:$16 sps:$4 sm:$0xff]  }
 0x47f   :  { %v3259_v21 = vpop.f32.mrf.mxu1 }
 0x480   :  { %1666 = vrot.lane.b32.xlu1 %v3155_v20, %s3739_s17  ;;  %v3640_v20 = vld [vmem:[%s4751_s4 + $0x2c8] ss:$16 sps:$4 sm:$0xff]   ;;  %v3645_v21 = vld [vmem:[%s4751_s4 + $0x2ac] ss:$16 sps:$4 sm:$0xff]  }
 0x481   :  { %v1659_v24 = vpop.f32.mrf.mxu1 }
 0x482   :  { %v3646_v24 = vld [vmem:[%s4751_s4 + $0x288] ss:$16 sps:$4 sm:$0xff]  }
 0x483   :  { %v3260_v25 = vpop.f32.mrf.mxu1 }
 0x484   :  { %v3651_v25 = vld [vmem:[%s4751_s4 + $0x26c] ss:$16 sps:$4 sm:$0xff]  }
 0x485   :  { %v1772_v28 = vpop.f32.mrf.mxu1 }
 0x486   :  { %v1778_v29 = vpack.c.bf16 %v1772_v28, %v1772_v28  ;;  %v3652_v28 = vld [vmem:[%s4751_s4 + $0x248] ss:$16 sps:$4 sm:$0xff]  }
 0x487   :  { %v3271_v30 = vpop.f32.mrf.mxu1 }
 0x488   :  { %1779 = vst.msk [vmem:[#allocation2 + $0xc] sm:$0xf] %vm1082_vm4, %v1778_v29  ;;  %v3657_v29 = vld [vmem:[%s4751_s4 + $0x22c] ss:$16 sps:$4 sm:$0xff]   ;;  %v3655_v30 = vld [vmem:[%s4751_s4 + $0x228] ss:$16 sps:$4 sm:$0xff]  }
 0x489   :  { %v1775_v33 = vpop.f32.mrf.mxu1 }
 0x48a   :  { %v3663_v33 = vld [vmem:[%s4751_s4 + $0x3ec] ss:$16 sps:$4 sm:$0xff]  }
 0x48b   :  { %v3272_v34 = vpop.f32.mrf.mxu1 }
 0x48c   :  { %v3661_v34 = vld [vmem:[%s4751_s4 + $0x3e8] ss:$16 sps:$4 sm:$0xff]  }
 0x48d   :  { %v1885_v36 = vpop.f32.mrf.mxu1 }
 0x48e   :  { %v3156_v37 = vpack.c.bf16 %v1885_v36, %v1885_v36  ;;  %v3664_v36 = vld [vmem:[%s4751_s4 + $0x3c8] ss:$16 sps:$4 sm:$0xff]  }
 0x48f   :  { %v3283_v38 = vpop.f32.mrf.mxu1 }
 0x490   :  { %1895 = vrot.lane.b32.xlu1 %v3156_v37, %s3739_s17  ;;  %v3669_v37 = vld [vmem:[%s4751_s4 + $0x3ac] ss:$16 sps:$4 sm:$0xff]   ;;  %v3667_v38 = vld [vmem:[%s4751_s4 + $0x3a8] ss:$16 sps:$4 sm:$0xff]  }
 0x491   :  { %v1888_v39 = vpop.f32.mrf.mxu1 }
 0x492   :  { %v3672_v39 = vld [vmem:[%s4751_s4 + $0x38c] ss:$16 sps:$4 sm:$0xff]  }
 0x493   :  { %v3284_v40 = vpop.f32.mrf.mxu1 }
 0x494   :  { %v3670_v40 = vld [vmem:[%s4751_s4 + $0x388] ss:$16 sps:$4 sm:$0xff]  }
 0x4b3   :  { %v1206_v41 = vpop.permute.xlu1 %1205 }
 0x4b4   :  { %1209 = vst.msk [vmem:[#allocation2] sm:$0xf] %vm1208_vm5, %v1206_v41  ;;  %v3675_v41 = vld [vmem:[%s4751_s4 + $0x36c] ss:$16 sps:$4 sm:$0xff]  }
 0x4c3   :  { %v1436_v42 = vpop.permute.xlu1 %1435 }
 0x4c4   :  { %1438 = vst.msk [vmem:[#allocation2 + $0x4] sm:$0xf] %vm1208_vm5, %v1436_v42  ;;  %v3673_v42 = vld [vmem:[%s4751_s4 + $0x368] ss:$16 sps:$4 sm:$0xff]  }
 0x4cb   :  { %v1899_v43 = vld [vmem:[#allocation2] sm:$0xff] }
 0x4cc   :  { %v4548_v44 = vcombine.low %v1899_v43, %v1899_v43  ;;  %v3022_v45 = vcombine.high %v1899_v43, %v1899_v43  ;;  %v3678_v43 = vld [vmem:[%s4751_s4 + $0x34c] ss:$16 sps:$4 sm:$0xff]  }
 0x4ce   :  { %2715 = vmatprep.mubr.bf16.mxu0 %v3022_v45 }
 0x4cf   :  { %2716 = vmatmul.mubr.bf16.vlgmr.msra.gmra.mxu0 %v4548_v44 }
 0x4d0   :  { %2766 = vmatpush1.bf16.msra.mxu0 %v3542_v46  ;;  %2797 = vmatprep.mubr.bf16.mxu0 %v3022_v45  ;;  %v3681_v45 = vld [vmem:[%s4751_s4 + $0x32c] ss:$16 sps:$4 sm:$0xff]   ;;  %v3679_v46 = vld [vmem:[%s4751_s4 + $0x328] ss:$16 sps:$4 sm:$0xff]  }
 0x4d1   :  { %2767 = vmatprep.subr.bf16.mxu0 %v3550_v47  ;;  %v3684_v47 = vld [vmem:[%s4751_s4 + $0x30c] ss:$16 sps:$4 sm:$0xff]  }
 0x4d4   :  { %2768 = vmatpush1.bf16.msra.mxu0 %v3548_v48  ;;  %v3682_v48 = vld [vmem:[%s4751_s4 + $0x308] ss:$16 sps:$4 sm:$0xff]  }
 0x4d5   :  { %2769 = vmatprep.subr.bf16.mxu0 %v3556_v49 }
 0x4d8   :  { %2770 = vmatpush1.bf16.msra.mxu0 %v3554_v50 }
 0x4d9   :  { %2771 = vmatprep.subr.bf16.mxu0 %v3562_v51 }
 0x4dc   :  { %2772 = vmatpush1.bf16.msra.mxu0 %v3560_v52 }
 0x4dd   :  { %2773 = vmatprep.subr.bf16.mxu0 %v3568_v53 }
 0x4e0   :  { %2774 = vmatpush1.bf16.msra.mxu0 %v3566_v54 }
 0x4e1   :  { %2775 = vmatprep.subr.bf16.mxu0 %v3574_v55 }
 0x4e4   :  { %2776 = vmatpush1.bf16.msra.mxu0 %v3572_v56 }
 0x4e5   :  { %2777 = vmatprep.subr.bf16.mxu0 %v3580_v57 }
 0x4e8   :  { %2778 = vmatpush1.bf16.msra.mxu0 %v3578_v58 }
 0x4e9   :  { %2779 = vmatprep.subr.bf16.mxu0 %v3586_v59 }
 0x4ec   :  { %2780 = vmatpush1.bf16.msra.mxu0 %v3584_v60 }
 0x4ed   :  { %2781 = vmatprep.subr.bf16.mxu0 %v3592_v61 }
 0x4f0   :  { %2782 = vmatpush2.bf16.msra.mxu0 %v3590_v62 }
 0x4f1   :  { %2783 = vmatprep.subr.bf16.mxu0 %v3598_v63 }
 0x4f2   :  { %v1667_v2 = vpop.permute.xlu1 %1666 }
 0x4f3   :  { %1669 = vst.msk [vmem:[#allocation2 + $0x8] sm:$0xf] %vm1208_vm5, %v1667_v2 }
 0x4f4   :  { %2784 = vmatpush2.bf16.msra.mxu0 %v3596_v0 }
 0x4f5   :  { %2785 = vmatprep.subr.bf16.mxu0 %v3604_v1 }
 0x4f8   :  { %2786 = vmatpush2.bf16.msra.mxu0 %v3602_v3 }
 0x4f9   :  { %2787 = vmatprep.subr.bf16.mxu0 %v3610_v4 }
 0x4fc   :  { %2788 = vmatpush2.bf16.msra.mxu0 %v3608_v12 }
 0x4fd   :  { %2789 = vmatprep.subr.bf16.mxu0 %v3616_v5 }
 0x500   :  { %2790 = vmatpush2.bf16.msra.mxu0 %v3614_v6 }
 0x501   :  { %2791 = vmatprep.subr.bf16.mxu0 %v3622_v7 }
 0x502   :  { %v1896_v13 = vpop.permute.xlu1 %1895 }
 0x503   :  { %1898 = vst.msk [vmem:[#allocation2 + $0xc] sm:$0xf] %vm1208_vm5, %v1896_v13 }
 0x504   :  { %2792 = vmatpush2.bf16.msra.mxu0 %v3620_v10 }
 0x505   :  { %2793 = vmatprep.subr.bf16.mxu0 %v3628_v11 }
 0x508   :  { %2794 = vmatpush2.bf16.msra.mxu0 %v3626_v14 }
 0x509   :  { %2795 = vmatprep.subr.bf16.mxu0 %v3634_v15 }
 0x50a   :  { %v1900_v8 = vld [vmem:[#allocation2 + $0x8] sm:$0xff] }
 0x50b   :  { %v4646_v17 = vcombine.low %v1900_v8, %v1900_v8  ;;  %v3024_v9 = vcombine.high %v1900_v8, %v1900_v8 }
 0x50c   :  { %2796 = vmatpush2.bf16.msra.mxu0 %v3632_v16 }
 0x50d   :  { %2756 = vmatprep.mubr.bf16.mxu1 %v3024_v9 }
 0x50e   :  { %2757 = vmatmul.mubr.bf16.vlgmr.msra.gmra.mxu1 %v4646_v17 }
 0x50f   :  { %2798 = vmatmul.mubr.bf16.vlgmr.msra.gmra.mxu0 %v4548_v44  ;;  %2807 = vmatpush1.bf16.msra.mxu1 %v3637_v18  ;;  %v3676_v44 = vld [vmem:[%s4751_s4 + $0x348] ss:$16 sps:$4 sm:$0xff]   ;;  %s3742_s4 = smov [#allocation3]  }
 0x510   :  { %2838 = vmatprep.mubr.bf16.mxu1 %v3024_v9  ;;  %2808 = vmatprep.subr.bf16.mxu1 %v3642_v19  ;;  %s2857_s0 = sshll.u32 %s3742_s4, 4  ;;  %s2858_s0 = int_to_ptr.vmem [resolvable:$true] %s2857_s0 }
 0x511   :  { %s3717_s2 = scalar_lea.vmem %s2858_s0, 512  ;;  %p3722_p1 = scmp.lt.s32.totalorder %s2858_s0, %s2858_s0 }
 0x512   :  { %p3718_p0 = scmp.ne.s32.totalorder %s2858_s0, %s3717_s2  ;;  %p3723_p2 = scmp.lt.s32.totalorder %s3717_s2, %s3717_s2 }
 0x513   :  { %2809 = vmatpush1.bf16.msra.mxu1 %v3640_v20 }
 0x514   :  { %2810 = vmatprep.subr.bf16.mxu1 %v3645_v21  ;;  %p3724_p3 = por %p3723_p2, %p3722_p1 }
 0x516   :  { %p3725_p4 = pnand %p3724_p3, %p3718_p0 }
 0x517   :  { %2811 = vmatpush1.bf16.msra.mxu1 %v3643_v22 }
 0x518   :  { %2812 = vmatprep.subr.bf16.mxu1 %v3648_v23 }
 0x51b   :  { %2813 = vmatpush1.bf16.msra.mxu1 %v3646_v24 }
 0x51c   :  { %2814 = vmatprep.subr.bf16.mxu1 %v3651_v25 }
 0x51f   :  { %2815 = vmatpush1.bf16.msra.mxu1 %v3649_v26 }
 0x520   :  { %2816 = vmatprep.subr.bf16.mxu1 %v3654_v27 }
 0x523   :  { %2817 = vmatpush1.bf16.msra.mxu1 %v3652_v28 }
 0x524   :  { %2818 = vmatprep.subr.bf16.mxu1 %v3657_v29 }
 0x527   :  { %2819 = vmatpush1.bf16.msra.mxu1 %v3655_v30 }
 0x528   :  { %2820 = vmatprep.subr.bf16.mxu1 %v3660_v31 }
 0x52b   :  { %2821 = vmatpush1.bf16.msra.mxu1 %v3658_v32 }
 0x52c   :  { %2822 = vmatprep.subr.bf16.mxu1 %v3663_v33 }
 0x52f   :  { %2823 = vmatpush2.bf16.msra.mxu1 %v3661_v34 }
 0x530   :  { %2824 = vmatprep.subr.bf16.mxu1 %v3666_v35 }
 0x533   :  { %2825 = vmatpush2.bf16.msra.mxu1 %v3664_v36 }
 0x534   :  { %2826 = vmatprep.subr.bf16.mxu1 %v3669_v37 }
 0x537   :  { %2827 = vmatpush2.bf16.msra.mxu1 %v3667_v38 }
 0x538   :  { %2828 = vmatprep.subr.bf16.mxu1 %v3672_v39 }
 0x53b   :  { %2829 = vmatpush2.bf16.msra.mxu1 %v3670_v40 }
 0x53c   :  { %2830 = vmatprep.subr.bf16.mxu1 %v3675_v41 }
 0x53f   :  { %2831 = vmatpush2.bf16.msra.mxu1 %v3673_v42 }
 0x540   :  { %2832 = vmatprep.subr.bf16.mxu1 %v3678_v43 }
 0x543   :  { %2833 = vmatpush2.bf16.msra.mxu1 %v3676_v44 }
 0x544   :  { %2834 = vmatprep.subr.bf16.mxu1 %v3681_v45 }
 0x547   :  { %2835 = vmatpush2.bf16.msra.mxu1 %v3679_v46 }
 0x548   :  { %2836 = vmatprep.subr.bf16.mxu1 %v3684_v47 }
 0x54b   :  { %2837 = vmatpush2.bf16.msra.mxu1 %v3682_v48 }
 0x54e   :  { %2839 = vmatmul.mubr.bf16.vlgmr.msra.gmra.mxu1 %v4646_v17 }
 0x58f   :  { %v2717_v49 = vpop.f32.mrf.mxu0 }
 0x591   :  { %v2719_v50 = vpop.f32.mrf.mxu0 }
 0x593   :  { %v2721_v51 = vpop.f32.mrf.mxu0 }
 0x595   :  { %v2722_v52 = vpop.f32.mrf.mxu0 }
 0x5ce   :  { %v2758_v53 = vpop.f32.mrf.mxu1 }
 0x5cf   :  { %v2759_v54 = vadd.f32 %v2758_v53, %v2717_v49  ;;  %v2799_v55 = vpop.f32.mrf.mxu0 }
 0x5d0   :  { %v2760_v56 = vpop.f32.mrf.mxu1 }
 0x5d1   :  { %2847 = vst [vmem:[#allocation3] sm:$0xff] %v2759_v54  ;;  %v2761_v57 = vadd.f32 %v2760_v56, %v2719_v50  ;;  %v2801_v58 = vpop.f32.mrf.mxu0 }
 0x5d2   :  { %v2762_v59 = vpop.f32.mrf.mxu1 }
 0x5d3   :  { %2848 = vst [vmem:[#allocation3 + $0x8] sm:$0xff] %v2761_v57  ;;  %v2803_v60 = vpop.f32.mrf.mxu0 }
 0x5d4   :  { %v2763_v61 = vpop.f32.mrf.mxu1 }
 0x5d5   :  { %v2804_v62 = vpop.f32.mrf.mxu0 }
 0x60e   :  { %v2840_v63 = vpop.f32.mrf.mxu1 }
 0x60f   :  { %v2841_v0 = vadd.f32 %v2840_v63, %v2799_v55 }
 0x610   :  { %v2842_v1 = vpop.f32.mrf.mxu1 }
 0x611   :  { %2849 = vst [vmem:[#allocation3 + $0x10] sm:$0xff] %v2841_v0  ;;  %v2843_v2 = vadd.f32 %v2842_v1, %v2801_v58 }
 0x612   :  { %v2844_v3 = vpop.f32.mrf.mxu1 }
 0x613   :  { %2850 = vst [vmem:[#allocation3 + $0x18] sm:$0xff] %v2843_v2 }
 0x614   :  { %v2845_v4 = vpop.f32.mrf.mxu1 }
 0x615   :  { %3728 = shalt.err (!%p3725_p4)
}
 0x616   :  { %2860 = dma.vmem_to_hbm [thread:$0]  %s2858_s0, 512, %s4752_s5, [#allocation4]  }
 0x617   :  { %3737 = dma.done.wait [#allocation4], 512  }
 0x618   :  { %3738 = vsyncadd [#allocation4], 4294966784 }
 0x619   :  { %2864 = vsyncpa [#allocation4], 1 }

</bundles_post_ra>
